<compile_context>
chip_gen: v5e
topology: v5e:2x2
jax: 0.10.0
libtpu: 0.0.40
codegen_flags: <defaults>
</compile_context>

<pallas_src>
import numpy as np
import jax
import jax.numpy as jnp
from jax import lax
from jax.experimental import pallas as pl
from jax.experimental.pallas import tpu as pltpu


# --------------------------------------------------------------------------- #
# Bicubic resize weights (PyTorch interpolate(mode='bicubic', align_corners=False):
# Keys kernel a=-0.75, half-pixel centres, clamped borders).  The resize is linear,
# so it is exactly a (n_out, n_in) matrix.
# TODO(synk): coefficients mirror torch semantics but are not cross-checked against
# torch.nn.functional.interpolate in this script (no torch dependency allowed).
# --------------------------------------------------------------------------- #
def _cubic_weight(x, a=-0.75):
    ax = np.abs(x)
    return np.where(
        ax <= 1.0,
        (a + 2.0) * ax ** 3 - (a + 3.0) * ax ** 2 + 1.0,
        np.where(ax < 2.0,
                 a * ax ** 3 - 5.0 * a * ax ** 2 + 8.0 * a * ax - 4.0 * a,
                 0.0))


def _bicubic_matrix(n_in, n_out):
    m = np.zeros((n_out, n_in), np.float64)
    scale = n_in / n_out
    for o in range(n_out):
        src = (o + 0.5) * scale - 0.5
        base = np.floor(src)
        t = src - base
        for k in range(-1, 3):
            idx = int(np.clip(base + k, 0, n_in - 1))
            m[o, idx] += _cubic_weight(k - t)
    return m.astype(np.float32)


# --------------------------------------------------------------------------- #
# Factory: constants built ONCE (module init), returns a jitted fused forward.
# --------------------------------------------------------------------------- #
def make_feat_fuser(conv_w, bn_params, bev_h, bev_w, lidar_spatial,
                    compute_dtype=jnp.bfloat16):
    if conv_w is None:                       # module's `fuser is None` identity path
        return lambda img_bev_feat, lidar_feat: img_bev_feat

    s2, s3 = lidar_spatial                   # lidar BEV spatial dims BEFORE permute(0,1,3,2)
    hw = bev_h * bev_w
    c_out, c_tot = int(conv_w.shape[0]), int(conv_w.shape[1])

    # ---- fold BatchNorm into the conv and group taps by ky (host-side, once) ----
    gamma, beta, mean, var, eps = bn_params
    gamma, beta, mean, var = map(np.asarray, (gamma, beta, mean, var))
    scale = gamma / np.sqrt(var + float(eps))
    # OIHW -> [ky, kx, C_in, C_out]; per-ky, kx taps concatenated along K -> (3*C_tot, C_out)
    w_taps = np.transpose(np.asarray(conv_w), (2, 3, 1, 0)) * scale
    wk = jnp.asarray(w_taps.reshape(3, 3 * c_tot, c_out), dtype=compute_dtype)
    bias = jnp.asarray((beta - mean * scale).reshape(1, c_out), dtype=jnp.float32)

    # ---- separable bicubic resize of the PERMUTED lidar map as one (HW, s3*s2) matrix ----
    # permute(0,1,3,2): "height" axis = original dim 3 (s3), "width" axis = dim 2 (s2).
    wh = _bicubic_matrix(s3, bev_h)                       # (bev_h, s3)
    ww = _bicubic_matrix(s2, bev_w)                       # (bev_w, s2)
    k_interp = jnp.asarray(
        np.einsum("hi,wj->hwij", wh, ww).reshape(hw, s3 * s2), dtype=compute_dtype)

    # ------------------------------------------------------------------ kernel
    def kernel(img_ref, lid_ref, k_ref, wk_ref, b_ref, out_ref, acc_ref):
        # 1) bicubic resize of the permuted lidar map -> (HW, C_lid): one bf16 MXU matmul.
        lid_hw = jnp.dot(k_ref[...], lid_ref[0], preferred_element_type=jnp.float32)

        # 2) ConvFuser input: channel concat, channels-last -> (H, W, C_tot).
        f3 = jnp.concatenate([img_ref[0].astype(jnp.float32), lid_hw], axis=-1)
        f3 = f3.reshape(bev_h, bev_w, c_tot)

        # 3) column (kx) shifts: boundary columns pre-masked ONCE (2 selects total),
        #    shifts are XLU rolls (free slot), no per-tap masking.
        w_idx = lax.broadcasted_iota(jnp.int32, (1, bev_w, c_tot), 1)
        f3_nolast = jnp.where(w_idx < bev_w - 1, f3, 0.0)      # col W-1 zeroed
        f3_nofirst = jnp.where(w_idx > 0, f3, 0.0)             # col 0 zeroed
        win_l = pltpu.roll(f3_nolast, shift=1, axis=1)         # in[h, w-1]  (kx=0)
        win_r = pltpu.roll(f3_nofirst, shift=bev_w - 1, axis=1)  # in[h, w+1] (kx=2)

        # 4) deep-K operand: kx taps lane-concatenated -> (HW, 3*C_tot), bf16 for the MXU.
        wide = jnp.concatenate([win_l, f3, win_r], axis=-1)
        wide = wide.reshape(hw, 3 * c_tot).astype(compute_dtype)

        # 5) 3x3 conv = THREE deep-K MXU matmuls.  Row (ky) shifts are +/- bev_w rows,
        #    i.e. sublane-aligned slices accumulated into the f32 VMEM scratch — no
        #    zero-padded row copies, accumulation over kx stays inside the MXU.
        acc_ref[...] = jnp.dot(wide, wk_ref[1],                    # ky=1 (centre row)
                               preferred_element_type=jnp.float32)
        top = jnp.dot(wide[: hw - bev_w], wk_ref[0],               # ky=0: out rows 1..H-1
                      preferred_element_type=jnp.float32)
        acc_ref[pl.ds(bev_w, hw - bev_w)] = acc_ref[pl.ds(bev_w, hw - bev_w)] + top
        bot = jnp.dot(wide[bev_w:], wk_ref[2],                     # ky=2: out rows 0..H-2
                      preferred_element_type=jnp.float32)
        acc_ref[pl.ds(0, hw - bev_w)] = acc_ref[pl.ds(0, hw - bev_w)] + bot

        # 6) folded-BN bias + ReLU; output is already (HW, C_out), i.e. exactly
        #    fused.flatten(2).permute(0, 2, 1) of the NCHW conv output.
        out_ref[0] = jnp.maximum(acc_ref[...] + b_ref[...], 0.0)

    # --------------------------------------------------------------- wrapper
    @jax.jit
    def fused_forward(img_bev_feat, lidar_feat):
        bsz, c_img, h, w = img_bev_feat.shape
        _, c_lid, ls2, ls3 = lidar_feat.shape
        assert (h, w) == (bev_h, bev_w) and (ls2, ls3) == (s2, s3)
        assert c_img + c_lid == c_tot

        # layout plumbing in bf16 (half the bytes; cast+transpose fuse under jit)
        img_rows = jnp.transpose(img_bev_feat.astype(compute_dtype),
                                 (0, 2, 3, 1)).reshape(bsz, hw, c_img)
        # row r = i*s2 + j holds lidar[b, :, j, i]  (permute(0,1,3,2) folded into ordering)
        lid_rows = jnp.transpose(lidar_feat.astype(compute_dtype),
                                 (0, 3, 2, 1)).reshape(bsz, s3 * s2, c_lid)

        return pl.pallas_call(
            kernel,
            out_shape=jax.ShapeDtypeStruct((bsz, hw, c_out), jnp.float32),
            grid_spec=pltpu.PrefetchScalarGridSpec(
                num_scalar_prefetch=0,
                grid=(bsz,),
                in_specs=[
                    pl.BlockSpec((1, hw, c_img), lambda b: (b, 0, 0)),
                    pl.BlockSpec((1, s3 * s2, c_lid), lambda b: (b, 0, 0)),
                    pl.BlockSpec((hw, s3 * s2), lambda b: (0, 0)),
                    pl.BlockSpec((3, 3 * c_tot, c_out), lambda b: (0, 0, 0)),
                    pl.BlockSpec((1, c_out), lambda b: (0, 0)),
                ],
                out_specs=pl.BlockSpec((1, hw, c_out), lambda b: (b, 0, 0)),
                scratch_shapes=[pltpu.VMEM((hw, c_out), jnp.float32)],
            ),
            compiler_params=pltpu.CompilerParams(
                dimension_semantics=("parallel",)),      # batch -> both v7x TensorCores
        )(img_rows, lid_rows, k_interp, wk, bias)

    def forward(img_bev_feat, lidar_feat):
        if lidar_feat is None:                 # module's identity early-exit
            return img_bev_feat
        return fused_forward(img_bev_feat, lidar_feat)

    return forward


# --------------------------------------------------------------------------- #
# Pure-JAX reference (same math, independent formulation, f32 HIGHEST).
# --------------------------------------------------------------------------- #
def reference(img_bev_feat, lidar_feat, conv_w, bn_params):
    hp = jax.lax.Precision.HIGHEST
    bsz, _, bev_h, bev_w = img_bev_feat.shape
    _, _, s2, s3 = lidar_feat.shape
    c_out = conv_w.shape[0]
    gamma, beta, mean, var, eps = bn_params

    wh = jnp.asarray(_bicubic_matrix(s3, bev_h))
    ww = jnp.asarray(_bicubic_matrix(s2, bev_w))
    lid_p = jnp.transpose(lidar_feat, (0, 1, 3, 2))                 # permute(0,1,3,2)
    lid_i = jnp.einsum("hi,bcij,wj->bchw", wh, lid_p, ww, precision=hp)

    x = jnp.concatenate([img_bev_feat, lid_i], axis=1)              # (B, C_tot, H, W)
    y = jax.lax.conv_general_dilated(
        x, conv_w, window_strides=(1, 1), padding="SAME",
        dimension_numbers=("NCHW", "OIHW", "NCHW"), precision=hp)
    scale = gamma / jnp.sqrt(var + eps)
    y = y * scale[None, :, None, None] + (beta - mean * scale)[None, :, None, None]
    y = jnp.maximum(y, 0.0)
    return y.reshape(bsz, c_out, -1).transpose(0, 2, 1)             # flatten(2).permute(0,2,1)


if __name__ == "__main__":
    B, C_IMG, C_LID, C_OUT = 2, 128, 128, 128
    BEV_H, BEV_W = 16, 16
    S2, S3 = 24, 12            # lidar BEV spatial dims before permute(0,1,3,2)

    key = jax.random.PRNGKey(0)
    k0, k1, k2, k3, k4, k5, k6 = jax.random.split(key, 7)
    img_bev_feat = jax.random.normal(k0, (B, C_IMG, BEV_H, BEV_W), jnp.float32)
    lidar_feat = jax.random.normal(k1, (B, C_LID, S2, S3), jnp.float32)

    # synthetic ConvFuser + BatchNorm parameters
    conv_w = 0.05 * jax.random.normal(k2, (C_OUT, C_IMG + C_LID, 3, 3), jnp.float32)
    gamma = 1.0 + 0.1 * jax.random.normal(k3, (C_OUT,), jnp.float32)
    beta = 0.1 * jax.random.normal(k4, (C_OUT,), jnp.float32)
    mean = 0.1 * jax.random.normal(k5, (C_OUT,), jnp.float32)
    var = 1.0 + 0.5 * jax.random.uniform(k6, (C_OUT,), jnp.float32)
    bn = (gamma, beta, mean, var, 1e-5)

    # constants prepared ONCE here (module init), forward is jitted
    feat_fuser = make_feat_fuser(conv_w, bn, BEV_H, BEV_W, (S2, S3))

    fused = jax.block_until_ready(feat_fuser(img_bev_feat, lidar_feat))
    assert fused.shape == (B, BEV_H * BEV_W, C_OUT)

    ref = reference(img_bev_feat, lidar_feat, conv_w, bn)
    # bf16 MXU operands over a K~2300 reduction vs. an f32-HIGHEST reference
    # (output std ~ 2, so 5e-2 atol is ~2.5% relative): tolerance widened accordingly.
    np.testing.assert_allclose(np.asarray(fused), np.asarray(ref),
                               rtol=2e-2, atol=5e-2)

    # module's identity early-exit paths
    ident = feat_fuser(img_bev_feat, None)
    assert ident is img_bev_feat
    identity_fuser = make_feat_fuser(None, bn, BEV_H, BEV_W, (S2, S3))
    assert identity_fuser(img_bev_feat, lidar_feat) is img_bev_feat

    print("KERNEL_OK")
</pallas_src>

<mosaic_0001>
module attributes {stable_mosaic.version = 11 : i64} {
  func.func @kernel(%arg0: i32, %arg1: memref<1x256x128xbf16, #tpu.memory_space<vmem>>, %arg2: memref<1x288x128xbf16, #tpu.memory_space<vmem>>, %arg3: memref<256x288xbf16, #tpu.memory_space<vmem>>, %arg4: memref<3x768x128xbf16, #tpu.memory_space<vmem>>, %arg5: memref<1x128xf32, #tpu.memory_space<vmem>>, %arg6: memref<1x256x128xf32, #tpu.memory_space<vmem>>, %arg7: memref<256x128xf32, #tpu.memory_space<vmem>>) attributes {dimension_semantics = [#tpu.dimension_semantics<parallel>], iteration_bounds = array<i64: 2>, scalar_prefetch = 0 : i64, scratch_operands = 1 : i64, tpu.core_type = #tpu.core_type<tc>, window_params = [{transform_indices = @transform_0, window_bounds = array<i64: 1, 256, 128>}, {transform_indices = @transform_1, window_bounds = array<i64: 1, 288, 128>}, {pipeline_mode = #tpu.pipeline_mode<synchronous>, transform_indices = @transform_2, window_bounds = array<i64: 256, 288>}, {pipeline_mode = #tpu.pipeline_mode<synchronous>, transform_indices = @transform_3, window_bounds = array<i64: 3, 768, 128>}, {pipeline_mode = #tpu.pipeline_mode<synchronous>, transform_indices = @transform_4, window_bounds = array<i64: 1, 128>}, {transform_indices = @transform_5, window_bounds = array<i64: 1, 256, 128>}]} {
    %c0 = arith.constant 0 : index
    %c0_0 = arith.constant 0 : index
    %0 = vector.load %arg3[%c0, %c0_0] : memref<256x288xbf16, #tpu.memory_space<vmem>>, vector<256x288xbf16>
    %c0_1 = arith.constant 0 : index
    %c0_2 = arith.constant 0 : index
    %c0_3 = arith.constant 0 : index
    %1 = vector.load %arg2[%c0_1, %c0_2, %c0_3] : memref<1x288x128xbf16, #tpu.memory_space<vmem>>, vector<1x288x128xbf16>
    %2 = vector.shape_cast %1 : vector<1x288x128xbf16> to vector<288x128xbf16>
    %cst = arith.constant dense<0.000000e+00> : vector<256x128xf32>
    %3 = tpu.matmul %0, %2, %cst {dimension_numbers = #tpu.dot_dimension_numbers<[1], [0], [0], [1], [0, 0, 1, 1], [], []>} : vector<256x288xbf16>, vector<288x128xbf16>, vector<256x128xf32> -> vector<256x128xf32>
    %c0_4 = arith.constant 0 : index
    %c0_5 = arith.constant 0 : index
    %c0_6 = arith.constant 0 : index
    %4 = vector.load %arg1[%c0_4, %c0_5, %c0_6] : memref<1x256x128xbf16, #tpu.memory_space<vmem>>, vector<1x256x128xbf16>
    %5 = vector.shape_cast %4 : vector<1x256x128xbf16> to vector<256x128xbf16>
    %6 = arith.extf %5 : vector<256x128xbf16> to vector<256x128xf32>
    %7 = tpu.concatenate %6, %3 in 1 : vector<256x128xf32>, vector<256x128xf32> -> vector<256x256xf32>
    %8 = vector.shape_cast %7 : vector<256x256xf32> to vector<16x16x256xf32>
    %9 = tpu.iota {dimensions = array<i32: 1>} : vector<1x16x256xi32>
    %c15_i32 = arith.constant 15 : i32
    %10 = vector.broadcast %c15_i32 : i32 to vector<1x16x256xi32>
    %11 = arith.cmpi slt, %9, %10 : vector<1x16x256xi32>
    %cst_7 = arith.constant 0.000000e+00 : f32
    %12 = vector.shape_cast %11 : vector<1x16x256xi1> to vector<1x16x256xi1>
    %13 = vector.broadcast %12 : vector<1x16x256xi1> to vector<16x16x256xi1>
    %14 = vector.broadcast %cst_7 : f32 to vector<16x16x256xf32>
    %15 = arith.select %13, %8, %14 : vector<16x16x256xi1>, vector<16x16x256xf32>
    %c0_i32 = arith.constant 0 : i32
    %16 = vector.broadcast %c0_i32 : i32 to vector<1x16x256xi32>
    %17 = arith.cmpi sgt, %9, %16 : vector<1x16x256xi32>
    %cst_8 = arith.constant 0.000000e+00 : f32
    %18 = vector.shape_cast %17 : vector<1x16x256xi1> to vector<1x16x256xi1>
    %19 = vector.broadcast %18 : vector<1x16x256xi1> to vector<16x16x256xi1>
    %20 = vector.broadcast %cst_8 : f32 to vector<16x16x256xf32>
    %21 = arith.select %19, %8, %20 : vector<16x16x256xi1>, vector<16x16x256xf32>
    %c1_i32 = arith.constant 1 : i32
    %22 = tpu.dynamic_rotate %15 by %c1_i32 dim 1 : vector<16x16x256xf32>, i32 -> vector<16x16x256xf32>
    %c15_i32_9 = arith.constant 15 : i32
    %23 = tpu.dynamic_rotate %21 by %c15_i32_9 dim 1 : vector<16x16x256xf32>, i32 -> vector<16x16x256xf32>
    %24 = tpu.concatenate %22, %8, %23 in 2 : vector<16x16x256xf32>, vector<16x16x256xf32>, vector<16x16x256xf32> -> vector<16x16x768xf32>
    %25 = vector.shape_cast %24 : vector<16x16x768xf32> to vector<256x768xf32>
    %26 = arith.truncf %25 : vector<256x768xf32> to vector<256x768xbf16>
    %c1 = arith.constant 1 : index
    %c0_10 = arith.constant 0 : index
    %c0_11 = arith.constant 0 : index
    %27 = vector.load %arg4[%c1, %c0_10, %c0_11] : memref<3x768x128xbf16, #tpu.memory_space<vmem>>, vector<1x768x128xbf16>
    %28 = vector.shape_cast %27 : vector<1x768x128xbf16> to vector<768x128xbf16>
    %cst_12 = arith.constant dense<0.000000e+00> : vector<256x128xf32>
    %29 = tpu.matmul %26, %28, %cst_12 {dimension_numbers = #tpu.dot_dimension_numbers<[1], [0], [0], [1], [0, 0, 1, 1], [], []>} : vector<256x768xbf16>, vector<768x128xbf16>, vector<256x128xf32> -> vector<256x128xf32>
    %c0_13 = arith.constant 0 : index
    %c0_14 = arith.constant 0 : index
    %30 = vector.load %arg7[%c0_13, %c0_14] : memref<256x128xf32, #tpu.memory_space<vmem>>, vector<256x128xf32>
    tpu.vector_store %arg7[%c0_13, %c0_14], %29 {strides = array<i32>} : memref<256x128xf32, #tpu.memory_space<vmem>>, vector<256x128xf32>,
    %31 = vector.extract_strided_slice %26 {offsets = [0, 0], sizes = [240, 768], strides = [1, 1]} : vector<256x768xbf16> to vector<240x768xbf16>
    %c0_15 = arith.constant 0 : index
    %c0_16 = arith.constant 0 : index
    %c0_17 = arith.constant 0 : index
    %32 = vector.load %arg4[%c0_15, %c0_16, %c0_17] : memref<3x768x128xbf16, #tpu.memory_space<vmem>>, vector<1x768x128xbf16>
    %33 = vector.shape_cast %32 : vector<1x768x128xbf16> to vector<768x128xbf16>
    %cst_18 = arith.constant dense<0.000000e+00> : vector<240x128xf32>
    %34 = tpu.matmul %31, %33, %cst_18 {dimension_numbers = #tpu.dot_dimension_numbers<[1], [0], [0], [1], [0, 0, 1, 1], [], []>} : vector<240x768xbf16>, vector<768x128xbf16>, vector<240x128xf32> -> vector<240x128xf32>
    %c16 = arith.constant 16 : index
    %c0_19 = arith.constant 0 : index
    %35 = vector.load %arg7[%c16, %c0_19] : memref<256x128xf32, #tpu.memory_space<vmem>>, vector<240x128xf32>
    %36 = arith.addf %35, %34 : vector<240x128xf32>
    %c16_20 = arith.constant 16 : index
    %c0_21 = arith.constant 0 : index
    %37 = vector.load %arg7[%c16_20, %c0_21] : memref<256x128xf32, #tpu.memory_space<vmem>>, vector<240x128xf32>
    tpu.vector_store %arg7[%c16_20, %c0_21], %36 {strides = array<i32>} : memref<256x128xf32, #tpu.memory_space<vmem>>, vector<240x128xf32>,
    %38 = vector.extract_strided_slice %26 {offsets = [16, 0], sizes = [240, 768], strides = [1, 1]} : vector<256x768xbf16> to vector<240x768xbf16>
    %c2 = arith.constant 2 : index
    %c0_22 = arith.constant 0 : index
    %c0_23 = arith.constant 0 : index
    %39 = vector.load %arg4[%c2, %c0_22, %c0_23] : memref<3x768x128xbf16, #tpu.memory_space<vmem>>, vector<1x768x128xbf16>
    %40 = vector.shape_cast %39 : vector<1x768x128xbf16> to vector<768x128xbf16>
    %cst_24 = arith.constant dense<0.000000e+00> : vector<240x128xf32>
    %41 = tpu.matmul %38, %40, %cst_24 {dimension_numbers = #tpu.dot_dimension_numbers<[1], [0], [0], [1], [0, 0, 1, 1], [], []>} : vector<240x768xbf16>, vector<768x128xbf16>, vector<240x128xf32> -> vector<240x128xf32>
    %c0_25 = arith.constant 0 : index
    %c0_26 = arith.constant 0 : index
    %42 = vector.load %arg7[%c0_25, %c0_26] : memref<256x128xf32, #tpu.memory_space<vmem>>, vector<240x128xf32>
    %43 = arith.addf %42, %41 : vector<240x128xf32>
    %c0_27 = arith.constant 0 : index
    %c0_28 = arith.constant 0 : index
    %44 = vector.load %arg7[%c0_27, %c0_28] : memref<256x128xf32, #tpu.memory_space<vmem>>, vector<240x128xf32>
    tpu.vector_store %arg7[%c0_27, %c0_28], %43 {strides = array<i32>} : memref<256x128xf32, #tpu.memory_space<vmem>>, vector<240x128xf32>,
    %c0_29 = arith.constant 0 : index
    %c0_30 = arith.constant 0 : index
    %45 = vector.load %arg7[%c0_29, %c0_30] : memref<256x128xf32, #tpu.memory_space<vmem>>, vector<256x128xf32>
    %c0_31 = arith.constant 0 : index
    %c0_32 = arith.constant 0 : index
    %46 = vector.load %arg5[%c0_31, %c0_32] : memref<1x128xf32, #tpu.memory_space<vmem>>, vector<1x128xf32>
    %47 = vector.broadcast %46 : vector<1x128xf32> to vector<256x128xf32>
    %48 = arith.addf %45, %47 : vector<256x128xf32>
    %cst_33 = arith.constant 0.000000e+00 : f32
    %49 = vector.broadcast %cst_33 : f32 to vector<256x128xf32>
    %50 = arith.maximumf %48, %49 : vector<256x128xf32>
    %c0_34 = arith.constant 0 : index
    %c0_35 = arith.constant 0 : index
    %c0_36 = arith.constant 0 : index
    %51 = vector.load %arg6[%c0_34, %c0_35, %c0_36] : memref<1x256x128xf32, #tpu.memory_space<vmem>>, vector<1x256x128xf32>
    %52 = vector.shape_cast %51 : vector<1x256x128xf32> to vector<256x128xf32>
    %53 = vector.shape_cast %50 : vector<256x128xf32> to vector<1x256x128xf32>
    tpu.vector_store %arg6[%c0_34, %c0_35, %c0_36], %53 {strides = array<i32>} : memref<1x256x128xf32, #tpu.memory_space<vmem>>, vector<1x256x128xf32>,
    return
  }
  func.func @transform_0(%arg0: i32) -> (i32, i32, i32) {
    %c0_i32 = arith.constant 0 : i32
    %c0_i32_0 = arith.constant 0 : i32
    %c0_i32_1 = arith.constant 0 : i32
    return %arg0, %c0_i32, %c0_i32_0 : i32, i32, i32
  }
  func.func @transform_1(%arg0: i32) -> (i32, i32, i32) {
    %c0_i32 = arith.constant 0 : i32
    %c0_i32_0 = arith.constant 0 : i32
    %c0_i32_1 = arith.constant 0 : i32
    return %arg0, %c0_i32, %c0_i32_0 : i32, i32, i32
  }
  func.func @transform_2(%arg0: i32) -> (i32, i32) {
    %c0_i32 = arith.constant 0 : i32
    %c0_i32_0 = arith.constant 0 : i32
    %c0_i32_1 = arith.constant 0 : i32
    return %c0_i32, %c0_i32_0 : i32, i32
  }
  func.func @transform_3(%arg0: i32) -> (i32, i32, i32) {
    %c0_i32 = arith.constant 0 : i32
    %c0_i32_0 = arith.constant 0 : i32
    %c0_i32_1 = arith.constant 0 : i32
    %c0_i32_2 = arith.constant 0 : i32
    return %c0_i32, %c0_i32_0, %c0_i32_1 : i32, i32, i32
  }
  func.func @transform_4(%arg0: i32) -> (i32, i32) {
    %c0_i32 = arith.constant 0 : i32
    %c0_i32_0 = arith.constant 0 : i32
    %c0_i32_1 = arith.constant 0 : i32
    return %c0_i32, %c0_i32_0 : i32, i32
  }
  func.func @transform_5(%arg0: i32) -> (i32, i32, i32) {
    %c0_i32 = arith.constant 0 : i32
    %c0_i32_0 = arith.constant 0 : i32
    %c0_i32_1 = arith.constant 0 : i32
    return %arg0, %c0_i32, %c0_i32_0 : i32, i32, i32
  }
}

</mosaic_0001>

<bundles_post_ra>
// kernel: fused_forward.1
= control target key start
LH: loop header
LB: loop body
LE: loop exit
PB: predicated region body
PF: predicated region fallthrough
CT: control target
= control target key end

     0   :  { %10 = vsyncpa [#allocation4], 0  ;;  %s9321_s0 = inlined_call_operand.vmem [shape: bf16[2,256,128], index: 0, kind: input, shape index: {}]   ;;  %s9322_s1 = inlined_call_operand.vmem [shape: bf16[2,288,128], index: 1, kind: input, shape index: {}]   ;;  %s9323_s2 = inlined_call_operand.vmem [shape: bf16[256,288], index: 2, kind: input, shape index: {}]   ;;  %s9324_s3 = inlined_call_operand.hbm [shape: bf16[3,768,128], index: 3, kind: input, shape index: {}]   ;;  %s9325_s4 = inlined_call_operand.vmem [shape: f32[1,128], index: 4, kind: input, shape index: {}]   ;;  %s9326_s5 = inlined_call_operand.hbm [shape: f32[2,256,128], index: 5, kind: output, shape index: {}]  }
   0x1   :  { %11 = vsyncpa [#allocation5], 0 }
   0x2   :  { %13 = vsyncpa [#allocation5 + $0x1], 0  ;;  %s6578_s18 = smov 0   ;;  %s6580_s19 = smov 0  }
   0x3   :  { %s6582_s20 = smov 0   ;;  %s6584_s21 = smov 0  }
   0x4 LB: > { %s6599_s22 = sadd.s32 4294967295, %s6541_s21   ;;  %s5208_s23 = sadd.s32 4294967294, %s6541_s21   ;;  %s6541_s21 = sphi %s6584_s21, %s10050_s21   ;;  %s6537_s20 = sphi %s6582_s20, %s10049_s20   ;;  %s6533_s19 = sphi %s6580_s19, %s10048_s19   ;;  %s6529_s18 = sphi %s6578_s18, %s10047_s18  }
   0x5   : > { %s6603_s24 = sadd.s32 1, %s6541_s21   ;;  %s141_s25 = sadd.s32 1, %s6537_s20 }
   0x6   : > { %s138_s26 = ssub.s32 %s6541_s21, %s6603_s24  ;;  %p151_p0 = scmp.ne.s32.totalorder %s6537_s20, %s6533_s19 }
   0x7   : > { %p139_p1 = scmp.eq.s32.totalorder %s138_s26, 0  ;;  %p152_p2 = scmp.eq.s32.totalorder %s6599_s22, 1 }
   0x8   : > { %p157_p3 = scmp.ne.s32.totalorder %s6533_s19, %s6529_s18  ;;  %p158_p4 = scmp.eq.s32.totalorder %s5208_s23, 1 }
   0x9   : > { %s6614_s27 = scalar_select %p139_p1, %s6537_s20, %s141_s25  }
   0xa   : > { %p6616_p5 = por %p152_p2, %p151_p0  ;;  %p6620_p6 = por %p158_p4, %p157_p3 }
   0xb   : > { %p5209_p7 = scmp.ge.s32.totalorder %s6541_s21, 1  ;;  %p165_p8 = scmp.lt.s32.totalorder %s6541_s21, 3 }
   0xc   : > { %p6403_p9 = scmp.eq.s32.totalorder %s6599_s22, 0  ;;  %s179_s7 = sshll.u32 %s9324_s3, 4  ;;  %s180_s7 = int_to_ptr.hbm [resolvable:$true] %s179_s7 }
   0xd   : > { %p166_p10 = pnand %p5209_p7, %p165_p8  ;;  %s6543_s8 = smov [#allocation3]  }
   0xe   : > { %s181_s9 = sshll.u32 %s6543_s8, 4  ;;  %s6544_s10 = smov 64   ;;  %s182_s9 = int_to_ptr.vmem [resolvable:$true] %s181_s9 }
   0xf   : > { %p6395_p11 = pneg %p166_p10  ;;  %s6545_s11 = smov 4  }
  0x10   : > { %216 = sbr.rel (%p166_p10) target bundleno = 1745 (0x6d1), region = 40 }
  0x11   : > { %p6396_p12 = pnand %p6403_p9, %p6395_p11 }
  0x13   : > { %6398 = dma.hbm_to_vmem [thread:$0]  (!%p6396_p12), %s180_s7, 18432, %s182_s9, [#allocation4], %s6544_s10, %s6544_s10, %s6545_s11  }
  0x15   : > { %6520 = dma.done.wait (%p6403_p9), [#allocation4], 18432  }
  0x16   : > { %6522 = vsyncadd (%p6403_p9), [#allocation4], 4294948864  ;;  %p250_p13 = scmp.lt.s32.totalorder %s6599_s22, 1  ;;  %v5220_v9 = vld [vmem:[%s9323_s2] sm:$0xf]  ;;  %vm709_vm0 = vcmask 261120  }
  0x17   : > { %v6081_v10 = vld [vmem:[%s9323_s2 + $0x8] sm:$0xf0]  ;;  %v5340_v11 = vld [vmem:[%s9323_s2 + $0xf0] sm:$0xf]  ;;  %v6111_v12 = vld [vmem:[%s9323_s2 + $0xf8] sm:$0xf0] }
  0x18   : > { %s6638_s12 = scalar_select %p250_p13, %s6599_s22, 1  ;;  %v5221_v14 = vor.u32 %v6081_v10, %v5220_v9  ;;  %v5341_v15 = vor.u32 %v6111_v12, %v5340_v11  ;;  %v5232_v19 = vld [vmem:[%s9323_s2 + $0x18] sm:$0xf]  ;;  %v6084_v20 = vld [vmem:[%s9323_s2 + $0x20] sm:$0xf0] }
  0x19   : > { %v5352_v21 = vld [vmem:[%s9323_s2 + $0x108] sm:$0xf]  ;;  %v6114_v22 = vld [vmem:[%s9323_s2 + $0x110] sm:$0xf0]  ;;  %v5233_v24 = vor.u32 %v6084_v20, %v5232_v19  ;;  %v5244_v29 = vld [vmem:[%s9323_s2 + $0x30] sm:$0xf] }
  0x1a   : > { %s6388_s13 = smul.u32 144, %s6638_s12  ;;  %v5353_v25 = vor.u32 %v6114_v22, %v5352_v21  ;;  %v6087_v30 = vld [vmem:[%s9323_s2 + $0x38] sm:$0xf0]  ;;  %v6080_v31 = vld [vmem:[%s9323_s2 + $0x4] sm:$0xf]  ;;  %s6079_s8 = sshll.u32 %s6638_s12, 7 }
  0x1b   : > { %v5222_v32 = vld [vmem:[%s9323_s2 + $0xc] sm:$0xf0]  ;;  %v5245_v33 = vor.u32 %v6087_v30, %v5244_v29  ;;  %v5256_v35 = vld [vmem:[%s9323_s2 + $0x48] sm:$0xf]  ;;  %v6090_v36 = vld [vmem:[%s9323_s2 + $0x50] sm:$0xf0]  ;;  %s6988_s12 = scalar_lea.vmem %s9321_s0, %s6079_s8 }
  0x1c   : > { %s6644_s16 = scalar_lea.vmem %s9322_s1, %s6388_s13  ;;  %v5225_v34 = vor.u32 %v6080_v31, %v5222_v32  ;;  %v6083_v37 = vld [vmem:[%s9323_s2 + $0x1c] sm:$0xf]  ;;  %v5234_v38 = vld [vmem:[%s9323_s2 + $0x24] sm:$0xf0]  ;;  %v5257_v39 = vor.u32 %v6090_v36, %v5256_v35  ;;  %v5268_v42 = vld [vmem:[%s9323_s2 + $0x60] sm:$0xf] }
  0x1d   : > { %v6135_v0 = vld [vmem:[%s6644_s16 + $0x38] sm:$0xff]  ;;  %v6134_v1 = vld [vmem:[%s6644_s16 + $0x30] sm:$0xff]  ;;  %v6145_v2 = vld [vmem:[%s6644_s16 + $0x88] sm:$0xff]  ;;  %v5237_v40 = vor.u32 %v6083_v37, %v5234_v38  ;;  %s6290_s9 = sshll.u32 %s6599_s22, 8  ;;  %s6495_s26 = scalar_lea.hbm %s9326_s5, 512 }
  0x1e   : > { %758 = vmatpush.bf16.msra.mxu0 %v6135_v0  ;;  %6370 = vmatpush.bf16.msra.mxu1 %v6135_v0  ;;  %v6133_v3 = vld [vmem:[%s6644_s16 + $0x28] sm:$0xff]  ;;  %v6132_v4 = vld [vmem:[%s6644_s16 + $0x20] sm:$0xff]  ;;  %v6131_v5 = vld [vmem:[%s6644_s16 + $0x18] sm:$0xff]  ;;  %s5118_s13 = scalar_lea.hbm %s9326_s5, %s6290_s9 }
  0x1f   : > { %6371 = vmatpush.bf16.msra.mxu3 %v6135_v0  ;;  %6386 = vmatpush.bf16.msra.mxu2 %v6145_v2  ;;  %v6130_v6 = vld [vmem:[%s6644_s16 + $0x10] sm:$0xff]  ;;  %v6129_v7 = vld [vmem:[%s6644_s16 + $0x8] sm:$0xff]  ;;  %v6128_v8 = vld [vmem:[%s6644_s16] sm:$0xff]  ;;  %s5121_s14 = sshll.u32 %s5118_s13, 4  ;;  %s5122_s14 = int_to_ptr.hbm [resolvable:$true] %s5121_s14 }
  0x20   : > { %v6143_v13 = vld [vmem:[%s6644_s16 + $0x78] sm:$0xff]  ;;  %v6142_v16 = vld [vmem:[%s6644_s16 + $0x70] sm:$0xff]  ;;  %v6141_v17 = vld [vmem:[%s6644_s16 + $0x68] sm:$0xff]  ;;  %s6489_s15 = sshra.s32 %s5122_s14, 4  ;;  %s6490_s15 = int_to_ptr.hbm [resolvable:$true] %s6489_s15 }
  0x21   : > { %v6140_v18 = vld [vmem:[%s6644_s16 + $0x60] sm:$0xff]  ;;  %v6139_v23 = vld [vmem:[%s6644_s16 + $0x58] sm:$0xff]  ;;  %v6138_v26 = vld [vmem:[%s6644_s16 + $0x50] sm:$0xff]  ;;  %s6491_s17 = scalar_lea.hbm %s6490_s15, 256  ;;  %p6496_p3 = scmp.lt.s32.totalorder %s6490_s15, %s9326_s5 }
  0x22   : > { %759 = vmatpush.bf16.msra.mxu0 %v6134_v1  ;;  %6372 = vmatpush.bf16.msra.mxu1 %v6134_v1  ;;  %v6137_v27 = vld [vmem:[%s6644_s16 + $0x48] sm:$0xff]  ;;  %v6136_v28 = vld [vmem:[%s6644_s16 + $0x40] sm:$0xff]  ;;  %v6086_v44 = vld [vmem:[%s9323_s2 + $0x34] sm:$0xf]  ;;  %p6492_p0 = scmp.ne.s32.totalorder %s6490_s15, %s6491_s17  ;;  %p6497_p4 = scmp.lt.s32.totalorder %s6495_s26, %s6491_s17 }
  0x23   : > { %6373 = vmatpush.bf16.msra.mxu3 %v6134_v1  ;;  %v6144_v41 = vld [vmem:[%s6644_s16 + $0x80] sm:$0xff]  ;;  %v6093_v43 = vld [vmem:[%s9323_s2 + $0x68] sm:$0xf0]  ;;  %v5280_v48 = vld [vmem:[%s9323_s2 + $0x78] sm:$0xf] }
  0x24   : > { %6387 = vmatpush.bf16.msra.mxu2 %v6144_v41  ;;  %v5246_v45 = vld [vmem:[%s9323_s2 + $0x3c] sm:$0xf0]  ;;  %v5269_v46 = vor.u32 %v6093_v43, %v5268_v42  ;;  %v6096_v49 = vld [vmem:[%s9323_s2 + $0x80] sm:$0xf0]  ;;  %v6089_v50 = vld [vmem:[%s9323_s2 + $0x4c] sm:$0xf]  ;;  %p6493_p1 = pnand %p6492_p0, %p6616_p5  ;;  %p6498_p7 = por %p6497_p4, %p6496_p3 }
  0x25   : > { %v5249_v47 = vor.u32 %v6086_v44, %v5246_v45  ;;  %v5258_v51 = vld [vmem:[%s9323_s2 + $0x54] sm:$0xf0]  ;;  %v5281_v52 = vor.u32 %v6096_v49, %v5280_v48  ;;  %v5292_v54 = vld [vmem:[%s9323_s2 + $0x90] sm:$0xf]  ;;  %v6099_v55 = vld [vmem:[%s9323_s2 + $0x98] sm:$0xf0] }
  0x26   : > { %760 = vmatpush.bf16.msra.mxu0 %v6133_v3  ;;  %6374 = vmatpush.bf16.msra.mxu1 %v6133_v3  ;;  %v5261_v53 = vor.u32 %v6089_v50, %v5258_v51  ;;  %v6092_v56 = vld [vmem:[%s9323_s2 + $0x64] sm:$0xf]  ;;  %v5270_v57 = vld [vmem:[%s9323_s2 + $0x6c] sm:$0xf0]  ;;  %v5293_v58 = vor.u32 %v6099_v55, %v5292_v54  ;;  %v5304_v60 = vld [vmem:[%s9323_s2 + $0xa8] sm:$0xf]  ;;  %p6494_p2 = pneg %p6493_p1 }
  0x27   : > { %6375 = vmatpush.bf16.msra.mxu3 %v6133_v3  ;;  %v5273_v59 = vor.u32 %v6092_v56, %v5270_v57  ;;  %v6102_v61 = vld [vmem:[%s9323_s2 + $0xb0] sm:$0xf0]  ;;  %v6095_v62 = vld [vmem:[%s9323_s2 + $0x7c] sm:$0xf]  ;;  %v5282_v63 = vld [vmem:[%s9323_s2 + $0x84] sm:$0xf0] }
  0x28   : > { %v5305_v0 = vor.u32 %v6102_v61, %v5304_v60  ;;  %v5285_v1 = vor.u32 %v6095_v62, %v5282_v63  ;;  %v6105_v3 = vld [vmem:[%s9323_s2 + $0xc8] sm:$0xf0]  ;;  %v5328_v12 = vld [vmem:[%s9323_s2 + $0xd8] sm:$0xf]  ;;  %v5360_v37 = vld [vmem:[%s9323_s2 + $0x110] sm:$0xf]  ;;  %p6499_p8 = pnand %p6498_p7, %p6494_p2 }
  0x29   : > { %v5348_v22 = vld [vmem:[%s9323_s2 + $0xf8] sm:$0xf]  ;;  %v6115_v38 = vld [vmem:[%s9323_s2 + $0x118] sm:$0xf0]  ;;  %v5240_v42 = vld [vmem:[%s9323_s2 + $0x20] sm:$0xf] }
  0x2a   : > { %761 = vmatpush.bf16.msra.mxu0 %v6132_v4  ;;  %6376 = vmatpush.bf16.msra.mxu1 %v6132_v4  ;;  %v6085_v43 = vld [vmem:[%s9323_s2 + $0x28] sm:$0xf0]  ;;  %v6161_v49 = vld [vmem:[#allocation3 + $0x1f8] sm:$0xff]  ;;  %v5342_v54 = vld [vmem:[%s9323_s2 + $0xfc] sm:$0xf0] }
  0x2b   : > { %6377 = vmatpush.bf16.msra.mxu3 %v6132_v4  ;;  %v6098_v4 = vld [vmem:[%s9323_s2 + $0x94] sm:$0xf]  ;;  %v5241_v45 = vor.u32 %v6085_v43, %v5240_v42  ;;  %2540 = vmatpush.bf16.msrb.mxu2 %v6161_v49  ;;  %v5252_v55 = vld [vmem:[%s9323_s2 + $0x38] sm:$0xf]  ;;  %v6088_v56 = vld [vmem:[%s9323_s2 + $0x40] sm:$0xf0] }
  0x2c   : > { %v6160_v62 = vld [vmem:[#allocation3 + $0x1f0] sm:$0xff] }
  0x2e   : > { %762 = vmatpush.bf16.msra.mxu0 %v6131_v5  ;;  %6378 = vmatpush.bf16.msra.mxu1 %v6131_v5 }
  0x2f   : > { %6379 = vmatpush.bf16.msra.mxu3 %v6131_v5  ;;  %v5294_v5 = vld [vmem:[%s9323_s2 + $0x9c] sm:$0xf0]  ;;  %2541 = vmatpush.bf16.msrb.mxu2 %v6160_v62  ;;  %v5378_v62 = vld [vmem:[%s9323_s2 + $0x144] sm:$0xf0] }
  0x32   : > { %763 = vmatpush.bf16.msra.mxu0 %v6130_v6  ;;  %6380 = vmatpush.bf16.msra.mxu1 %v6130_v6 }
  0x33   : > { %6381 = vmatpush.bf16.msra.mxu3 %v6130_v6 }
  0x36   : > { %764 = vmatpush.bf16.msra.mxu0 %v6129_v7  ;;  %6382 = vmatpush.bf16.msra.mxu1 %v6129_v7 }
  0x37   : > { %6383 = vmatpush.bf16.msra.mxu3 %v6129_v7  ;;  %v5297_v7 = vor.u32 %v6098_v4, %v5294_v5  ;;  %v5372_v4 = vld [vmem:[%s9323_s2 + $0x128] sm:$0xf] }
  0x3a   : > { %765 = vmatpush.bf16.msra.mxu0 %v6128_v8  ;;  %6384 = vmatpush.bf16.msra.mxu1 %v6128_v8 }
  0x3b   : > { %6385 = vmatpush.bf16.msra.mxu3 %v6128_v8 }
  0x3d   : > { %766 = vmatmul.bf16.vlgmr.msra.gmra.mxu0 %v5221_v14  ;;  %816 = vmatmul.bf16.vlgmr.msra.gmra.mxu1 %v5341_v15  ;;  %v6101_v14 = vld [vmem:[%s9323_s2 + $0xac] sm:$0xf]  ;;  %v5306_v15 = vld [vmem:[%s9323_s2 + $0xb4] sm:$0xf0] }
  0x3e   : > { %942 = vmatpush.bf16.msrb.mxu0 %v6145_v2  ;;  %847 = vmatpush.bf16.msrb.mxu1 %v6143_v13  ;;  %v5316_v2 = vld [vmem:[%s9323_s2 + $0xc0] sm:$0xf]  ;;  %v6108_v13 = vld [vmem:[%s9323_s2 + $0xe0] sm:$0xf0] }
  0x3f   : > { %v5317_v6 = vor.u32 %v6105_v3, %v5316_v2  ;;  %v5364_v2 = vld [vmem:[%s9323_s2 + $0x120] sm:$0xf]  ;;  %v6117_v3 = vld [vmem:[%s9323_s2 + $0x128] sm:$0xf0] }
  0x40   : > { %v5365_v5 = vor.u32 %v6117_v3, %v5364_v2 }
  0x42   : > { %848 = vmatpush.bf16.msrb.mxu1 %v6142_v16  ;;  %943 = vmatpush.bf16.msrb.mxu0 %v6144_v41  ;;  %v5329_v16 = vor.u32 %v6108_v13, %v5328_v12  ;;  %v5330_v41 = vld [vmem:[%s9323_s2 + $0xe4] sm:$0xf0]  ;;  %v5354_v12 = vld [vmem:[%s9323_s2 + $0x114] sm:$0xf0]  ;;  %v5264_v13 = vld [vmem:[%s9323_s2 + $0x50] sm:$0xf] }
  0x43   : > { %826 = vmatmul.bf16.vlgmr.msra.gmra.mxu3 %v5365_v5  ;;  %v6177_v5 = vld [vmem:[#allocation3 + $0x278] sm:$0xff] }
  0x46   : > { %849 = vmatpush.bf16.msrb.mxu1 %v6141_v17  ;;  %v5309_v17 = vor.u32 %v6101_v14, %v5306_v15  ;;  %v6091_v14 = vld [vmem:[%s9323_s2 + $0x58] sm:$0xf0] }
  0x4a   : > { %850 = vmatpush.bf16.msrb.mxu1 %v6140_v18 }
  0x4d   : > { %771 = vmatmul.bf16.gmra.mxu0 %v5233_v24  ;;  %821 = vmatmul.bf16.gmra.mxu1 %v5353_v25  ;;  %v6104_v25 = vld [vmem:[%s9323_s2 + $0xc4] sm:$0xf] }
  0x4e   : > { %851 = vmatpush.bf16.msrb.mxu1 %v6139_v23  ;;  %v6112_v23 = vld [vmem:[%s9323_s2 + $0x100] sm:$0xf0] }
  0x4f   : > { %v5349_v24 = vor.u32 %v6112_v23, %v5348_v22  ;;  %v6153_v22 = vld [vmem:[#allocation3 + $0x1b8] sm:$0xff] }
  0x50   : > { %2451 = vmatpush.bf16.msrb.mxu3 %v6153_v22  ;;  %v5408_v22 = vld [vmem:[%s9323_s2 + $0x170] sm:$0xf] }
  0x51   : > { %5492 = vmatmul.msk.bf16.vlgmr.msra.gmra.mxu2 %vm709_vm0, %v5349_v24 }
  0x52   : > { %852 = vmatpush.bf16.msrb.mxu1 %v6138_v26  ;;  %v5318_v26 = vld [vmem:[%s9323_s2 + $0xcc] sm:$0xf0] }
  0x53   : > { %v5321_v29 = vor.u32 %v6104_v25, %v5318_v26  ;;  %v6158_v26 = vld [vmem:[#allocation3 + $0x1e0] sm:$0xff] }
  0x56   : > { %853 = vmatpush.bf16.msrb.mxu1 %v6137_v27  ;;  %v5228_v27 = vld [vmem:[%s9323_s2 + $0x8] sm:$0xf] }
  0x5a   : > { %854 = vmatpush.bf16.msrb.mxu1 %v6136_v28  ;;  %v6082_v28 = vld [vmem:[%s9323_s2 + $0x10] sm:$0xf0] }
  0x5b   : > { %v5229_v30 = vor.u32 %v6082_v28, %v5228_v27  ;;  %v5376_v27 = vld [vmem:[%s9323_s2 + $0x138] sm:$0xf]  ;;  %v6120_v28 = vld [vmem:[%s9323_s2 + $0x140] sm:$0xf0] }
  0x5d   : > { %776 = vmatmul.bf16.gmra.mxu0 %v5245_v33  ;;  %855 = vmatmul.bf16.vlgmr.msrb.gmra.mxu1 %v5225_v34 }
  0x5e   : > { %2718 = vmatpush.bf16.msra.mxu1 %v6177_v5  ;;  %v5402_v5 = vld [vmem:[%s9323_s2 + $0x174] sm:$0xf0] }
  0x6d   : > { %781 = vmatmul.bf16.gmra.mxu0 %v5257_v39  ;;  %860 = vmatmul.bf16.gmra.mxu1 %v5237_v40  ;;  %v5361_v39 = vor.u32 %v6115_v38, %v5360_v37  ;;  %v6107_v40 = vld [vmem:[%s9323_s2 + $0xdc] sm:$0xf]  ;;  %v6094_v37 = vld [vmem:[%s9323_s2 + $0x70] sm:$0xf0]  ;;  %v6116_v38 = vld [vmem:[%s9323_s2 + $0x124] sm:$0xf] }
  0x6e   : > { %v5333_v44 = vor.u32 %v6107_v40, %v5330_v41 }
  0x6f   : > { %5493 = vmatmul.msk.bf16.gmra.mxu2 %vm709_vm0, %v5361_v39  ;;  %v5366_v39 = vld [vmem:[%s9323_s2 + $0x12c] sm:$0xf0] }
  0x70   : > { %v5369_v41 = vor.u32 %v6116_v38, %v5366_v39 }
  0x7d   : > { %786 = vmatmul.bf16.gmra.mxu0 %v5269_v46  ;;  %865 = vmatmul.bf16.gmra.mxu1 %v5249_v47 }
  0x8d   : > { %791 = vmatmul.bf16.gmra.mxu0 %v5281_v52  ;;  %870 = vmatmul.bf16.gmra.mxu1 %v5261_v53  ;;  %v6110_v53 = vld [vmem:[%s9323_s2 + $0xf4] sm:$0xf] }
  0x8e   : > { %v5345_v57 = vor.u32 %v6110_v53, %v5342_v54  ;;  %v6150_v53 = vld [vmem:[#allocation3 + $0x1a0] sm:$0xff] }
  0x9d   : > { %796 = vmatmul.bf16.gmra.mxu0 %v5293_v58  ;;  %875 = vmatmul.bf16.gmra.mxu1 %v5273_v59  ;;  %v5253_v58 = vor.u32 %v6088_v56, %v5252_v55  ;;  %v5396_v55 = vld [vmem:[%s9323_s2 + $0x158] sm:$0xf]  ;;  %v6124_v56 = vld [vmem:[%s9323_s2 + $0x160] sm:$0xf0] }
  0xad   : > { %801 = vmatmul.bf16.gmra.mxu0 %v5305_v0  ;;  %880 = vmatmul.bf16.gmra.mxu1 %v5285_v1 }
  0xba   : > { %v767_v8 = vpop.f32.mrf.mxu0  ;;  %v6772_v9 = vpop.f32.mrf.mxu1 }
  0xbd   : > { %806 = vmatmul.bf16.gmra.mxu0 %v5317_v6  ;;  %885 = vmatmul.bf16.gmra.mxu1 %v5297_v7  ;;  %v6118_v6 = vld [vmem:[%s9323_s2 + $0x130] sm:$0xf0]  ;;  %v6159_v7 = vld [vmem:[#allocation3 + $0x1e8] sm:$0xff] }
  0xbe   : > { %2542 = vmatpush.bf16.msrb.mxu2 %v6159_v7  ;;  %v6156_v7 = vld [vmem:[#allocation3 + $0x1d0] sm:$0xff] }
  0xc2   : > { %v769_v10 = vpop.f32.mrf.mxu0  ;;  %v6774_v11 = vpop.f32.mrf.mxu1  ;;  %2543 = vmatpush.bf16.msrb.mxu2 %v6158_v26  ;;  %v6174_v26 = vld [vmem:[#allocation3 + $0x260] sm:$0xff] }
  0xca   : > { %v772_v18 = vpop.f32.mrf.mxu0  ;;  %v6788_v19 = vpop.f32.mrf.mxu1 }
  0xcd   : > { %811 = vmatmul.bf16.gmra.mxu0 %v5329_v16  ;;  %890 = vmatmul.bf16.gmra.mxu1 %v5309_v17  ;;  %v5265_v16 = vor.u32 %v6091_v14, %v5264_v13  ;;  %v6175_v14 = vld [vmem:[#allocation3 + $0x268] sm:$0xff] }
  0xd2   : > { %v774_v20 = vpop.f32.mrf.mxu0  ;;  %v6790_v21 = vpop.f32.mrf.mxu1 }
  0xda   : > { %v777_v31 = vpop.f32.mrf.mxu0  ;;  %v856_v32 = vpop.f32.mrf.mxu1 }
  0xdb   : > { %v6811_v33 = vadd.f32 %v856_v32, %v767_v8  ;;  %v6113_v8 = vld [vmem:[%s9323_s2 + $0x10c] sm:$0xf] }
  0xdc   : > { %v5357_v15 = vor.u32 %v6113_v8, %v5354_v12  ;;  %v6121_v32 = vld [vmem:[%s9323_s2 + $0x148] sm:$0xf0]  ;;  %v6149_v8 = vld [vmem:[#allocation3 + $0x198] sm:$0xff] }
  0xdd   : > { %895 = vmatmul.bf16.gmra.mxu1 %v5321_v29  ;;  %5482 = vmatmul.msk.bf16.vlgmr.msrb.gmra.mxu0 %vm709_vm0, %v5229_v30  ;;  %v5377_v29 = vor.u32 %v6120_v28, %v5376_v27  ;;  %v6152_v30 = vld [vmem:[#allocation3 + $0x1b0] sm:$0xff]  ;;  %v5300_v27 = vld [vmem:[%s9323_s2 + $0x98] sm:$0xf] }
  0xde   : > { %2452 = vmatpush.bf16.msrb.mxu3 %v6152_v30  ;;  %v6100_v30 = vld [vmem:[%s9323_s2 + $0xa0] sm:$0xf0] }
  0xdf   : > { %831 = vmatmul.bf16.gmra.mxu3 %v5377_v29  ;;  %v6155_v29 = vld [vmem:[#allocation3 + $0x1c8] sm:$0xff] }
  0xe2   : > { %v779_v34 = vpop.f32.mrf.mxu0  ;;  %v858_v35 = vpop.f32.mrf.mxu1 }
  0xe3   : > { %v6814_v36 = vadd.f32 %v858_v35, %v769_v10  ;;  %v5373_v10 = vor.u32 %v6118_v6, %v5372_v4 }
  0xe5   : > { %5494 = vmatmul.msk.bf16.gmra.mxu2 %vm709_vm0, %v5373_v10  ;;  %v6176_v10 = vld [vmem:[#allocation3 + $0x270] sm:$0xff] }
  0xe6   : > { %2719 = vmatpush.bf16.msra.mxu1 %v6176_v10 }
  0xea   : > { %v782_v46 = vpop.f32.mrf.mxu0  ;;  %v861_v47 = vpop.f32.mrf.mxu1  ;;  %2720 = vmatpush.bf16.msra.mxu1 %v6175_v14  ;;  %v6166_v14 = vld [vmem:[#allocation3 + $0x220] sm:$0xff] }
  0xeb   : > { %v6835_v48 = vadd.f32 %v861_v47, %v772_v18 }
  0xed   : > { %900 = vmatmul.bf16.gmra.mxu1 %v5333_v44  ;;  %5483 = vmatmul.msk.bf16.gmra.mxu0 %vm709_vm0, %v5241_v45  ;;  %v6151_v45 = vld [vmem:[#allocation3 + $0x1a8] sm:$0xff] }
  0xee   : > { %2453 = vmatpush.bf16.msrb.mxu3 %v6151_v45  ;;  %2721 = vmatpush.bf16.msra.mxu1 %v6174_v26 }
  0xf2   : > { %v784_v50 = vpop.f32.mrf.mxu0  ;;  %v863_v51 = vpop.f32.mrf.mxu1  ;;  %2454 = vmatpush.bf16.msrb.mxu3 %v6150_v53  ;;  %v6147_v53 = vld [vmem:[#allocation3 + $0x188] sm:$0xff] }
  0xf3   : > { %v6838_v52 = vadd.f32 %v863_v51, %v774_v20  ;;  %v6123_v51 = vld [vmem:[%s9323_s2 + $0x158] sm:$0xf0] }
  0xf6   : > { %2455 = vmatpush.bf16.msrb.mxu3 %v6149_v8 }
  0xfa   : > { %v787_v59 = vpop.f32.mrf.mxu0  ;;  %v866_v60 = vpop.f32.mrf.mxu1 }
  0xfb   : > { %v6852_v61 = vadd.f32 %v866_v60, %v777_v31  ;;  %v5384_v31 = vld [vmem:[%s9323_s2 + $0x140] sm:$0xf]  ;;  %v6119_v60 = vld [vmem:[%s9323_s2 + $0x13c] sm:$0xf] }
  0xfc   : > { %v5385_v35 = vor.u32 %v6121_v32, %v5384_v31  ;;  %v5381_v2 = vor.u32 %v6119_v60, %v5378_v62  ;;  %v6122_v31 = vld [vmem:[%s9323_s2 + $0x154] sm:$0xf]  ;;  %v5390_v32 = vld [vmem:[%s9323_s2 + $0x15c] sm:$0xf0]  ;;  %v6167_v60 = vld [vmem:[#allocation3 + $0x228] sm:$0xff] }
  0xfd   : > { %905 = vmatmul.bf16.gmra.mxu1 %v5345_v57  ;;  %5484 = vmatmul.msk.bf16.gmra.mxu0 %vm709_vm0, %v5253_v58  ;;  %v5288_v57 = vld [vmem:[%s9323_s2 + $0x80] sm:$0xf]  ;;  %v5397_v58 = vor.u32 %v6124_v56, %v5396_v55  ;;  %v5312_v62 = vld [vmem:[%s9323_s2 + $0xb0] sm:$0xf] }
  0xfe   : > { %5495 = vmatmul.msk.bf16.gmra.mxu2 %vm709_vm0, %v5385_v35  ;;  %v5301_v35 = vor.u32 %v6100_v30, %v5300_v27  ;;  %v6165_v27 = vld [vmem:[#allocation3 + $0x218] sm:$0xff]  ;;  %v6164_v30 = vld [vmem:[#allocation3 + $0x210] sm:$0xff] }
 0x102   : > { %v6855_v63 = vpop.f32.mrf.mxu0  ;;  %v868_v0 = vpop.f32.mrf.mxu1 }
 0x103   : > { %v6857_v1 = vadd.f32 %v868_v0, %v779_v34  ;;  %v5276_v34 = vld [vmem:[%s9323_s2 + $0x68] sm:$0xf] }
 0x104   : > { %v5277_v40 = vor.u32 %v6094_v37, %v5276_v34  ;;  %v1089_v34 = vlaneseq  ;;  %v5393_v37 = vor.u32 %v6122_v31, %v5390_v32 }
 0x106   : > { %v6996_v45 = vshrl.u32 %v1089_v34, 7  ;;  %v6163_v34 = vld [vmem:[#allocation3 + $0x208] sm:$0xff] }
 0x108   : > { %vm1162_vm1 = vcmp.gt.s32.totalorder %v6996_v45, 0  ;;  %vm1425_vm2 = vcmp.lt.s32.totalorder %v6996_v45, 7  ;;  %vm1296_vm4 = vcmp.lt.s32.totalorder %v6996_v45, 1 }
 0x10a   : > { %v792_v17 = vpop.f32.mrf.mxu0  ;;  %v871_v18 = vpop.f32.mrf.mxu1 }
 0x10b   : > { %v6884_v20 = vadd.f32 %v871_v18, %v782_v46  ;;  %v6157_v46 = vld [vmem:[#allocation3 + $0x1d8] sm:$0xff] }
 0x10c   : > { %2544 = vmatpush.bf16.msrb.mxu2 %v6157_v46  ;;  %v6169_v46 = vld [vmem:[#allocation3 + $0x238] sm:$0xff] }
 0x10d   : > { %910 = vmatmul.bf16.gmra.mxu1 %v5357_v15  ;;  %5485 = vmatmul.msk.bf16.gmra.mxu0 %vm709_vm0, %v5265_v16  ;;  %v5400_v15 = vld [vmem:[%s9323_s2 + $0x168] sm:$0xf]  ;;  %v6126_v16 = vld [vmem:[%s9323_s2 + $0x170] sm:$0xf0] }
 0x10e   : > { %5496 = vmatmul.msk.bf16.gmra.mxu2 %vm709_vm0, %v5397_v58  ;;  %v5401_v18 = vor.u32 %v6126_v16, %v5400_v15  ;;  %2629 = vmatpush.bf16.msra.mxu0 %v6169_v46 }
 0x110   : > { %2545 = vmatpush.bf16.msrb.mxu2 %v6156_v7  ;;  %v6170_v7 = vld [vmem:[#allocation3 + $0x240] sm:$0xff] }
 0x112   : > { %v6887_v23 = vpop.f32.mrf.mxu0  ;;  %v873_v24 = vpop.f32.mrf.mxu1 }
 0x113   : > { %v6889_v25 = vadd.f32 %v873_v24, %v784_v50  ;;  %v5388_v50 = vld [vmem:[%s9323_s2 + $0x150] sm:$0xf]  ;;  %v6127_v24 = vld [vmem:[%s9323_s2 + $0x178] sm:$0xf0] }
 0x114   : > { %v5389_v54 = vor.u32 %v6123_v51, %v5388_v50  ;;  %v5409_v28 = vor.u32 %v6127_v24, %v5408_v22  ;;  %2546 = vmatpush.bf16.msrb.mxu2 %v6155_v29  ;;  %v6172_v51 = vld [vmem:[#allocation3 + $0x250] sm:$0xff]  ;;  %v6154_v22 = vld [vmem:[#allocation3 + $0x1c0] sm:$0xff]  ;;  %v6193_v29 = vld [vmem:[#allocation3 + $0x2f8] sm:$0xff] }
 0x115   : > { %v6146_v24 = vld [vmem:[#allocation3 + $0x180] sm:$0xff] }
 0x116   : > { %836 = vmatmul.bf16.gmra.mxu3 %v5389_v54  ;;  %v6168_v54 = vld [vmem:[#allocation3 + $0x230] sm:$0xff] }
 0x117   : > { %2630 = vmatpush.bf16.msra.mxu0 %v6168_v54 }
 0x118   : > { %2547 = vmatpush.bf16.msrb.mxu2 %v6154_v22 }
 0x11a   : > { %v6916_v42 = vpop.f32.mrf.mxu0  ;;  %v876_v43 = vpop.f32.mrf.mxu1 }
 0x11b   : > { %v6918_v44 = vadd.f32 %v876_v43, %v787_v59  ;;  %v6097_v59 = vld [vmem:[%s9323_s2 + $0x88] sm:$0xf0]  ;;  %v6292_v43 = vld [vmem:[%s6988_s12] sm:$0xff]   ;;  %2631 = vmatpush.bf16.msra.mxu0 %v6167_v60 }
 0x11c   : > { %v5289_v0 = vor.u32 %v6097_v59, %v5288_v57  ;;  %v6999_v50 = vunpack.c.l.bf16 %v6292_v43  ;;  %v6171_v57 = vld [vmem:[#allocation3 + $0x248] sm:$0xff]  ;;  %v7009_v59 = vunpack.c.h.bf16 %v6292_v43  ;;  %2896 = vmatpush.bf16.msra.mxu2 %v6193_v29 }
 0x11d   : > { %5486 = vmatmul.msk.bf16.gmra.mxu0 %vm709_vm0, %v5277_v40  ;;  %915 = vmatmul.bf16.gmra.mxu1 %v5369_v41  ;;  %v6173_v40 = vld [vmem:[#allocation3 + $0x258] sm:$0xff] }
 0x11e   : > { %5497 = vmatmul.msk.bf16.gmra.mxu2 %vm709_vm0, %v5409_v28  ;;  %2722 = vmatpush.bf16.msra.mxu1 %v6173_v40  ;;  %v6185_v28 = vld [vmem:[#allocation3 + $0x2b8] sm:$0xff]  ;;  %v6162_v40 = vld [vmem:[#allocation3 + $0x200] sm:$0xff]  ;;  %v1232_v54 = vrot.slane %v6999_v50, 7 }
 0x11f   : > { %2632 = vmatpush.bf16.msra.mxu0 %v6166_v14 }
 0x122   : > { %v6921_v47 = vpop.f32.mrf.mxu0  ;;  %v6923_v49 = vpop.f32.mrf.mxu1  ;;  %2723 = vmatpush.bf16.msra.mxu1 %v6172_v51 }
 0x123   : > { %2633 = vmatpush.bf16.msra.mxu0 %v6165_v27 }
 0x126   : > { %841 = vmatmul.bf16.gmra.mxu3 %v5401_v18  ;;  %2724 = vmatpush.bf16.msra.mxu1 %v6171_v57 }
 0x127   : > { %2634 = vmatpush.bf16.msra.mxu0 %v6164_v30 }
 0x12a   : > { %v6950_v3 = vpop.f32.mrf.mxu0  ;;  %v881_v4 = vpop.f32.mrf.mxu1  ;;  %2725 = vmatpush.bf16.msra.mxu1 %v6170_v7 }
 0x12b   : > { %v6952_v6 = vadd.f32 %v881_v4, %v792_v17  ;;  %v6148_v17 = vld [vmem:[#allocation3 + $0x190] sm:$0xff]  ;;  %v6125_v4 = vld [vmem:[%s9323_s2 + $0x16c] sm:$0xf]  ;;  %2635 = vmatpush.bf16.msra.mxu0 %v6163_v34 }
 0x12c   : > { %2456 = vmatpush.bf16.msrb.mxu3 %v6148_v17  ;;  %v5405_v16 = vor.u32 %v6125_v4, %v5402_v5 }
 0x12d   : > { %5487 = vmatmul.msk.bf16.gmra.mxu0 %vm709_vm0, %v5289_v0  ;;  %920 = vmatmul.bf16.gmra.mxu1 %v5381_v2  ;;  %v6103_v0 = vld [vmem:[%s9323_s2 + $0xb8] sm:$0xf0]  ;;  %v1393_v2 = vrot.slane %v7009_v59, 1 }
 0x12e   : > { %v5313_v15 = vor.u32 %v6103_v0, %v5312_v62 }
 0x12f   : > { %2636 = vmatpush.bf16.msra.mxu0 %v6162_v40 }
 0x130   : > { %2457 = vmatpush.bf16.msrb.mxu3 %v6147_v53 }
 0x132   : > { %v6955_v12 = vpop.f32.mrf.mxu0  ;;  %v6957_v13 = vpop.f32.mrf.mxu1 }
 0x134   : > { %2458 = vmatpush.bf16.msrb.mxu3 %v6146_v24 }
 0x138   : > { %2807 = vmatpush.bf16.msra.mxu3 %v6185_v28 }
 0x13a   : > { %v6990_v38 = vpop.f32.mrf.mxu0  ;;  %v886_v39 = vpop.f32.mrf.mxu1 }
 0x13b   : > { %v6993_v41 = vadd.f32 %v886_v39, %v6916_v42  ;;  %v1168_v42 = vsel %vm1162_vm1, %v6999_v50, 0.0 }
 0x13c   : > { %v1361_v58 = vrot.slane %v1168_v42, 1 }
 0x13d   : > { %5488 = vmatmul.msk.bf16.gmra.mxu0 %vm709_vm0, %v5301_v35  ;;  %925 = vmatmul.bf16.gmra.mxu1 %v5393_v37  ;;  %v6106_v35 = vld [vmem:[%s9323_s2 + $0xd0] sm:$0xf0]  ;;  %v7050_v37 = vadd.s32 8, %v6996_v45 }
 0x13e   : > { %v7027_v8 = vsel %vm1425_vm2, %v1361_v58, %v1393_v2  ;;  %v7031_v10 = vsel %vm1425_vm2, %v1393_v2, %v1361_v58  ;;  %v5336_v58 = vld [vmem:[%s9323_s2 + $0xe0] sm:$0xf] }
 0x13f   : > { %vm1093_vm3 = vcmp.lt.s32.totalorder %v7050_v37, 15 }
 0x140   : > { %v1100_v53 = vsel %vm1093_vm3, %v7009_v59, 0.0 }
 0x141   : > { %v1264_v57 = vrot.slane %v1100_v53, 7 }
 0x142   : > { %v7005_v55 = vpop.f32.mrf.mxu0  ;;  %v7007_v56 = vpop.f32.mrf.mxu1 }
 0x143   : > { %v1297_v5 = vsel %vm1296_vm4, %v1232_v54, %v1264_v57  ;;  %v1329_v7 = vsel %vm1296_vm4, %v1264_v57, %v1232_v54 }
 0x14a   : > { %v7033_v17 = vpop.f32.mrf.mxu0  ;;  %v891_v18 = vpop.f32.mrf.mxu1 }
 0x14b   : > { %v7036_v26 = vadd.f32 %v891_v18, %v6950_v3  ;;  %v5324_v3 = vld [vmem:[%s9323_s2 + $0xc8] sm:$0xf] }
 0x14c   : > { %v5325_v39 = vor.u32 %v6106_v35, %v5324_v3 }
 0x14d   : > { %5489 = vmatmul.msk.bf16.gmra.mxu0 %vm709_vm0, %v5313_v15  ;;  %930 = vmatmul.bf16.gmra.mxu1 %v5405_v16 }
 0x152   : > { %v7039_v31 = vpop.f32.mrf.mxu0  ;;  %v7041_v32 = vpop.f32.mrf.mxu1 }
 0x15a   : > { %v896_v43 = vpop.f32.mrf.mxu1  ;;  %v945_v46 = vpop.f32.mrf.mxu0 }
 0x15b   : > { %v7054_v51 = vadd.f32 %v896_v43, %v6990_v38  ;;  %v946_v42 = vadd.f32 %v945_v46, %v6811_v33  ;;  %v6109_v38 = vld [vmem:[%s9323_s2 + $0xe8] sm:$0xf0] }
 0x15c   : > { %v5337_v4 = vor.u32 %v6109_v38, %v5336_v58  ;;  %v6355_v43 = vld [vmem:[%s6988_s12 + $0x8] sm:$0xff]   ;;  %v7101_v38 = vpop.f32.mrf.mxu2 }
 0x15d   : > { %5490 = vmatmul.msk.bf16.gmra.mxu0 %vm709_vm0, %v5325_v39  ;;  %v1169_v60 = vsel %vm1162_vm1, %v946_v42, 0.0  ;;  %v1491_v62 = vpack.c.bf16 %v946_v42, %v6999_v50  ;;  %v1233_v18 = vrot.slane %v946_v42, 7  ;;  %v6298_v57 = vunpack.c.h.bf16 %v6355_v43 }
 0x15e   : > { %v1362_v14 = vrot.slane %v1169_v60, 1 }
 0x15f   : > { %v1781_v22 = vunpack.c.l.b16 %v1491_v62  ;;  %v1782_v24 = vunpack.c.h.b16 %v1491_v62 }
 0x162   : > { %v7072_v0 = vpop.f32.mrf.mxu1  ;;  %v947_v33 = vpop.f32.mrf.mxu0 }
 0x163   : > { %v948_v2 = vadd.f32 %v947_v33, %v6814_v36 }
 0x165   : > { %v1101_v15 = vsel %vm1093_vm3, %v948_v2, 0.0  ;;  %v1394_v16 = vrot.slane %v948_v2, 1  ;;  %v1494_v50 = vpack.c.bf16 %v948_v2, %v7009_v59 }
 0x166   : > { %v1265_v27 = vrot.slane %v1101_v15, 7 }
 0x167   : > { %v1427_v36 = vsel %vm1425_vm2, %v1362_v14, %v1394_v16  ;;  %v1459_v28 = vsel %vm1425_vm2, %v1394_v16, %v1362_v14  ;;  %v1787_v29 = vunpack.c.l.b16 %v1494_v50  ;;  %v1788_v30 = vunpack.c.h.b16 %v1494_v50 }
 0x168   : > { %v1492_v34 = vpack.c.bf16 %v1427_v36, %v7027_v8  ;;  %v1495_v3 = vpack.c.bf16 %v1459_v28, %v7031_v10  ;;  %v1298_v35 = vsel %vm1296_vm4, %v1233_v18, %v1265_v27  ;;  %v1330_v59 = vsel %vm1296_vm4, %v1265_v27, %v1233_v18 }
 0x169   : > { %v7092_v39 = vpack.c.b16 %v1787_v29, %v1781_v22  ;;  %v7094_v40 = vpack.c.b16 %v1788_v30, %v1782_v24  ;;  %v1490_v46 = vpack.c.bf16 %v1330_v59, %v1329_v7  ;;  %v1493_v53 = vpack.c.bf16 %v1298_v35, %v1297_v5  ;;  %v6184_v22 = vld [vmem:[#allocation3 + $0x2b0] sm:$0xff] }
 0x16a   : > { %v901_v42 = vpop.f32.mrf.mxu1  ;;  %v950_v54 = vpop.f32.mrf.mxu0  ;;  %v1783_v60 = vunpack.c.l.b16 %v1492_v34  ;;  %v1789_v62 = vunpack.c.l.b16 %v1495_v3  ;;  %v1784_v14 = vunpack.c.h.b16 %v1492_v34  ;;  %v1790_v15 = vunpack.c.h.b16 %v1495_v3  ;;  %v6192_v24 = vld [vmem:[#allocation3 + $0x2f0] sm:$0xff]  ;;  %2808 = vmatpush.bf16.msra.mxu3 %v6184_v22 }
 0x16b   : > { %9508 = vst [vmem:[#allocation9_spill] sm:$0xff] %v7092_v39  ;;  %v7098_v8 = vadd.f32 %v901_v42, %v7033_v17  ;;  %2726 = vmatmul.bf16.vlgmr.msra.gmra.mxu1 %v7094_v40  ;;  %v1779_v10 = vunpack.c.l.b16 %v1490_v46  ;;  %v1785_v58 = vunpack.c.l.b16 %v1493_v53  ;;  %v1780_v33 = vunpack.c.h.b16 %v1490_v46  ;;  %2897 = vmatpush.bf16.msra.mxu2 %v6192_v24 }
 0x16c   : > { %9509 = vst [vmem:[#allocation10_spill] sm:$0xff] %v7094_v40  ;;  %v1786_v2 = vunpack.c.h.b16 %v1493_v53  ;;  %v6297_v7 = vunpack.c.l.bf16 %v6355_v43  ;;  %v1104_v17 = vsel %vm1093_vm3, %v6298_v57, 0.0  ;;  %v951_v50 = vadd.f32 %v950_v54, %v6835_v48  ;;  %v6357_v40 = vld [vmem:[%s6988_s12 + $0x18] sm:$0xff]  }
 0x16d   : > { %5491 = vmatmul.msk.bf16.gmra.mxu0 %vm709_vm0, %v5337_v4  ;;  %v7104_v5 = vpack.c.b16 %v1785_v58, %v1779_v10  ;;  %v7113_v27 = vpack.c.b16 %v1789_v62, %v1783_v60  ;;  %v1266_v4 = vrot.slane %v1104_v17, 7  ;;  %v7115_v36 = vpack.c.b16 %v1790_v15, %v1784_v14  ;;  %v7132_v58 = vpop.f32.mrf.mxu2 }
 0x16e   : > { %v7106_v16 = vpack.c.b16 %v1786_v2, %v1780_v33  ;;  %v1234_v18 = vrot.slane %v6297_v7, 7  ;;  %v1172_v28 = vsel %vm1162_vm1, %v6297_v7, 0.0  ;;  %v1395_v29 = vrot.slane %v6298_v57, 1 }
 0x16f   : > { %9510 = vst [vmem:[#allocation11_spill] sm:$0xff] %v7104_v5  ;;  %2459 = vmatmul.bf16.vlgmr.msrb.gmra.mxu3 %v7104_v5  ;;  %v1363_v48 = vrot.slane %v1172_v28, 1  ;;  %v1173_v3 = vsel %vm1162_vm1, %v951_v50, 0.0  ;;  %v1497_v35 = vpack.c.bf16 %v951_v50, %v6297_v7  ;;  %v1235_v60 = vrot.slane %v951_v50, 7 }
 0x170   : > { %9511 = vst [vmem:[#allocation12_spill] sm:$0xff] %v7106_v16  ;;  %2548 = vmatmul.bf16.vlgmr.msrb.gmra.mxu2 %v7106_v16  ;;  %v1299_v10 = vsel %vm1296_vm4, %v1234_v18, %v1266_v4  ;;  %v1364_v62 = vrot.slane %v1173_v3, 1 }
 0x171   : > { %9512 = vst [vmem:[#allocation13_spill] sm:$0xff] %v7113_v27  ;;  %v1428_v43 = vsel %vm1425_vm2, %v1363_v48, %v1395_v29  ;;  %v1460_v46 = vsel %vm1425_vm2, %v1395_v29, %v1363_v48  ;;  %v1794_v2 = vunpack.c.h.b16 %v1497_v35  ;;  %v1793_v15 = vunpack.c.l.b16 %v1497_v35  ;;  %v6356_v48 = vld [vmem:[%s6988_s12 + $0x10] sm:$0xff]  }
 0x172   : > { %9513 = vst [vmem:[#allocation14_spill] sm:$0xff] %v7115_v36  ;;  %v7119_v30 = vpop.f32.mrf.mxu1  ;;  %v952_v34 = vpop.f32.mrf.mxu0 }
 0x173   : > { %v953_v59 = vadd.f32 %v952_v34, %v6838_v52  ;;  %v1331_v52 = vsel %vm1296_vm4, %v1266_v4, %v1234_v18 }
 0x175   : > { %v1105_v53 = vsel %vm1093_vm3, %v953_v59, 0.0  ;;  %v1396_v42 = vrot.slane %v953_v59, 1  ;;  %v1500_v54 = vpack.c.bf16 %v953_v59, %v6298_v57 }
 0x176   : > { %v1267_v33 = vrot.slane %v1105_v53, 7 }
 0x177   : > { %v1800_v14 = vunpack.c.h.b16 %v1500_v54  ;;  %v1799_v7 = vunpack.c.l.b16 %v1500_v54  ;;  %v1429_v22 = vsel %vm1425_vm2, %v1364_v62, %v1396_v42  ;;  %v1461_v50 = vsel %vm1425_vm2, %v1396_v42, %v1364_v62 }
 0x178   : > { %v1300_v17 = vsel %vm1296_vm4, %v1235_v60, %v1267_v33  ;;  %v1332_v57 = vsel %vm1296_vm4, %v1267_v33, %v1235_v60  ;;  %v1498_v3 = vpack.c.bf16 %v1429_v22, %v1428_v43  ;;  %v1501_v35 = vpack.c.bf16 %v1461_v50, %v1460_v46 }
 0x179   : > { %v7144_v24 = vpack.c.b16 %v1800_v14, %v1794_v2  ;;  %v1496_v28 = vpack.c.bf16 %v1332_v57, %v1331_v52  ;;  %v1499_v18 = vpack.c.bf16 %v1300_v17, %v1299_v10  ;;  %v7146_v4 = vpack.c.b16 %v1799_v7, %v1793_v15  ;;  %v1000_v14 = vpop.f32.mrf.mxu2 }
 0x17a   : > { %v906_v29 = vpop.f32.mrf.mxu1  ;;  %v955_v34 = vpop.f32.mrf.mxu0  ;;  %v6302_v60 = vunpack.c.h.bf16 %v6356_v48  ;;  %v1795_v62 = vunpack.c.l.b16 %v1498_v3  ;;  %v1801_v43 = vunpack.c.l.b16 %v1501_v35  ;;  %v6301_v46 = vunpack.c.l.bf16 %v6356_v48 }
 0x17b   : > { %9514 = vst [vmem:[#allocation15_spill] sm:$0xff] %v7144_v24  ;;  %v907_v59 = vadd.f32 %v906_v29, %v6772_v9  ;;  %2731 = vmatmul.bf16.gmra.mxu1 %v7144_v24  ;;  %v1791_v53 = vunpack.c.l.b16 %v1496_v28  ;;  %v1797_v54 = vunpack.c.l.b16 %v1499_v18  ;;  %v1792_v33 = vunpack.c.h.b16 %v1496_v28 }
 0x17c   : > { %9515 = vst [vmem:[#allocation16_spill] sm:$0xff] %v7146_v4  ;;  %v1798_v42 = vunpack.c.h.b16 %v1499_v18  ;;  %v956_v9 = vadd.f32 %v955_v34, %v6852_v61  ;;  %v1108_v15 = vsel %vm1093_vm3, %v6302_v60, 0.0  ;;  %v1796_v7 = vunpack.c.h.b16 %v1498_v3 }
 0x17d   : > { %v7152_v52 = vadd.f32 %v7101_v38, %v907_v59  ;;  %2637 = vmatmul.bf16.vlgmr.msra.gmra.mxu0 %v7092_v39  ;;  %v7155_v10 = vpack.c.b16 %v1797_v54, %v1791_v53  ;;  %v7164_v38 = vpack.c.b16 %v1801_v43, %v1795_v62  ;;  %v1802_v17 = vunpack.c.h.b16 %v1501_v35 }
 0x17e   : > { %v7157_v2 = vpack.c.b16 %v1798_v42, %v1792_v33  ;;  %v1176_v57 = vsel %vm1162_vm1, %v6301_v46, 0.0  ;;  %v1236_v61 = vrot.slane %v6301_v46, 7  ;;  %v1268_v28 = vrot.slane %v1108_v15, 7 }
 0x17f   : > { %9516 = vst [vmem:[#allocation17_spill] sm:$0xff] %v7155_v10  ;;  %2464 = vmatmul.bf16.gmra.mxu3 %v7155_v10  ;;  %v1365_v18 = vrot.slane %v1176_v57, 1  ;;  %v1397_v29 = vrot.slane %v6302_v60, 1  ;;  %v1503_v34 = vpack.c.bf16 %v956_v9, %v6301_v46  ;;  %v7171_v59 = vpack.c.b16 %v1802_v17, %v1796_v7 }
 0x180   : > { %9517 = vst [vmem:[#allocation18_spill] sm:$0xff] %v7157_v2  ;;  %2553 = vmatmul.bf16.gmra.mxu2 %v7157_v2  ;;  %v1237_v33 = vrot.slane %v956_v9, 7  ;;  %v1333_v62 = vsel %vm1296_vm4, %v1268_v28, %v1236_v61 }
 0x181   : > { %9518 = vst [vmem:[#allocation19_spill] sm:$0xff] %v7164_v38  ;;  %v7175_v53 = vsel %vm1425_vm2, %v1365_v18, %v1397_v29  ;;  %v7179_v3 = vsel %vm1425_vm2, %v1397_v29, %v1365_v18  ;;  %v1806_v43 = vunpack.c.h.b16 %v1503_v34  ;;  %v1805_v17 = vunpack.c.l.b16 %v1503_v34  ;;  %v7193_v29 = vpop.f32.mrf.mxu2  ;;  %v6358_v38 = vld [vmem:[%s6988_s12 + $0x20] sm:$0xff]  }
 0x182   : > { %v7168_v22 = vpop.f32.mrf.mxu1  ;;  %v957_v50 = vpop.f32.mrf.mxu0  ;;  %9519 = vst [vmem:[#allocation20_spill] sm:$0xff] %v7171_v59  ;;  %v7255_v27 = vunpack.c.h.bf16 %v6358_v38 }
 0x183   : > { %v958_v48 = vadd.f32 %v957_v50, %v6857_v1  ;;  %v1301_v1 = vsel %vm1296_vm4, %v1236_v61, %v1268_v28 }
 0x185   : > { %v1109_v35 = vsel %vm1093_vm3, %v958_v48, 0.0  ;;  %v1506_v54 = vpack.c.bf16 %v958_v48, %v6302_v60 }
 0x186   : > { %v1269_v42 = vrot.slane %v1109_v35, 7 }
 0x187   : > { %v1812_v46 = vunpack.c.h.b16 %v1506_v54  ;;  %v1811_v57 = vunpack.c.l.b16 %v1506_v54 }
 0x188   : > { %v1302_v15 = vsel %vm1296_vm4, %v1237_v33, %v1269_v42  ;;  %v1334_v7 = vsel %vm1296_vm4, %v1269_v42, %v1237_v33  ;;  %v7200_v33 = vunpack.c.h.bf16 %v6357_v40  ;;  %v1177_v42 = vsel %vm1162_vm1, %v956_v9, 0.0 }
 0x189   : > { %v7191_v60 = vpack.c.b16 %v1812_v46, %v1806_v43  ;;  %v1502_v50 = vpack.c.bf16 %v1334_v7, %v1333_v62  ;;  %v1505_v18 = vpack.c.bf16 %v1302_v15, %v1301_v1  ;;  %v7196_v61 = vpack.c.b16 %v1811_v57, %v1805_v17  ;;  %v827_v17 = vpop.f32.mrf.mxu3 }
 0x18a   : > { %v911_v35 = vpop.f32.mrf.mxu1  ;;  %v960_v24 = vpop.f32.mrf.mxu0  ;;  %v1398_v62 = vrot.slane %v958_v48, 1  ;;  %v7214_v15 = vunpack.c.l.bf16 %v6357_v40  ;;  %v1112_v7 = vsel %vm1093_vm3, %v7200_v33, 0.0  ;;  %v1366_v9 = vrot.slane %v1177_v42, 1 }
 0x18b   : > { %9520 = vst [vmem:[#allocation21_spill] sm:$0xff] %v7191_v60  ;;  %v912_v28 = vadd.f32 %v911_v35, %v6788_v19  ;;  %2736 = vmatmul.bf16.gmra.mxu1 %v7191_v60  ;;  %v1803_v39 = vunpack.c.l.b16 %v1502_v50  ;;  %v1809_v10 = vunpack.c.l.b16 %v1505_v18  ;;  %v1804_v34 = vunpack.c.h.b16 %v1502_v50 }
 0x18c   : > { %9521 = vst [vmem:[#allocation22_spill] sm:$0xff] %v7196_v61  ;;  %v1810_v54 = vunpack.c.h.b16 %v1505_v18  ;;  %v7212_v19 = vadd.f32 %v960_v24, %v6884_v20  ;;  %v1238_v20 = vrot.slane %v7214_v15, 7  ;;  %v1270_v40 = vrot.slane %v1112_v7, 7 }
 0x18d   : > { %v7204_v1 = vadd.f32 %v1000_v14, %v912_v28  ;;  %2642 = vmatmul.bf16.gmra.mxu0 %v7146_v4  ;;  %v7207_v43 = vpack.c.b16 %v1809_v10, %v1803_v39  ;;  %v6183_v14 = vld [vmem:[#allocation3 + $0x2a8] sm:$0xff]  ;;  %v1005_v10 = vpop.f32.mrf.mxu2  ;;  %v1431_v24 = vsel %vm1425_vm2, %v1366_v9, %v1398_v62  ;;  %v1463_v50 = vsel %vm1425_vm2, %v1398_v62, %v1366_v9 }
 0x18e   : > { %v7209_v46 = vpack.c.b16 %v1810_v54, %v1804_v34  ;;  %v6191_v39 = vld [vmem:[#allocation3 + $0x2e8] sm:$0xff]  ;;  %2809 = vmatpush.bf16.msra.mxu3 %v6183_v14  ;;  %v1509_v18 = vpack.c.bf16 %v7212_v19, %v7214_v15  ;;  %v1239_v54 = vrot.slane %v7212_v19, 7  ;;  %v1303_v62 = vsel %vm1296_vm4, %v1238_v20, %v1270_v40 }
 0x18f   : > { %9522 = vst [vmem:[#allocation23_spill] sm:$0xff] %v7204_v1  ;;  %2469 = vmatmul.bf16.gmra.mxu3 %v7207_v43  ;;  %2898 = vmatpush.bf16.msra.mxu2 %v6191_v39  ;;  %v1335_v7 = vsel %vm1296_vm4, %v1270_v40, %v1238_v20 }
 0x190   : > { %9523 = vst [vmem:[#allocation24_spill] sm:$0xff] %v7207_v43  ;;  %2558 = vmatmul.bf16.gmra.mxu2 %v7209_v46  ;;  %v1818_v9 = vunpack.c.h.b16 %v1509_v18 }
 0x191   : > { %9524 = vst [vmem:[#allocation25_spill] sm:$0xff] %v7209_v46  ;;  %v7249_v46 = vpop.f32.mrf.mxu3 }
 0x192   : > { %v7221_v48 = vpop.f32.mrf.mxu1  ;;  %v962_v57 = vpop.f32.mrf.mxu0 }
 0x193   : > { %v7231_v35 = vadd.f32 %v962_v57, %v6889_v25  ;;  %v1817_v57 = vunpack.c.l.b16 %v1509_v18 }
 0x195   : > { %v1113_v28 = vsel %vm1093_vm3, %v7231_v35, 0.0  ;;  %v1512_v34 = vpack.c.bf16 %v7231_v35, %v7200_v33  ;;  %v7257_v18 = vpop.f32.mrf.mxu2 }
 0x196   : > { %v1271_v42 = vrot.slane %v1113_v28, 7  ;;  %9527 = vst [vmem:[#allocation28_spill] sm:$0xff] %v7257_v18 }
 0x197   : > { %v1824_v25 = vunpack.c.h.b16 %v1512_v34  ;;  %v1823_v60 = vunpack.c.l.b16 %v1512_v34 }
 0x198   : > { %v1304_v14 = vsel %vm1296_vm4, %v1239_v54, %v1271_v42  ;;  %v1336_v39 = vsel %vm1296_vm4, %v1271_v42, %v1239_v54 }
 0x199   : > { %v7247_v4 = vpack.c.b16 %v1824_v25, %v1818_v9  ;;  %v1508_v43 = vpack.c.bf16 %v1336_v39, %v1335_v7  ;;  %v1511_v28 = vpack.c.bf16 %v1304_v14, %v1303_v62  ;;  %v7252_v20 = vpack.c.b16 %v1823_v60, %v1817_v57  ;;  %v832_v14 = vpop.f32.mrf.mxu3 }
 0x19a   : > { %v965_v59 = vpop.f32.mrf.mxu0  ;;  %v916_v5 = vpop.f32.mrf.mxu1  ;;  %v7269_v9 = vunpack.c.l.bf16 %v6358_v38  ;;  %v7285_v38 = vpack.c.bf16 %v1463_v50, %v7179_v3 }
 0x19b   : > { %9525 = vst [vmem:[#allocation26_spill] sm:$0xff] %v7247_v4  ;;  %2741 = vmatmul.bf16.gmra.mxu1 %v7247_v4  ;;  %v1815_v40 = vunpack.c.l.b16 %v1508_v43  ;;  %v1821_v2 = vunpack.c.l.b16 %v1511_v28  ;;  %v1816_v36 = vunpack.c.h.b16 %v1508_v43  ;;  %v1822_v34 = vunpack.c.h.b16 %v1511_v28 }
 0x19c   : > { %9526 = vst [vmem:[#allocation27_spill] sm:$0xff] %v7252_v20  ;;  %v917_v54 = vadd.f32 %v916_v5, %v827_v17  ;;  %v7267_v60 = vadd.f32 %v965_v59, %v6918_v44  ;;  %v1116_v43 = vsel %vm1093_vm3, %v7255_v27, 0.0  ;;  %v879_v5 = vadd.f32 %v6923_v49, %v6855_v63 }
 0x19d   : > { %2647 = vmatmul.bf16.gmra.mxu0 %v7196_v61  ;;  %v7260_v42 = vpack.c.b16 %v1821_v2, %v1815_v40  ;;  %v7262_v62 = vpack.c.b16 %v1822_v34, %v1816_v36  ;;  %v1240_v2 = vrot.slane %v7269_v9, 7  ;;  %v1272_v17 = vrot.slane %v1116_v43, 7  ;;  %v1010_v39 = vpop.f32.mrf.mxu2  ;;  %v6359_v61 = vld [vmem:[%s6988_s12 + $0x28] sm:$0xff]  }
 0x19e   : > { %v7264_v7 = vadd.f32 %v1005_v10, %v917_v54  ;;  %v7282_v44 = vpack.c.bf16 %v1431_v24, %v7175_v53  ;;  %v1515_v59 = vpack.c.bf16 %v7267_v60, %v7269_v9  ;;  %v1241_v53 = vrot.slane %v7267_v60, 7 }
 0x19f   : > { %9528 = vst [vmem:[#allocation29_spill] sm:$0xff] %v7260_v42  ;;  %2474 = vmatmul.bf16.gmra.mxu3 %v7260_v42  ;;  %v1305_v3 = vsel %vm1296_vm4, %v1240_v2, %v1272_v17  ;;  %v1337_v50 = vsel %vm1296_vm4, %v1272_v17, %v1240_v2  ;;  %v7311_v18 = vunpack.c.h.bf16 %v6359_v61 }
 0x1a0   : > { %9529 = vst [vmem:[#allocation30_spill] sm:$0xff] %v7262_v62  ;;  %2563 = vmatmul.bf16.gmra.mxu2 %v7262_v62  ;;  %v1830_v57 = vunpack.c.h.b16 %v1515_v59  ;;  %v1829_v54 = vunpack.c.l.b16 %v1515_v59 }
 0x1a1   : > { %9530 = vst [vmem:[#allocation31_spill] sm:$0xff] %v7264_v7 }
 0x1a2   : > { %v967_v36 = vpop.f32.mrf.mxu0  ;;  %v7279_v10 = vpop.f32.mrf.mxu1 }
 0x1a3   : > { %v7289_v25 = vadd.f32 %v967_v36, %v879_v5 }
 0x1a5   : > { %v1117_v63 = vsel %vm1093_vm3, %v7289_v25, 0.0  ;;  %v1518_v49 = vpack.c.bf16 %v7289_v25, %v7255_v27 }
 0x1a6   : > { %v1273_v24 = vrot.slane %v1117_v63, 7 }
 0x1a7   : > { %v1836_v28 = vunpack.c.h.b16 %v1518_v49  ;;  %v1835_v43 = vunpack.c.l.b16 %v1518_v49  ;;  %v7316_v49 = vpop.f32.mrf.mxu3 }
 0x1a8   : > { %v1306_v40 = vsel %vm1296_vm4, %v1241_v53, %v1273_v24  ;;  %v1338_v34 = vsel %vm1296_vm4, %v1273_v24, %v1241_v53  ;;  %9534 = vst [vmem:[#allocation35_spill] sm:$0xff] %v7316_v49 }
 0x1a9   : > { %v7305_v5 = vpack.c.b16 %v1836_v28, %v1830_v57  ;;  %v1514_v36 = vpack.c.bf16 %v1338_v34, %v1337_v50  ;;  %v1517_v63 = vpack.c.bf16 %v1306_v40, %v1305_v3  ;;  %v7308_v62 = vpack.c.b16 %v1835_v43, %v1829_v54 }
 0x1aa   : > { %v970_v4 = vpop.f32.mrf.mxu0  ;;  %v921_v42 = vpop.f32.mrf.mxu1  ;;  %v7325_v57 = vunpack.c.l.bf16 %v6359_v61  ;;  %v1120_v28 = vsel %vm1093_vm3, %v7311_v18, 0.0 }
 0x1ab   : > { %9531 = vst [vmem:[#allocation32_spill] sm:$0xff] %v7305_v5  ;;  %2746 = vmatmul.bf16.gmra.mxu1 %v7305_v5  ;;  %v1827_v2 = vunpack.c.l.b16 %v1514_v36  ;;  %v1833_v17 = vunpack.c.l.b16 %v1517_v63  ;;  %v1828_v16 = vunpack.c.h.b16 %v1514_v36  ;;  %v1834_v7 = vunpack.c.h.b16 %v1517_v63 }
 0x1ac   : > { %9532 = vst [vmem:[#allocation33_spill] sm:$0xff] %v7308_v62  ;;  %v922_v53 = vadd.f32 %v921_v42, %v832_v14  ;;  %v7323_v50 = vadd.f32 %v970_v4, %v6952_v6  ;;  %v7330_v42 = vpop.f32.mrf.mxu2  ;;  %v6182_v14 = vld [vmem:[#allocation3 + $0x2a0] sm:$0xff]  ;;  %v1242_v6 = vrot.slane %v7325_v57, 7  ;;  %v1274_v4 = vrot.slane %v1120_v28, 7 }
 0x1ad   : > { %2652 = vmatmul.bf16.gmra.mxu0 %v7252_v20  ;;  %v7314_v59 = vpack.c.b16 %v1833_v17, %v1827_v2  ;;  %v7318_v24 = vpack.c.b16 %v1834_v7, %v1828_v16  ;;  %9537 = vst [vmem:[#allocation38_spill] sm:$0xff] %v7330_v42  ;;  %v6190_v16 = vld [vmem:[#allocation3 + $0x2e0] sm:$0xff]  ;;  %v884_v7 = vadd.f32 %v6957_v13, %v6887_v23 }
 0x1ae   : > { %v7320_v3 = vadd.f32 %v1010_v39, %v922_v53  ;;  %2810 = vmatpush.bf16.msra.mxu3 %v6182_v14  ;;  %2899 = vmatpush.bf16.msra.mxu2 %v6190_v16  ;;  %v1521_v40 = vpack.c.bf16 %v7323_v50, %v7325_v57  ;;  %v1243_v13 = vrot.slane %v7323_v50, 7  ;;  %v1307_v36 = vsel %vm1296_vm4, %v1242_v6, %v1274_v4 }
 0x1af   : > { %9533 = vst [vmem:[#allocation34_spill] sm:$0xff] %v7314_v59  ;;  %2479 = vmatmul.bf16.gmra.mxu3 %v7314_v59  ;;  %v1339_v63 = vsel %vm1296_vm4, %v1274_v4, %v1242_v6  ;;  %v837_v53 = vpop.f32.mrf.mxu3 }
 0x1b0   : > { %9535 = vst [vmem:[#allocation36_spill] sm:$0xff] %v7318_v24  ;;  %2568 = vmatmul.bf16.gmra.mxu2 %v7318_v24  ;;  %v1842_v2 = vunpack.c.h.b16 %v1521_v40  ;;  %v1841_v16 = vunpack.c.l.b16 %v1521_v40  ;;  %v6360_v24 = vld [vmem:[%s6988_s12 + $0x30] sm:$0xff]  }
 0x1b1   : > { %9536 = vst [vmem:[#allocation37_spill] sm:$0xff] %v7320_v3  ;;  %v7363_v49 = vunpack.c.h.bf16 %v6360_v24 }
 0x1b2   : > { %v972_v39 = vpop.f32.mrf.mxu0  ;;  %v7337_v61 = vpop.f32.mrf.mxu1 }
 0x1b3   : > { %9538 = vst [vmem:[#allocation39_spill] sm:$0xff] %v7337_v61  ;;  %v7341_v34 = vadd.f32 %v972_v39, %v884_v7 }
 0x1b4   : > { %v1015_v20 = vpop.f32.mrf.mxu2  ;;  %9541 = vst [vmem:[#allocation42_spill] sm:$0xff] %v7363_v49 }
 0x1b5   : > { %v1121_v54 = vsel %vm1093_vm3, %v7341_v34, 0.0  ;;  %v1524_v23 = vpack.c.bf16 %v7341_v34, %v7311_v18 }
 0x1b6   : > { %v1275_v43 = vrot.slane %v1121_v54, 7 }
 0x1b7   : > { %v1848_v17 = vunpack.c.h.b16 %v1524_v23  ;;  %v1847_v7 = vunpack.c.l.b16 %v1524_v23 }
 0x1b8   : > { %v1308_v28 = vsel %vm1296_vm4, %v1243_v13, %v1275_v43  ;;  %v1340_v14 = vsel %vm1296_vm4, %v1275_v43, %v1243_v13 }
 0x1b9   : > { %v7357_v39 = vpack.c.b16 %v1848_v17, %v1842_v2  ;;  %v1520_v54 = vpack.c.bf16 %v1340_v14, %v1339_v63  ;;  %v1523_v5 = vpack.c.bf16 %v1308_v28, %v1307_v36  ;;  %v7360_v6 = vpack.c.b16 %v1847_v7, %v1841_v16  ;;  %v6365_v7 = vld [vmem:[%s6988_s12 + $0x58] sm:$0xff]  }
 0x1ba   : > { %v975_v59 = vpop.f32.mrf.mxu0  ;;  %v926_v42 = vpop.f32.mrf.mxu1  ;;  %v7375_v2 = vunpack.c.l.bf16 %v6360_v24  ;;  %v1124_v17 = vsel %vm1093_vm3, %v7363_v49, 0.0 }
 0x1bb   : > { %9539 = vst [vmem:[#allocation40_spill] sm:$0xff] %v7357_v39  ;;  %2751 = vmatmul.bf16.gmra.mxu1 %v7357_v39  ;;  %v1839_v4 = vunpack.c.l.b16 %v1520_v54  ;;  %v1845_v3 = vunpack.c.l.b16 %v1523_v5  ;;  %v1840_v61 = vunpack.c.h.b16 %v1520_v54  ;;  %v1846_v40 = vunpack.c.h.b16 %v1523_v5 }
 0x1bc   : > { %9540 = vst [vmem:[#allocation41_spill] sm:$0xff] %v7360_v6  ;;  %v927_v23 = vadd.f32 %v926_v42, %v837_v53  ;;  %v7373_v63 = vadd.f32 %v975_v59, %v6993_v41  ;;  %v889_v5 = vadd.f32 %v7007_v56, %v6921_v47  ;;  %v1244_v41 = vrot.slane %v7375_v2, 7  ;;  %v7396_v14 = vpop.f32.mrf.mxu2 }
 0x1bd   : > { %2657 = vmatmul.bf16.gmra.mxu0 %v7308_v62  ;;  %v7366_v13 = vpack.c.b16 %v1845_v3, %v1839_v4  ;;  %v7368_v43 = vpack.c.b16 %v1846_v40, %v1840_v61  ;;  %9545 = vst [vmem:[#allocation46_spill] sm:$0xff] %v7375_v2  ;;  %v6364_v3 = vld [vmem:[%s6988_s12 + $0x50] sm:$0xff]   ;;  %v1276_v59 = vrot.slane %v1124_v17, 7  ;;  %v7400_v47 = vadd.f32 %v7041_v32, %v6955_v12 }
 0x1be   : > { %v7370_v36 = vadd.f32 %v1015_v20, %v927_v23  ;;  %v7385_v20 = vpop.f32.mrf.mxu3  ;;  %v7390_v61 = vunpack.c.h.bf16 %v6364_v3  ;;  %v1527_v53 = vpack.c.bf16 %v7373_v63, %v7375_v2  ;;  %9548 = vst [vmem:[#allocation49_spill] sm:$0xff] %v7396_v14  ;;  %v7404_v56 = vadd.f32 %v7072_v0, %v7005_v55 }
 0x1bf   : > { %9542 = vst [vmem:[#allocation43_spill] sm:$0xff] %v7366_v13  ;;  %2484 = vmatmul.bf16.gmra.mxu3 %v7366_v13  ;;  %v7406_v16 = vunpack.c.l.bf16 %v6364_v3  ;;  %v909_v54 = vadd.f32 %v7168_v22, %v6774_v11  ;;  %v7411_v4 = vunpack.c.h.bf16 %v6365_v7  ;;  %v1245_v32 = vrot.slane %v7373_v63, 7 }
 0x1c0   : > { %9543 = vst [vmem:[#allocation44_spill] sm:$0xff] %v7368_v43  ;;  %2573 = vmatmul.bf16.gmra.mxu2 %v7368_v43  ;;  %v1309_v55 = vsel %vm1296_vm4, %v1244_v41, %v1276_v59  ;;  %v1341_v0 = vsel %vm1296_vm4, %v1276_v59, %v1244_v41  ;;  %v7423_v11 = vunpack.c.l.bf16 %v6365_v7  ;;  %v1854_v22 = vunpack.c.h.b16 %v1527_v53  ;;  %v6361_v43 = vld [vmem:[%s6988_s12 + $0x38] sm:$0xff]  }
 0x1c1   : > { %9544 = vst [vmem:[#allocation45_spill] sm:$0xff] %v7370_v36  ;;  %v7433_v62 = vadd.f32 %v7132_v58, %v909_v54  ;;  %v1252_v36 = vrot.slane %v7406_v16, 7 }
 0x1c2   : > { %9546 = vst [vmem:[#allocation47_spill] sm:$0xff] %v7385_v20  ;;  %v977_v42 = vpop.f32.mrf.mxu0  ;;  %v7388_v24 = vpop.f32.mrf.mxu1 }
 0x1c3   : > { %9547 = vst [vmem:[#allocation48_spill] sm:$0xff] %v7388_v24  ;;  %v7394_v28 = vadd.f32 %v977_v42, %v889_v5  ;;  %v1140_v5 = vsel %vm1093_vm3, %v7390_v61, 0.0 }
 0x1c4   : > { %v1284_v24 = vrot.slane %v1140_v5, 7  ;;  %v1141_v5 = vsel %vm1093_vm3, %v7433_v62, 0.0 }
 0x1c5   : > { %v1125_v40 = vsel %vm1093_vm3, %v7394_v28, 0.0  ;;  %v1530_v12 = vpack.c.bf16 %v7394_v28, %v7363_v49 }
 0x1c6   : > { %v1277_v23 = vrot.slane %v1125_v40, 7  ;;  %v1853_v40 = vunpack.c.l.b16 %v1527_v53 }
 0x1c7   : > { %v1860_v17 = vunpack.c.h.b16 %v1530_v12  ;;  %v1859_v39 = vunpack.c.l.b16 %v1530_v12  ;;  %v7445_v12 = vunpack.c.h.bf16 %v6361_v43 }
 0x1c8   : > { %v1310_v3 = vsel %vm1296_vm4, %v1245_v32, %v1277_v23  ;;  %v1342_v42 = vsel %vm1296_vm4, %v1277_v23, %v1245_v32  ;;  %v1144_v32 = vsel %vm1093_vm3, %v7411_v4, 0.0 }
 0x1c9   : > { %v7435_v41 = vpack.c.b16 %v1860_v17, %v1854_v22  ;;  %v1526_v59 = vpack.c.bf16 %v1342_v42, %v1341_v0  ;;  %v1529_v7 = vpack.c.bf16 %v1310_v3, %v1309_v55  ;;  %v7438_v14 = vpack.c.b16 %v1859_v39, %v1853_v40  ;;  %9551 = vst [vmem:[#allocation52_spill] sm:$0xff] %v7445_v12  ;;  %v842_v55 = vpop.f32.mrf.mxu3  ;;  %v1020_v42 = vpop.f32.mrf.mxu2 }
 0x1ca   : > { %v980_v13 = vpop.f32.mrf.mxu0  ;;  %v931_v23 = vpop.f32.mrf.mxu1  ;;  %v7450_v39 = vsel %vm1162_vm1, %v7152_v52, 0.0  ;;  %v7454_v0 = vpack.c.bf16 %v7152_v52, %v7406_v16  ;;  %v1254_v40 = vrot.slane %v7423_v11, 7 }
 0x1cb   : > { %9549 = vst [vmem:[#allocation50_spill] sm:$0xff] %v7435_v41  ;;  %2756 = vmatmul.bf16.gmra.mxu1 %v7435_v41  ;;  %v1851_v53 = vunpack.c.l.b16 %v1526_v59  ;;  %v1857_v58 = vunpack.c.l.b16 %v1529_v7  ;;  %v1852_v54 = vunpack.c.h.b16 %v1526_v59  ;;  %v1858_v22 = vunpack.c.h.b16 %v1529_v7 }
 0x1cc   : > { %9550 = vst [vmem:[#allocation51_spill] sm:$0xff] %v7438_v14  ;;  %v932_v17 = vadd.f32 %v931_v23, %v842_v55  ;;  %v1286_v59 = vrot.slane %v1144_v32, 7  ;;  %v1317_v7 = vsel %vm1296_vm4, %v1252_v36, %v1284_v24  ;;  %v1349_v23 = vsel %vm1296_vm4, %v1284_v24, %v1252_v36 }
 0x1cd   : > { %2662 = vmatmul.bf16.gmra.mxu0 %v7360_v6  ;;  %v7460_v3 = vpack.c.b16 %v1857_v58, %v1851_v53  ;;  %v7463_v41 = vpack.c.b16 %v1858_v22, %v1852_v54  ;;  %v7473_v55 = vpack.c.bf16 %v7433_v62, %v7390_v61  ;;  %v7476_v53 = vadd.f32 %v980_v13, %v7036_v26  ;;  %v6181_v26 = vld [vmem:[#allocation3 + $0x298] sm:$0xff] }
 0x1ce   : > { %v7465_v20 = vadd.f32 %v1020_v42, %v932_v17  ;;  %v7478_v58 = vunpack.c.l.bf16 %v6361_v43  ;;  %v1128_v32 = vsel %vm1093_vm3, %v7445_v12, 0.0  ;;  %v7485_v54 = vadd.f32 %v7119_v30, %v7039_v31  ;;  %v6189_v13 = vld [vmem:[#allocation3 + $0x2d8] sm:$0xff]  ;;  %2811 = vmatpush.bf16.msra.mxu3 %v6181_v26 }
 0x1cf   : > { %9552 = vst [vmem:[#allocation53_spill] sm:$0xff] %v7460_v3  ;;  %v1253_v22 = vrot.slane %v7152_v52, 7  ;;  %v1285_v24 = vrot.slane %v1141_v5, 7  ;;  %2489 = vmatmul.bf16.gmra.mxu3 %v7460_v3  ;;  %v7494_v43 = vsel %vm1162_vm1, %v7212_v19, 0.0  ;;  %v1902_v17 = vunpack.c.h.b16 %v7454_v0  ;;  %2900 = vmatpush.bf16.msra.mxu2 %v6189_v13 }
 0x1d0   : > { %9553 = vst [vmem:[#allocation54_spill] sm:$0xff] %v7463_v41  ;;  %2578 = vmatmul.bf16.gmra.mxu2 %v7463_v41  ;;  %v1901_v31 = vunpack.c.l.b16 %v7454_v0  ;;  %v7500_v30 = vsel %vm1296_vm4, %v1254_v40, %v1286_v59  ;;  %v7505_v52 = vsel %vm1162_vm1, %v7204_v1, 0.0  ;;  %v1246_v42 = vrot.slane %v7478_v58, 7 }
 0x1d1   : > { %9554 = vst [vmem:[#allocation55_spill] sm:$0xff] %v7465_v20  ;;  %v1278_v36 = vrot.slane %v1128_v32, 7  ;;  %v7510_v19 = vsel %vm1296_vm4, %v1286_v59, %v1254_v40  ;;  %v1533_v6 = vpack.c.bf16 %v7476_v53, %v7478_v58  ;;  %v1908_v41 = vunpack.c.h.b16 %v7473_v55 }
 0x1d2   : > { %9555 = vst [vmem:[#allocation56_spill] sm:$0xff] %v7476_v53  ;;  %v982_v5 = vpop.f32.mrf.mxu0  ;;  %v7523_v26 = vpack.c.bf16 %v7204_v1, %v7423_v11  ;;  %v1318_v40 = vsel %vm1296_vm4, %v1253_v22, %v1285_v24  ;;  %v1247_v32 = vrot.slane %v7476_v53, 7 }
 0x1d3   : > { %9556 = vst [vmem:[#allocation57_spill] sm:$0xff] %v7478_v58  ;;  %v7516_v3 = vadd.f32 %v982_v5, %v7400_v47  ;;  %v1350_v5 = vsel %vm1296_vm4, %v1285_v24, %v1253_v22  ;;  %v1311_v20 = vsel %vm1296_vm4, %v1246_v42, %v1278_v36  ;;  %v1343_v59 = vsel %vm1296_vm4, %v1278_v36, %v1246_v42 }
 0x1d4   : > { %9557 = vst [vmem:[#allocation58_spill] sm:$0xff] %v7500_v30  ;;  %v914_v58 = vadd.f32 %v7221_v48, %v6790_v21  ;;  %v1866_v30 = vunpack.c.h.b16 %v1533_v6  ;;  %v7543_v49 = vpack.c.bf16 %v1318_v40, %v1317_v7  ;;  %v7552_v2 = vpack.c.bf16 %v1350_v5, %v1349_v23  ;;  %v7577_v5 = vpop.f32.mrf.mxu1 }
 0x1d5   : > { %9558 = vst [vmem:[#allocation59_spill] sm:$0xff] %v7505_v52  ;;  %v1129_v47 = vsel %vm1093_vm3, %v7516_v3, 0.0  ;;  %v1536_v13 = vpack.c.bf16 %v7516_v3, %v7445_v12  ;;  %v1907_v52 = vunpack.c.l.b16 %v7473_v55  ;;  %v7565_v23 = vpack.c.b16 %v1908_v41, %v1902_v17 }
 0x1d6   : > { %9559 = vst [vmem:[#allocation60_spill] sm:$0xff] %v7510_v19  ;;  %v1279_v0 = vrot.slane %v1129_v47, 7  ;;  %v6366_v19 = vld [vmem:[%s6988_s12 + $0x60] sm:$0xff]   ;;  %v1865_v47 = vunpack.c.l.b16 %v1533_v6 }
 0x1d7   : > { %9560 = vst [vmem:[#allocation61_spill] sm:$0xff] %v7516_v3  ;;  %v1872_v1 = vunpack.c.h.b16 %v1536_v13  ;;  %v1871_v12 = vunpack.c.l.b16 %v1536_v13  ;;  %v6362_v3 = vld [vmem:[%s6988_s12 + $0x40] sm:$0xff]   ;;  %v7554_v21 = vunpack.c.l.bf16 %v6366_v19 }
 0x1d8   : > { %v1312_v22 = vsel %vm1296_vm4, %v1247_v32, %v1279_v0  ;;  %v1344_v24 = vsel %vm1296_vm4, %v1279_v0, %v1247_v32  ;;  %v7556_v7 = vunpack.c.h.bf16 %v6362_v3  ;;  %v7562_v0 = vadd.f32 %v7193_v29, %v914_v58  ;;  %9564 = vst [vmem:[#allocation65_spill] sm:$0xff] %v7565_v23 }
 0x1d9   : > { %v7550_v53 = vpack.c.b16 %v1872_v1, %v1866_v30  ;;  %v1532_v36 = vpack.c.bf16 %v1344_v24, %v1343_v59  ;;  %v1535_v42 = vpack.c.bf16 %v1312_v22, %v1311_v20  ;;  %v7558_v40 = vpack.c.b16 %v1871_v12, %v1865_v47  ;;  %9567 = vst [vmem:[#allocation68_spill] sm:$0xff] %v7577_v5 }
 0x1da   : > { %v985_v48 = vpop.f32.mrf.mxu0  ;;  %9562 = vst [vmem:[#allocation63_spill] sm:$0xff] %v7556_v7  ;;  %v1132_v41 = vsel %vm1093_vm3, %v7556_v7, 0.0  ;;  %v7583_v22 = vpack.c.b16 %v1907_v52, %v1901_v31  ;;  %v7588_v24 = vsel %vm1093_vm3, %v7562_v0, 0.0  ;;  %v7593_v47 = vsel %vm1162_vm1, %v7267_v60, 0.0  ;;  %v6363_v31 = vld [vmem:[%s6988_s12 + $0x48] sm:$0xff]  }
 0x1db   : > { %9561 = vst [vmem:[#allocation62_spill] sm:$0xff] %v7550_v53  ;;  %2761 = vmatmul.bf16.gmra.mxu1 %v7550_v53  ;;  %v1863_v1 = vunpack.c.l.b16 %v1532_v36  ;;  %v1869_v6 = vunpack.c.l.b16 %v1535_v42  ;;  %v1864_v30 = vunpack.c.h.b16 %v1532_v36  ;;  %v1870_v20 = vunpack.c.h.b16 %v1535_v42 }
 0x1dc   : > { %9563 = vst [vmem:[#allocation64_spill] sm:$0xff] %v7558_v40  ;;  %v7596_v36 = vadd.f32 %v985_v48, %v7054_v51  ;;  %v7598_v42 = vunpack.c.l.bf16 %v6362_v3  ;;  %v1807_v52 = vunpack.c.l.b16 %v7282_v44  ;;  %v7611_v51 = vsel %vm1162_vm1, %v7323_v50, 0.0 }
 0x1dd   : > { %2667 = vmatmul.bf16.gmra.mxu0 %v7438_v14  ;;  %v7570_v12 = vpack.c.b16 %v1869_v6, %v1863_v1  ;;  %v7575_v13 = vpack.c.b16 %v1870_v20, %v1864_v30  ;;  %9568 = vst [vmem:[#allocation69_spill] sm:$0xff] %v7583_v22  ;;  %v7601_v6 = vunpack.c.h.bf16 %v6366_v19  ;;  %v1813_v30 = vunpack.c.l.b16 %v7285_v38 }
 0x1de   : > { %9569 = vst [vmem:[#allocation70_spill] sm:$0xff] %v7598_v42  ;;  %v1248_v60 = vrot.slane %v7598_v42, 7  ;;  %v1280_v3 = vrot.slane %v1132_v41, 7  ;;  %v7614_v48 = vunpack.c.h.bf16 %v6363_v31  ;;  %v7620_v59 = vpack.c.bf16 %v7562_v0, %v7411_v4 }
 0x1df   : > { %9565 = vst [vmem:[#allocation66_spill] sm:$0xff] %v7570_v12  ;;  %2494 = vmatmul.bf16.gmra.mxu3 %v7570_v12  ;;  %v7626_v50 = vadd.f32 %v7279_v10, %v7249_v46  ;;  %v1539_v41 = vpack.c.bf16 %v7596_v36, %v7598_v42  ;;  %v7637_v19 = vsel %vm1162_vm1, %v7373_v63, 0.0  ;;  %v7639_v20 = vunpack.c.l.bf16 %v6363_v31 }
 0x1e0   : > { %9566 = vst [vmem:[#allocation67_spill] sm:$0xff] %v7575_v13  ;;  %2583 = vmatmul.bf16.gmra.mxu2 %v7575_v13  ;;  %v7641_v32 = vpack.c.b16 %v1813_v30, %v1807_v52  ;;  %v1249_v63 = vrot.slane %v7596_v36, 7  ;;  %v1345_v52 = vsel %vm1296_vm4, %v1280_v3, %v1248_v60 }
 0x1e1   : > { %v1250_v30 = vrot.slane %v7639_v20, 7  ;;  %v1878_v55 = vunpack.c.h.b16 %v1539_v41  ;;  %v1877_v1 = vunpack.c.l.b16 %v1539_v41 }
 0x1e2   : > { %v987_v17 = vpop.f32.mrf.mxu0  ;;  %9571 = vst [vmem:[#allocation72_spill] sm:$0xff] %v7641_v32 }
 0x1e3   : > { %v7631_v29 = vadd.f32 %v987_v17, %v7404_v56  ;;  %v1313_v56 = vsel %vm1296_vm4, %v1248_v60, %v1280_v3  ;;  %v1136_v17 = vsel %vm1093_vm3, %v7614_v48, 0.0 }
 0x1e4   : > { %v1282_v32 = vrot.slane %v1136_v17, 7  ;;  %v1180_v17 = vsel %vm1162_vm1, %v7214_v15, 0.0 }
 0x1e5   : > { %9570 = vst [vmem:[#allocation71_spill] sm:$0xff] %v7631_v29  ;;  %v1133_v46 = vsel %vm1093_vm3, %v7631_v29, 0.0  ;;  %v1542_v10 = vpack.c.bf16 %v7631_v29, %v7556_v7  ;;  %v1814_v29 = vunpack.c.h.b16 %v7285_v38  ;;  %v1399_v38 = vrot.slane %v7200_v33, 1 }
 0x1e6   : > { %v1281_v31 = vrot.slane %v1133_v46, 7  ;;  %v1808_v46 = vunpack.c.h.b16 %v7282_v44  ;;  %v7676_v44 = vpop.f32.mrf.mxu2 }
 0x1e7   : > { %v1884_v58 = vunpack.c.h.b16 %v1542_v10  ;;  %v1883_v53 = vunpack.c.l.b16 %v1542_v10 }
 0x1e8   : > { %v7657_v14 = vpop.f32.mrf.mxu1  ;;  %v1314_v12 = vsel %vm1296_vm4, %v1249_v63, %v1281_v31  ;;  %v1346_v13 = vsel %vm1296_vm4, %v1281_v31, %v1249_v63 }
 0x1e9   : > { %9572 = vst [vmem:[#allocation73_spill] sm:$0xff] %v7657_v14  ;;  %v7664_v5 = vpack.c.b16 %v1884_v58, %v1878_v55  ;;  %v1538_v60 = vpack.c.bf16 %v1346_v13, %v1345_v52  ;;  %v1541_v3 = vpack.c.bf16 %v1314_v12, %v1313_v56  ;;  %v7666_v7 = vpack.c.b16 %v1883_v53, %v1877_v1  ;;  %v7670_v14 = vpop.f32.mrf.mxu3 }
 0x1ea   : > { %v990_v42 = vpop.f32.mrf.mxu0  ;;  %v7682_v1 = vpack.c.b16 %v1814_v29, %v1808_v46  ;;  %v1367_v56 = vrot.slane %v1180_v17, 1  ;;  %v1347_v29 = vsel %vm1296_vm4, %v1282_v32, %v1250_v30  ;;  %v9578_v52 = vrot.slane %v7231_v35, 1 }
 0x1eb   : > { %9573 = vst [vmem:[#allocation74_spill] sm:$0xff] %v7664_v5  ;;  %v7679_v55 = vadd.f32 %v990_v42, %v7098_v8  ;;  %2766 = vmatmul.bf16.gmra.mxu1 %v7664_v5  ;;  %v1875_v53 = vunpack.c.l.b16 %v1538_v60  ;;  %v1881_v12 = vunpack.c.l.b16 %v1541_v3  ;;  %v1876_v58 = vunpack.c.h.b16 %v1538_v60 }
 0x1ec   : > { %9574 = vst [vmem:[#allocation75_spill] sm:$0xff] %v7666_v7  ;;  %v1882_v13 = vunpack.c.h.b16 %v1541_v3  ;;  %v1315_v42 = vsel %vm1296_vm4, %v1250_v30, %v1282_v32  ;;  %v1432_v33 = vsel %vm1425_vm2, %v1367_v56, %v1399_v38  ;;  %v9579_v46 = vrot.slane %v7494_v43, 1 }
 0x1ed   : > { %9575 = vst [vmem:[#allocation76_spill] sm:$0xff] %v7682_v1  ;;  %v7688_v15 = vpack.c.bf16 %v7679_v55, %v7639_v20  ;;  %2672 = vmatmul.bf16.gmra.mxu0 %v7558_v40  ;;  %v7691_v8 = vpack.c.b16 %v1881_v12, %v1875_v53  ;;  %v1251_v3 = vrot.slane %v7679_v55, 7  ;;  %v1464_v53 = vsel %vm1425_vm2, %v1399_v38, %v1367_v56 }
 0x1ee   : > { %v7695_v31 = vpack.c.b16 %v1882_v13, %v1876_v58  ;;  %v1433_v60 = vsel %vm1425_vm2, %v9579_v46, %v9578_v52  ;;  %v9580_v12 = vmov %v9579_v46  ;;  %v9581_v32 = vmov %v9578_v52  ;;  %v6180_v13 = vld [vmem:[#allocation3 + $0x290] sm:$0xff] }
 0x1ef   : > { %9576 = vst [vmem:[#allocation77_spill] sm:$0xff] %v7691_v8  ;;  %v1890_v17 = vunpack.c.h.b16 %v7688_v15  ;;  %v1465_v30 = vsel %vm1425_vm2, %v9581_v32, %v9580_v12  ;;  %2499 = vmatmul.bf16.gmra.mxu3 %v7691_v8  ;;  %v6188_v52 = vld [vmem:[#allocation3 + $0x2d0] sm:$0xff]  ;;  %v1510_v46 = vpack.c.bf16 %v1433_v60, %v1432_v33  ;;  %v1184_v56 = vsel %vm1162_vm1, %v7269_v9, 0.0 }
 0x1f0   : > { %9577 = vst [vmem:[#allocation78_spill] sm:$0xff] %v7695_v31  ;;  %2588 = vmatmul.bf16.gmra.mxu2 %v7695_v31  ;;  %v7719_v58 = vpop.f32.mrf.mxu1  ;;  %v1513_v10 = vpack.c.bf16 %v1465_v30, %v1464_v53  ;;  %v1401_v43 = vrot.slane %v7255_v27, 1  ;;  %v1369_v35 = vrot.slane %v1184_v56, 1  ;;  %v9583_v38 = vrot.slane %v7289_v25, 1  ;;  %2812 = vmatpush.bf16.msra.mxu3 %v6180_v13 }
 0x1f1   : > { %9582 = vst [vmem:[#allocation79_spill] sm:$0xff] %v7719_v58  ;;  %v9584_v12 = vrot.slane %v7593_v47, 1  ;;  %v7740_v9 = vsel %vm1162_vm1, %v7406_v16, 0.0  ;;  %2901 = vmatpush.bf16.msra.mxu2 %v6188_v52  ;;  %v1819_v53 = vunpack.c.l.b16 %v1510_v46  ;;  %v1820_v56 = vunpack.c.h.b16 %v1510_v46 }
 0x1f2   : > { %v9586_v41 = vmov %v9583_v38  ;;  %v992_v27 = vpop.f32.mrf.mxu0  ;;  %v2460_v60 = vpop.f32.mrf.mxu3  ;;  %v1825_v30 = vunpack.c.l.b16 %v1513_v10  ;;  %v1466_v16 = vsel %vm1425_vm2, %v1401_v43, %v1369_v35  ;;  %v1381_v46 = vrot.slane %v7740_v9, 1 }
 0x1f3   : > { %v1435_v32 = vsel %vm1425_vm2, %v9584_v12, %v9583_v38  ;;  %v9585_v63 = vmov %v9584_v12  ;;  %v1826_v38 = vunpack.c.h.b16 %v1513_v10  ;;  %v7743_v47 = vadd.f32 %v992_v27, %v7485_v54  ;;  %v2549_v25 = vpop.f32.mrf.mxu2 }
 0x1f4   : > { %v1467_v33 = vsel %vm1425_vm2, %v9586_v41, %v9585_v63  ;;  %v1889_v12 = vunpack.c.l.b16 %v7688_v15  ;;  %v1434_v41 = vsel %vm1425_vm2, %v1369_v35, %v1401_v43  ;;  %v2550_v63 = vadd.f32 %v2549_v25, %v2460_v60 }
 0x1f5   : > { %v7750_v5 = vpack.c.b16 %v1825_v30, %v1819_v53  ;;  %v7752_v13 = vpack.c.b16 %v1826_v38, %v1820_v56  ;;  %v1516_v52 = vpack.c.bf16 %v1435_v32, %v1434_v41  ;;  %v1137_v54 = vsel %vm1093_vm3, %v7743_v47, 0.0 }
 0x1f6   : > { %v1548_v10 = vpack.c.bf16 %v7743_v47, %v7614_v48  ;;  %v1519_v15 = vpack.c.bf16 %v1467_v33, %v1466_v16  ;;  %v1283_v27 = vrot.slane %v1137_v54, 7  ;;  %v1188_v43 = vsel %vm1162_vm1, %v7325_v57, 0.0 }
 0x1f7   : > { %9587 = vst [vmem:[#allocation80_spill] sm:$0xff] %v7750_v5  ;;  %v1831_v40 = vunpack.c.l.b16 %v1516_v52  ;;  %v1832_v8 = vunpack.c.h.b16 %v1516_v52  ;;  %v1371_v9 = vrot.slane %v1188_v43, 1  ;;  %v1403_v38 = vrot.slane %v7311_v18, 1 }
 0x1f8   : > { %9588 = vst [vmem:[#allocation81_spill] sm:$0xff] %v7752_v13  ;;  %v1896_v35 = vunpack.c.h.b16 %v1548_v10  ;;  %v1895_v60 = vunpack.c.l.b16 %v1548_v10  ;;  %v1837_v32 = vunpack.c.l.b16 %v1519_v15  ;;  %v1838_v53 = vunpack.c.h.b16 %v1519_v15  ;;  %v7763_v30 = vpop.f32.mrf.mxu1 }
 0x1f9   : > { %9589 = vst [vmem:[#allocation82_spill] sm:$0xff] %v7763_v30  ;;  %v1316_v56 = vsel %vm1296_vm4, %v1251_v3, %v1283_v27  ;;  %v1348_v33 = vsel %vm1296_vm4, %v1283_v27, %v1251_v3  ;;  %v1436_v30 = vsel %vm1425_vm2, %v1371_v9, %v1403_v38  ;;  %v9594_v3 = vrot.slane %v7341_v34, 1 }
 0x1fa   : > { %v7770_v25 = vpack.c.b16 %v1896_v35, %v1890_v17  ;;  %v1544_v41 = vpack.c.bf16 %v1348_v33, %v1347_v29  ;;  %v1547_v16 = vpack.c.bf16 %v1316_v56, %v1315_v42  ;;  %v7772_v57 = vpack.c.b16 %v1895_v60, %v1889_v12  ;;  %v2462_v52 = vpop.f32.mrf.mxu3  ;;  %v2638_v54 = vpop.f32.mrf.mxu0 }
 0x1fb   : > { %v7774_v10 = vpack.c.b16 %v1837_v32, %v1831_v40  ;;  %v7776_v15 = vpack.c.b16 %v1838_v53, %v1832_v8  ;;  %v9595_v27 = vrot.slane %v7611_v51, 1  ;;  %v2551_v29 = vpop.f32.mrf.mxu2  ;;  %v7786_v42 = vadd.f32 %v2638_v54, %v2550_v63 }
 0x1fc   : > { %9590 = vst [vmem:[#allocation83_spill] sm:$0xff] %v7770_v25  ;;  %2771 = vmatmul.bf16.gmra.mxu1 %v7770_v25  ;;  %v1887_v17 = vunpack.c.l.b16 %v1544_v41  ;;  %v1893_v40 = vunpack.c.l.b16 %v1547_v16  ;;  %v1888_v12 = vunpack.c.h.b16 %v1544_v41  ;;  %v2552_v8 = vadd.f32 %v2551_v29, %v2462_v52 }
 0x1fd   : > { %9591 = vst [vmem:[#allocation84_spill] sm:$0xff] %v7772_v57  ;;  %v1437_v18 = vsel %vm1425_vm2, %v9595_v27, %v9594_v3  ;;  %v1894_v43 = vunpack.c.h.b16 %v1547_v16  ;;  %v1468_v35 = vsel %vm1425_vm2, %v1403_v38, %v1371_v9  ;;  %v9596_v60 = vmov %v9595_v27  ;;  %2677 = vmatmul.bf16.gmra.mxu0 %v7666_v7 }
 0x1fe   : > { %9592 = vst [vmem:[#allocation85_spill] sm:$0xff] %v7774_v10  ;;  %v9597_v32 = vmov %v9594_v3  ;;  %v7798_v63 = vpack.c.b16 %v1893_v40, %v1887_v17  ;;  %v1522_v56 = vpack.c.bf16 %v1437_v18, %v1436_v30  ;;  %v1413_v41 = vrot.slane %v7390_v61, 1 }
 0x1ff   : > { %9593 = vst [vmem:[#allocation86_spill] sm:$0xff] %v7776_v15  ;;  %v1469_v53 = vsel %vm1425_vm2, %v9597_v32, %v9596_v60  ;;  %v7801_v52 = vpack.c.b16 %v1894_v43, %v1888_v12  ;;  %v9600_v16 = vrot.slane %v7433_v62, 1  ;;  %v9601_v9 = vrot.slane %v7450_v39, 1 }
 0x200   : > { %9598 = vst [vmem:[#allocation87_spill] sm:$0xff] %v7798_v63  ;;  %v1525_v33 = vpack.c.bf16 %v1469_v53, %v1468_v35  ;;  %v1212_v61 = vsel %vm1162_vm1, %v7423_v11, 0.0  ;;  %v1843_v30 = vunpack.c.l.b16 %v1522_v56  ;;  %v1844_v27 = vunpack.c.h.b16 %v1522_v56  ;;  %2504 = vmatmul.bf16.gmra.mxu3 %v7798_v63  ;;  %v7820_v29 = vpop.f32.mrf.mxu1  ;;  %v9608_v56 = vld [vmem:[#allocation59_spill] sm:$0xff] }
 0x201   : > { %9599 = vst [vmem:[#allocation88_spill] sm:$0xff] %v7801_v52  ;;  %v1447_v34 = vsel %vm1425_vm2, %v9601_v9, %v9600_v16  ;;  %v9602_v51 = vmov %v9601_v9  ;;  %v9603_v38 = vmov %v9600_v16  ;;  %2593 = vmatmul.bf16.gmra.mxu2 %v7801_v52  ;;  %v1446_v62 = vsel %vm1425_vm2, %v1381_v46, %v1413_v41 }
 0x202   : > { %v1479_v54 = vsel %vm1425_vm2, %v9603_v38, %v9602_v51  ;;  %v1849_v3 = vunpack.c.l.b16 %v1525_v33  ;;  %v1850_v18 = vunpack.c.h.b16 %v1525_v33  ;;  %9604 = vst [vmem:[#allocation89_spill] sm:$0xff] %v7820_v29  ;;  %v1478_v39 = vsel %vm1425_vm2, %v1413_v41, %v1381_v46  ;;  %v2640_v60 = vpop.f32.mrf.mxu0 }
 0x203   : > { %v1383_v17 = vrot.slane %v1212_v61, 1  ;;  %v1415_v40 = vrot.slane %v7411_v4, 1  ;;  %v1552_v43 = vpack.c.bf16 %v1447_v34, %v1446_v62  ;;  %v1555_v35 = vpack.c.bf16 %v1479_v54, %v1478_v39  ;;  %v2465_v34 = vpop.f32.mrf.mxu3  ;;  %v2554_v51 = vpop.f32.mrf.mxu2 }
 0x204   : > { %v7827_v11 = vpack.c.b16 %v1849_v3, %v1843_v30  ;;  %v7829_v12 = vpack.c.b16 %v1850_v18, %v1844_v27  ;;  %v9607_v53 = vrot.slane %v7562_v0, 1  ;;  %v9609_v33 = vrot.slane %v9608_v56, 1  ;;  %v9613_v27 = vld [vmem:[#allocation46_spill] sm:$0xff] }
 0x205   : > { %v1448_v32 = vsel %vm1425_vm2, %v1383_v17, %v1415_v40  ;;  %v1480_v4 = vsel %vm1425_vm2, %v1415_v40, %v1383_v17  ;;  %v7847_v38 = vadd.f32 %v2640_v60, %v2552_v8  ;;  %v1903_v54 = vunpack.c.l.b16 %v1552_v43  ;;  %v9614_v40 = vld [vmem:[#allocation42_spill] sm:$0xff]  ;;  %v9617_v8 = vld [vmem:[#allocation23_spill] sm:$0xff] }
 0x206   : > { %9605 = vst [vmem:[#allocation90_spill] sm:$0xff] %v7827_v11  ;;  %v1449_v46 = vsel %vm1425_vm2, %v9609_v33, %v9607_v53  ;;  %v9610_v41 = vmov %v9609_v33  ;;  %v9611_v16 = vmov %v9607_v53  ;;  %v1909_v61 = vunpack.c.l.b16 %v1555_v35 }
 0x207   : > { %9606 = vst [vmem:[#allocation91_spill] sm:$0xff] %v7829_v12  ;;  %v1481_v9 = vsel %vm1425_vm2, %v9611_v16, %v9610_v41  ;;  %v1904_v30 = vunpack.c.h.b16 %v1552_v43  ;;  %v2555_v3 = vadd.f32 %v2554_v51, %v2465_v34  ;;  %v1192_v18 = vsel %vm1162_vm1, %v9613_v27, 0.0 }
 0x208   : > { %9612 = vst [vmem:[#allocation59_spill] sm:$0xff] %v7847_v38  ;;  %v1910_v62 = vunpack.c.h.b16 %v1555_v35  ;;  %v1558_v39 = vpack.c.bf16 %v1449_v46, %v1448_v32  ;;  %v1373_v17 = vrot.slane %v1192_v18, 1  ;;  %v1405_v0 = vrot.slane %v9614_v40, 1  ;;  %v9625_v40 = vld [vmem:[#allocation31_spill] sm:$0xff] }
 0x209   : > { %v7853_v53 = vpack.c.b16 %v1909_v61, %v1903_v54  ;;  %v1561_v56 = vpack.c.bf16 %v1481_v9, %v1480_v4  ;;  %v9616_v33 = vrot.slane %v7588_v24, 7  ;;  %v9618_v60 = vrot.slane %v9617_v8, 7 }
 0x20a   : > { %v7861_v41 = vpack.c.b16 %v1910_v62, %v1904_v30  ;;  %v1915_v16 = vunpack.c.l.b16 %v1558_v39  ;;  %v1916_v34 = vunpack.c.h.b16 %v1558_v39  ;;  %v1438_v35 = vsel %vm1425_vm2, %v1373_v17, %v1405_v0  ;;  %v7879_v30 = vpop.f32.mrf.mxu1 }
 0x20b   : > { %9615 = vst [vmem:[#allocation46_spill] sm:$0xff] %v7853_v53  ;;  %v1320_v43 = vsel %vm1296_vm4, %v9618_v60, %v9616_v33  ;;  %v9620_v32 = vrot.slane %v7394_v28, 1  ;;  %v9621_v46 = vrot.slane %v7637_v19, 1  ;;  %v1470_v9 = vsel %vm1425_vm2, %v1405_v0, %v1373_v17  ;;  %v9626_v17 = vld [vmem:[#allocation28_spill] sm:$0xff]  ;;  %v9650_v53 = vld [vmem:[#allocation57_spill] sm:$0xff] }
 0x20c   : > { %9619 = vst [vmem:[#allocation42_spill] sm:$0xff] %v7861_v41  ;;  %v1921_v62 = vunpack.c.l.b16 %v1561_v56  ;;  %v1922_v39 = vunpack.c.h.b16 %v1561_v56  ;;  %v1217_v33 = vsel %vm1162_vm1, %v9625_v40, 0.0  ;;  %v7886_v0 = vadd.f32 %v9626_v17, %v7626_v50  ;;  %2776 = vmatmul.bf16.gmra.mxu1 %v7565_v23  ;;  %v9630_v17 = vld [vmem:[#allocation58_spill] sm:$0xff] }
 0x20d   : > { %v1439_v4 = vsel %vm1425_vm2, %v9621_v46, %v9620_v32  ;;  %v9622_v51 = vmov %v9621_v46  ;;  %v9623_v54 = vmov %v9620_v32  ;;  %9624 = vst [vmem:[#allocation23_spill] sm:$0xff] %v7879_v30  ;;  %v1920_v28 = vunpack.c.h.b16 %v7620_v59  ;;  %v2643_v32 = vpop.f32.mrf.mxu0  ;;  %2682 = vmatmul.bf16.gmra.mxu0 %v7772_v57  ;;  %v9646_v57 = vld [vmem:[#allocation35_spill] sm:$0xff] }
 0x20e   : > { %v1471_v61 = vsel %vm1425_vm2, %v9623_v54, %v9622_v51  ;;  %v1528_v27 = vpack.c.bf16 %v1439_v4, %v1438_v35  ;;  %v9627_v19 = vmov %v9618_v60  ;;  %v9628_v60 = vrot.slane %v7588_v24, 7  ;;  %v7896_v51 = vld [vmem:[%s6988_s12 + $0x68] sm:$0xff]   ;;  %v2467_v54 = vpop.f32.mrf.mxu3 }
 0x20f   : > { %v1531_v18 = vpack.c.bf16 %v1471_v61, %v1470_v9  ;;  %v2556_v61 = vpop.f32.mrf.mxu2  ;;  %v7898_v50 = vadd.f32 %v2643_v32, %v2555_v3  ;;  %v7902_v8 = vpack.c.bf16 %v1320_v43, %v9630_v17  ;;  %v7904_v24 = vpack.c.b16 %v1921_v62, %v1915_v16 }
 0x210   : > { %v1352_v35 = vsel %vm1296_vm4, %v9628_v60, %v9627_v19  ;;  %v1855_v46 = vunpack.c.l.b16 %v1528_v27  ;;  %v1856_v4 = vunpack.c.h.b16 %v1528_v27  ;;  %v7906_v25 = vpack.c.b16 %v1922_v39, %v1916_v34  ;;  %v9633_v60 = vld [vmem:[#allocation60_spill] sm:$0xff] }
 0x211   : > { %v1861_v56 = vunpack.c.l.b16 %v1531_v18  ;;  %v1862_v9 = vunpack.c.h.b16 %v1531_v18  ;;  %9629 = vst [vmem:[#allocation31_spill] sm:$0xff] %v7898_v50  ;;  %v2557_v19 = vadd.f32 %v2556_v61, %v2467_v54  ;;  %v7909_v7 = vpack.c.bf16 %v1352_v35, %v9633_v60  ;;  %v9644_v61 = vld [vmem:[#allocation56_spill] sm:$0xff] }
 0x212   : > { %9631 = vst [vmem:[#allocation28_spill] sm:$0xff] %v7904_v24  ;;  %v1386_v30 = vrot.slane %v1217_v33, 1  ;;  %v1418_v3 = vrot.slane %v7886_v0, 1  ;;  %v9636_v43 = vunpack.c.l.b16 %v7552_v2  ;;  %v9637_v16 = vunpack.c.l.b16 %v7543_v49 }
 0x213   : > { %9632 = vst [vmem:[#allocation58_spill] sm:$0xff] %v7906_v25  ;;  %v7911_v27 = vpack.c.b16 %v1861_v56, %v1855_v46  ;;  %v7913_v18 = vpack.c.b16 %v1862_v9, %v1856_v4  ;;  %v9639_v34 = vunpack.c.h.b16 %v7552_v2  ;;  %v9640_v39 = vunpack.c.h.b16 %v7543_v49 }
 0x214   : > { %v7921_v62 = vpack.c.b16 %v9637_v16, %v9636_v43  ;;  %v7931_v33 = vunpack.c.l.bf16 %v7896_v51  ;;  %v9642_v46 = vunpack.c.h.b16 %v7523_v26  ;;  %v1216_v4 = vsel %vm1162_vm1, %v7554_v21, 0.0 }
 0x215   : > { %9634 = vst [vmem:[#allocation60_spill] sm:$0xff] %v7911_v27  ;;  %v7927_v35 = vpack.c.b16 %v9640_v39, %v9639_v34  ;;  %v7942_v2 = vpack.c.bf16 %v9625_v40, %v7554_v21  ;;  %v1385_v9 = vrot.slane %v1216_v4, 1  ;;  %v1417_v54 = vrot.slane %v7601_v6, 1  ;;  %v6179_v34 = vld [vmem:[#allocation3 + $0x288] sm:$0xff]  ;;  %v2645_v16 = vpop.f32.mrf.mxu0 }
 0x216   : > { %9635 = vst [vmem:[#allocation92_spill] sm:$0xff] %v7913_v18  ;;  %v7935_v56 = vpack.c.b16 %v1920_v28, %v9642_v46  ;;  %v1197_v17 = vsel %vm1162_vm1, %v9644_v61, 0.0  ;;  %2509 = vmatmul.bf16.gmra.mxu3 %v7921_v62  ;;  %v7951_v28 = vpop.f32.mrf.mxu1  ;;  %v6187_v39 = vld [vmem:[#allocation3 + $0x2c8] sm:$0xff]  ;;  %v1451_v4 = vsel %vm1425_vm2, %v1386_v30, %v1418_v3  ;;  %v1483_v49 = vsel %vm1425_vm2, %v1418_v3, %v1386_v30  ;;  %v9648_v30 = vld [vmem:[#allocation61_spill] sm:$0xff]  ;;  %v2470_v24 = vpop.f32.mrf.mxu3 }
 0x217   : > { %9638 = vst [vmem:[#allocation93_spill] sm:$0xff] %v7921_v62  ;;  %2598 = vmatmul.bf16.gmra.mxu2 %v7927_v35  ;;  %v1450_v46 = vsel %vm1425_vm2, %v1385_v9, %v1417_v54  ;;  %v1482_v61 = vsel %vm1425_vm2, %v1417_v54, %v1385_v9  ;;  %v7967_v43 = vsel %vm1093_vm3, %v7886_v0, 0.0  ;;  %v7972_v60 = vsel %vm1093_vm3, %v7601_v6, 0.0  ;;  %2813 = vmatpush.bf16.msra.mxu3 %v6179_v34  ;;  %v9647_v9 = vld [vmem:[#allocation39_spill] sm:$0xff]  ;;  %v2559_v62 = vpop.f32.mrf.mxu2 }
 0x218   : > { %9641 = vst [vmem:[#allocation94_spill] sm:$0xff] %v7927_v35  ;;  %2902 = vmatpush.bf16.msra.mxu2 %v6187_v39  ;;  %v1564_v32 = vpack.c.bf16 %v1451_v4, %v1450_v46  ;;  %v1567_v23 = vpack.c.bf16 %v1483_v49, %v1482_v61  ;;  %v924_v54 = vadd.f32 %v9647_v9, %v9646_v57  ;;  %v1376_v25 = vrot.slane %v1197_v17, 1  ;;  %v9651_v46 = vld [vmem:[#allocation52_spill] sm:$0xff] }
 0x219   : > { %9643 = vst [vmem:[#allocation95_spill] sm:$0xff] %v7935_v56  ;;  %v1408_v3 = vrot.slane %v9648_v30, 1  ;;  %v2560_v41 = vadd.f32 %v2559_v62, %v2470_v24  ;;  %v1196_v63 = vsel %vm1162_vm1, %v9650_v53, 0.0  ;;  %v1407_v49 = vrot.slane %v9651_v46, 1  ;;  %v9656_v30 = vld [vmem:[#allocation38_spill] sm:$0xff] }
 0x21a   : > { %9645 = vst [vmem:[#allocation56_spill] sm:$0xff] %v7951_v28  ;;  %v7977_v28 = vadd.f32 %v2645_v16, %v2557_v19  ;;  %v1927_v35 = vunpack.c.l.b16 %v1564_v32  ;;  %v1933_v34 = vunpack.c.l.b16 %v1567_v23  ;;  %v1375_v39 = vrot.slane %v1196_v63, 1 }
 0x21b   : > { %v1928_v4 = vunpack.c.h.b16 %v1564_v32  ;;  %v1934_v61 = vunpack.c.h.b16 %v1567_v23  ;;  %v1289_v57 = vrot.slane %v7967_v43, 7  ;;  %v1256_v17 = vrot.slane %v7554_v21, 7  ;;  %v9655_v43 = vld [vmem:[#allocation37_spill] sm:$0xff] }
 0x21c   : > { %9649 = vst [vmem:[#allocation35_spill] sm:$0xff] %v7977_v28  ;;  %v1288_v9 = vrot.slane %v7972_v60, 7  ;;  %v7986_v19 = vpack.c.b16 %v1933_v34, %v1927_v35  ;;  %v1440_v24 = vsel %vm1425_vm2, %v1375_v39, %v1407_v49  ;;  %v1441_v53 = vsel %vm1425_vm2, %v1376_v25, %v1408_v3  ;;  %2781 = vmatmul.bf16.gmra.mxu1 %v7935_v56 }
 0x21d   : > { %v1472_v63 = vsel %vm1425_vm2, %v1407_v49, %v1375_v39  ;;  %v1473_v23 = vsel %vm1425_vm2, %v1408_v3, %v1376_v25  ;;  %v7998_v21 = vpack.c.bf16 %v7886_v0, %v7601_v6  ;;  %v1534_v35 = vpack.c.bf16 %v1441_v53, %v1440_v24  ;;  %v2648_v39 = vpop.f32.mrf.mxu0  ;;  %2687 = vmatmul.bf16.gmra.mxu0 %v7583_v22 }
 0x21e   : > { %9652 = vst [vmem:[#allocation39_spill] sm:$0xff] %v7986_v19  ;;  %v8000_v62 = vpop.f32.mrf.mxu1  ;;  %v1537_v32 = vpack.c.bf16 %v1473_v23, %v1472_v63  ;;  %v8002_v60 = vpack.c.b16 %v1934_v61, %v1928_v4  ;;  %v1221_v16 = vsel %vm1162_vm1, %v9655_v43, 0.0  ;;  %v8008_v34 = vadd.f32 %v9656_v30, %v924_v54  ;;  %v8016_v4 = vld [vmem:[%s6988_s12 + $0x70] sm:$0xff]   ;;  %v2472_v61 = vpop.f32.mrf.mxu3 }
 0x21f   : > { %9653 = vst [vmem:[#allocation61_spill] sm:$0xff] %v8000_v62  ;;  %v1918_v25 = vunpack.c.h.b16 %v7902_v8  ;;  %v1926_v3 = vunpack.c.h.b16 %v7942_v2  ;;  %v1867_v6 = vunpack.c.l.b16 %v1534_v35  ;;  %v1868_v46 = vunpack.c.h.b16 %v1534_v35  ;;  %v2561_v53 = vpop.f32.mrf.mxu2  ;;  %v9671_v62 = vld [vmem:[#allocation71_spill] sm:$0xff] }
 0x220   : > { %9654 = vst [vmem:[#allocation57_spill] sm:$0xff] %v8002_v60  ;;  %v1873_v0 = vunpack.c.l.b16 %v1537_v32  ;;  %v1874_v49 = vunpack.c.h.b16 %v1537_v32  ;;  %v8013_v24 = vunpack.c.h.bf16 %v7896_v51  ;;  %v8018_v63 = vadd.f32 %v2648_v39, %v2560_v41 }
 0x221   : > { %v1353_v54 = vsel %vm1296_vm4, %v1288_v9, %v1256_v17  ;;  %v9658_v23 = vrot.slane %v9625_v40, 7  ;;  %v2562_v32 = vadd.f32 %v2561_v53, %v2472_v61  ;;  %v1932_v51 = vunpack.c.h.b16 %v7998_v21 }
 0x222   : > { %9657 = vst [vmem:[#allocation52_spill] sm:$0xff] %v8018_v63  ;;  %v8028_v30 = vpack.c.b16 %v1873_v0, %v1867_v6  ;;  %v8030_v60 = vpack.c.b16 %v1874_v49, %v1868_v46  ;;  %v1388_v19 = vrot.slane %v1221_v16, 1  ;;  %v8035_v41 = vsel %vm1093_vm3, %v8008_v34, 0.0 }
 0x223   : > { %v1354_v35 = vsel %vm1296_vm4, %v1289_v57, %v9658_v23  ;;  %v1420_v39 = vrot.slane %v8008_v34, 1  ;;  %v9661_v56 = vunpack.c.l.b16 %v7909_v7  ;;  %v9662_v61 = vunpack.c.l.b16 %v7902_v8 }
 0x224   : > { %9659 = vst [vmem:[#allocation37_spill] sm:$0xff] %v8028_v30  ;;  %v8046_v6 = vunpack.c.l.bf16 %v8016_v4  ;;  %v9664_v16 = vunpack.c.h.b16 %v7909_v7  ;;  %v8052_v46 = vpack.c.bf16 %v1354_v35, %v1353_v54  ;;  %v1220_v49 = vsel %vm1162_vm1, %v7931_v33, 0.0 }
 0x225   : > { %9660 = vst [vmem:[#allocation38_spill] sm:$0xff] %v8030_v60  ;;  %v8043_v53 = vpack.c.b16 %v9662_v61, %v9661_v56  ;;  %v1321_v23 = vsel %vm1296_vm4, %v1256_v17, %v1288_v9  ;;  %v9666_v8 = vrot.slane %v9625_v40, 7  ;;  %v1387_v61 = vrot.slane %v1220_v49, 1 }
 0x226   : > { %v8050_v0 = vpack.c.b16 %v1918_v25, %v9664_v16  ;;  %v1419_v22 = vrot.slane %v8013_v24, 1  ;;  %v1201_v54 = vsel %vm1162_vm1, %v7596_v36, 0.0  ;;  %v8071_v17 = vpop.f32.mrf.mxu1  ;;  %v8073_v40 = vpack.c.b16 %v1932_v51, %v1926_v3  ;;  %v2650_v16 = vpop.f32.mrf.mxu0  ;;  %v9669_v3 = vld [vmem:[#allocation47_spill] sm:$0xff]  ;;  %v9670_v51 = vld [vmem:[#allocation48_spill] sm:$0xff] }
 0x227   : > { %9663 = vst [vmem:[#allocation96_spill] sm:$0xff] %v8043_v53  ;;  %v1322_v56 = vsel %vm1296_vm4, %v9666_v8, %v1289_v57  ;;  %2514 = vmatmul.bf16.gmra.mxu3 %v8043_v53  ;;  %v1453_v9 = vsel %vm1425_vm2, %v1388_v19, %v1420_v39  ;;  %v1485_v36 = vsel %vm1425_vm2, %v1420_v39, %v1388_v19  ;;  %v1923_v8 = vunpack.c.l.b16 %v8052_v46  ;;  %v2475_v63 = vpop.f32.mrf.mxu3  ;;  %v2564_v29 = vpop.f32.mrf.mxu2 }
 0x228   : > { %9665 = vst [vmem:[#allocation97_spill] sm:$0xff] %v8050_v0  ;;  %2603 = vmatmul.bf16.gmra.mxu2 %v8050_v0  ;;  %v1452_v57 = vsel %vm1425_vm2, %v1387_v61, %v1419_v22  ;;  %v1484_v35 = vsel %vm1425_vm2, %v1419_v22, %v1387_v61  ;;  %v1565_v49 = vpack.c.bf16 %v1322_v56, %v1321_v23  ;;  %v1410_v0 = vrot.slane %v9671_v62, 1  ;;  %v9673_v61 = vld [vmem:[#allocation70_spill] sm:$0xff] }
 0x229   : > { %9667 = vst [vmem:[#allocation98_spill] sm:$0xff] %v8071_v17  ;;  %v1570_v7 = vpack.c.bf16 %v1453_v9, %v1452_v57  ;;  %v1573_v25 = vpack.c.bf16 %v1485_v36, %v1484_v35  ;;  %v929_v53 = vadd.f32 %v9670_v51, %v9669_v3  ;;  %v1378_v17 = vrot.slane %v1201_v54, 1  ;;  %v9674_v57 = vld [vmem:[#allocation63_spill] sm:$0xff]  ;;  %v9675_v3 = vld [vmem:[#allocation45_spill] sm:$0xff] }
 0x22a   : > { %9668 = vst [vmem:[#allocation99_spill] sm:$0xff] %v8073_v40  ;;  %v8087_v28 = vadd.f32 %v2650_v16, %v2562_v32  ;;  %v2565_v22 = vadd.f32 %v2564_v29, %v2475_v63  ;;  %v1200_v19 = vsel %vm1162_vm1, %v9673_v61, 0.0  ;;  %v1409_v9 = vrot.slane %v9674_v57, 1 }
 0x22b   : > { %v1939_v39 = vunpack.c.l.b16 %v1570_v7  ;;  %v1945_v23 = vunpack.c.l.b16 %v1573_v25  ;;  %v1377_v56 = vrot.slane %v1200_v19, 1  ;;  %v1940_v35 = vunpack.c.h.b16 %v1570_v7 }
 0x22c   : > { %9672 = vst [vmem:[#allocation47_spill] sm:$0xff] %v8087_v28  ;;  %v1946_v36 = vunpack.c.h.b16 %v1573_v25  ;;  %v8096_v62 = vsel %vm1162_vm1, %v9675_v3, 0.0  ;;  %v1929_v54 = vunpack.c.l.b16 %v1565_v49  ;;  %v1152_v29 = vsel %vm1093_vm3, %v8013_v24, 0.0  ;;  %2786 = vmatmul.bf16.gmra.mxu1 %v8073_v40 }
 0x22d   : > { %v8101_v63 = vpack.c.b16 %v1945_v23, %v1939_v39  ;;  %v1442_v32 = vsel %vm1425_vm2, %v1377_v56, %v1409_v9  ;;  %v1443_v16 = vsel %vm1425_vm2, %v1378_v17, %v1410_v0  ;;  %v1474_v7 = vsel %vm1425_vm2, %v1409_v9, %v1377_v56  ;;  %v9678_v23 = vld [vmem:[#allocation49_spill] sm:$0xff] }
 0x22e   : > { %v1475_v25 = vsel %vm1425_vm2, %v1410_v0, %v1378_v17  ;;  %v8111_v51 = vpop.f32.mrf.mxu1  ;;  %v1924_v61 = vunpack.c.h.b16 %v8052_v46  ;;  %v1540_v19 = vpack.c.bf16 %v1443_v16, %v1442_v32  ;;  %v8114_v39 = vpack.c.b16 %v1946_v36, %v1940_v35  ;;  %v2653_v58 = vpop.f32.mrf.mxu0 }
 0x22f   : > { %9676 = vst [vmem:[#allocation48_spill] sm:$0xff] %v8101_v63  ;;  %v1543_v57 = vpack.c.bf16 %v1475_v25, %v1474_v7  ;;  %v8117_v63 = vadd.f32 %v9678_v23, %v929_v53  ;;  %v1930_v28 = vunpack.c.h.b16 %v1565_v49  ;;  %v1258_v50 = vrot.slane %v7931_v33, 7  ;;  %v2477_v35 = vpop.f32.mrf.mxu3  ;;  %v2566_v36 = vpop.f32.mrf.mxu2 }
 0x230   : > { %9677 = vst [vmem:[#allocation71_spill] sm:$0xff] %v8114_v39  ;;  %v1290_v52 = vrot.slane %v1152_v29, 7  ;;  %v1879_v56 = vunpack.c.l.b16 %v1540_v19  ;;  %v1880_v38 = vunpack.c.h.b16 %v1540_v19  ;;  %v8122_v17 = vpack.c.bf16 %v9655_v43, %v7931_v33  ;;  %v6209_v33 = vld [vmem:[#allocation3 + $0x78] sm:$0xff] }
 0x231   : > { %v1885_v9 = vunpack.c.l.b16 %v1543_v57  ;;  %v1886_v0 = vunpack.c.h.b16 %v1543_v57  ;;  %v8125_v46 = vunpack.c.h.bf16 %v8016_v4  ;;  %v8127_v53 = vadd.f32 %v2653_v58, %v2565_v22  ;;  %3485 = vmatpush.bf16.msrb.mxu1 %v6209_v33 }
 0x232   : > { %v9679_v49 = vunpack.c.l.b16 %v7523_v26  ;;  %v9680_v29 = vunpack.c.l.b16 %v7620_v59  ;;  %v2567_v16 = vadd.f32 %v2566_v36, %v2477_v35  ;;  %v1390_v19 = vrot.slane %v8096_v62, 1  ;;  %v6186_v36 = vld [vmem:[#allocation3 + $0x2c0] sm:$0xff] }
 0x233   : > { %v8137_v25 = vpack.c.b16 %v1885_v9, %v1879_v56  ;;  %v8139_v4 = vpack.c.b16 %v1886_v0, %v1880_v38  ;;  %v1422_v58 = vrot.slane %v8117_v63, 1  ;;  %v1323_v26 = vsel %vm1296_vm4, %v1258_v50, %v1290_v52  ;;  %2903 = vmatpush.bf16.msra.mxu2 %v6186_v36 }
 0x234   : > { %v8134_v32 = vpack.c.b16 %v9680_v29, %v9679_v49  ;;  %v9684_v59 = vrot.slane %v8035_v41, 7  ;;  %v9685_v22 = vrot.slane %v9655_v43, 7  ;;  %v8154_v38 = vpack.c.bf16 %v8008_v34, %v8013_v24  ;;  %v6178_v41 = vld [vmem:[#allocation3 + $0x280] sm:$0xff] }
 0x235   : > { %9682 = vst [vmem:[#allocation63_spill] sm:$0xff] %v8137_v25  ;;  %v8156_v23 = vpack.c.b16 %v1929_v54, %v1923_v8  ;;  %v8158_v62 = vpack.c.b16 %v1930_v28, %v1924_v61  ;;  %v1224_v56 = vsel %vm1162_vm1, %v8046_v6, 0.0  ;;  %v1355_v9 = vsel %vm1296_vm4, %v1290_v52, %v1258_v50  ;;  %v6208_v61 = vld [vmem:[#allocation3 + $0x70] sm:$0xff]  ;;  %2814 = vmatpush.bf16.msra.mxu3 %v6178_v41 }
 0x236   : > { %9681 = vst [vmem:[#allocation70_spill] sm:$0xff] %v8134_v32  ;;  %2692 = vmatmul.bf16.gmra.mxu0 %v8134_v32  ;;  %v1324_v57 = vsel %vm1296_vm4, %v9685_v22, %v9684_v59  ;;  %v9688_v0 = vmov %v9685_v22  ;;  %v9689_v35 = vmov %v9684_v59  ;;  %v1389_v24 = vrot.slane %v1224_v56, 1  ;;  %v8177_v54 = vpop.f32.mrf.mxu1  ;;  %v2655_v59 = vpop.f32.mrf.mxu0  ;;  %3486 = vmatpush.bf16.msrb.mxu1 %v6208_v61 }
 0x237   : > { %9683 = vst [vmem:[#allocation45_spill] sm:$0xff] %v8139_v4  ;;  %v1356_v34 = vsel %vm1296_vm4, %v9689_v35, %v9688_v0  ;;  %v1421_v8 = vrot.slane %v8125_v46, 1  ;;  %v1205_v28 = vsel %vm1162_vm1, %v7679_v55, 0.0  ;;  %2519 = vmatmul.bf16.gmra.mxu3 %v8156_v23  ;;  %v1938_v52 = vunpack.c.h.b16 %v8122_v17  ;;  %v6369_v0 = vld [vmem:[%s6988_s12 + $0x78] sm:$0xff]   ;;  %s247_s12 = sand.u32 1, %s6533_s19  }
 0x238   : > { %9686 = vst [vmem:[#allocation49_spill] sm:$0xff] %v8156_v23  ;;  %2608 = vmatmul.bf16.gmra.mxu2 %v8158_v62  ;;  %v8181_v43 = vpack.c.bf16 %v1324_v57, %v1323_v26  ;;  %v1455_v55 = vsel %vm1425_vm2, %v1390_v19, %v1422_v58  ;;  %v1487_v33 = vsel %vm1425_vm2, %v1422_v58, %v1390_v19  ;;  %v1944_v22 = vunpack.c.h.b16 %v8154_v38  ;;  %v9690_v35 = vld [vmem:[#allocation68_spill] sm:$0xff]  ;;  %v6207_v58 = vld [vmem:[#allocation3 + $0x68] sm:$0xff]  ;;  %s5214_s30 = sshll.u32 %s247_s12, 8  ;;  %s5107_s22 = scalar_lea.sflag [#allocation5], %s247_s12 }
 0x239   : > { %9687 = vst [vmem:[#allocation100_spill] sm:$0xff] %v8158_v62  ;;  %v1454_v49 = vsel %vm1425_vm2, %v1389_v24, %v1421_v8  ;;  %v1486_v29 = vsel %vm1425_vm2, %v1421_v8, %v1389_v24  ;;  %v8192_v26 = vpack.c.bf16 %v1356_v34, %v1355_v9  ;;  %v934_v50 = vadd.f32 %v9690_v35, %v7670_v14  ;;  %v2480_v24 = vpop.f32.mrf.mxu3  ;;  %v2569_v8 = vpop.f32.mrf.mxu2  ;;  %s8963_s6 = scalar_lea.vmem [#allocation6], %s5214_s30 }
 0x23a   : > { %v1576_v57 = vpack.c.bf16 %v1455_v55, %v1454_v49  ;;  %v1579_v56 = vpack.c.bf16 %v1487_v33, %v1486_v29  ;;  %v1380_v7 = vrot.slane %v1205_v28, 1  ;;  %v1412_v40 = vrot.slane %v7743_v47, 1  ;;  %3487 = vmatpush.bf16.msrb.mxu1 %v6207_v58  ;;  %s5119_s16 = sshll.u32 %s8963_s6, 4  ;;  %s5120_s16 = int_to_ptr.vmem [resolvable:$true] %s5119_s16 }
 0x23b   : > { %v8198_v32 = vadd.f32 %v2655_v59, %v2567_v16  ;;  %v2570_v19 = vadd.f32 %v2569_v8, %v2480_v24  ;;  %v1204_v9 = vsel %vm1162_vm1, %v7639_v20, 0.0  ;;  %v1411_v49 = vrot.slane %v7614_v48, 1  ;;  %v9693_v59 = vld [vmem:[#allocation55_spill] sm:$0xff] }
 0x23c   : > { %v1951_v34 = vunpack.c.l.b16 %v1576_v57  ;;  %v1957_v41 = vunpack.c.l.b16 %v1579_v56  ;;  %v1379_v61 = vrot.slane %v1204_v9, 1  ;;  %v1952_v14 = vunpack.c.h.b16 %v1576_v57  ;;  %v6206_v57 = vld [vmem:[#allocation3 + $0x60] sm:$0xff] }
 0x23d   : > { %v1958_v28 = vunpack.c.h.b16 %v1579_v56  ;;  %v8204_v55 = vunpack.c.l.bf16 %v6369_v0  ;;  %v8206_v47 = vpack.c.b16 %v1944_v22, %v1938_v52  ;;  %v1941_v16 = vunpack.c.l.b16 %v8181_v43 }
 0x23e   : > { %v8209_v36 = vpack.c.b16 %v1957_v41, %v1951_v34  ;;  %v1444_v29 = vsel %vm1425_vm2, %v1379_v61, %v1411_v49  ;;  %v1445_v20 = vsel %vm1425_vm2, %v1380_v7, %v1412_v40  ;;  %v1476_v48 = vsel %vm1425_vm2, %v1411_v49, %v1379_v61  ;;  %v8222_v22 = vpop.f32.mrf.mxu1  ;;  %3488 = vmatpush.bf16.msrb.mxu1 %v6206_v57 }
 0x23f   : > { %9691 = vst [vmem:[#allocation68_spill] sm:$0xff] %v8206_v47  ;;  %v1477_v33 = vsel %vm1425_vm2, %v1412_v40, %v1380_v7  ;;  %v1229_v52 = vsel %vm1162_vm1, %v9693_v59, 0.0  ;;  %v1546_v56 = vpack.c.bf16 %v1445_v20, %v1444_v29  ;;  %v8224_v24 = vpack.c.b16 %v1958_v28, %v1952_v14  ;;  %v2658_v7 = vpop.f32.mrf.mxu0  ;;  %2791 = vmatmul.bf16.gmra.mxu1 %v8206_v47  ;;  %v6203_v47 = vld [vmem:[#allocation3 + $0x48] sm:$0xff] }
 0x240   : > { %9692 = vst [vmem:[#allocation101_spill] sm:$0xff] %v8209_v36  ;;  %v1549_v35 = vpack.c.bf16 %v1477_v33, %v1476_v48  ;;  %v8227_v8 = vadd.f32 %v7676_v44, %v934_v50  ;;  %v1935_v58 = vunpack.c.l.b16 %v8192_v26  ;;  %v1936_v9 = vunpack.c.h.b16 %v8192_v26  ;;  %v6205_v48 = vld [vmem:[#allocation3 + $0x58] sm:$0xff] }
 0x241   : > { %9694 = vst [vmem:[#allocation55_spill] sm:$0xff] %v8224_v24  ;;  %v1942_v40 = vunpack.c.h.b16 %v8181_v43  ;;  %v1891_v34 = vunpack.c.l.b16 %v1546_v56  ;;  %v1892_v61 = vunpack.c.h.b16 %v1546_v56  ;;  %v8232_v36 = vunpack.c.h.bf16 %v6369_v0  ;;  %v2482_v29 = vpop.f32.mrf.mxu3  ;;  %v2571_v14 = vpop.f32.mrf.mxu2  ;;  %v6201_v56 = vld [vmem:[#allocation3 + $0x38] sm:$0xff]  ;;  %v6199_v24 = vld [vmem:[#allocation3 + $0x28] sm:$0xff] }
 0x242   : > { %v1897_v41 = vunpack.c.l.b16 %v1549_v35  ;;  %v1898_v49 = vunpack.c.h.b16 %v1549_v35  ;;  %v8234_v28 = vadd.f32 %v2658_v7, %v2570_v19  ;;  %v9695_v44 = vunpack.c.l.b16 %v7942_v2  ;;  %3489 = vmatpush.bf16.msrb.mxu1 %v6205_v48  ;;  %3401 = vmatpush.bf16.msrb.mxu0 %v6201_v56 }
 0x243   : > { %v9696_v50 = vunpack.c.l.b16 %v7998_v21  ;;  %v1156_v43 = vsel %vm1093_vm3, %v8125_v46, 0.0  ;;  %v1157_v0 = vsel %vm1093_vm3, %v8117_v63, 0.0  ;;  %v2572_v20 = vadd.f32 %v2571_v14, %v2482_v29 }
 0x244   : > { %v8249_v19 = vpack.c.b16 %v1897_v41, %v1891_v34  ;;  %v8251_v33 = vpack.c.b16 %v1898_v49, %v1892_v61  ;;  %v1392_v57 = vrot.slane %v1229_v52, 1  ;;  %v1424_v2 = vrot.slane %v8227_v8, 1 }
 0x245   : > { %v8241_v26 = vpack.c.b16 %v9696_v50, %v9695_v44  ;;  %v1260_v21 = vrot.slane %v8046_v6, 7  ;;  %v8256_v35 = vpack.c.b16 %v1941_v16, %v1935_v58  ;;  %v8258_v7 = vpack.c.b16 %v1942_v40, %v1936_v9  ;;  %v6204_v9 = vld [vmem:[#allocation3 + $0x50] sm:$0xff] }
 0x246   : > { %9698 = vst [vmem:[#allocation103_spill] sm:$0xff] %v8249_v19  ;;  %v1292_v44 = vrot.slane %v1156_v43, 7  ;;  %v1228_v34 = vsel %vm1162_vm1, %v8204_v55, 0.0  ;;  %v1261_v41 = vrot.slane %v9675_v3, 7  ;;  %v1293_v52 = vrot.slane %v1157_v0, 7  ;;  %v8275_v58 = vpop.f32.mrf.mxu1  ;;  %3490 = vmatpush.bf16.msrb.mxu1 %v6204_v9 }
 0x247   : > { %9697 = vst [vmem:[#allocation102_spill] sm:$0xff] %v8241_v26  ;;  %2697 = vmatmul.bf16.gmra.mxu0 %v8241_v26  ;;  %v1391_v61 = vrot.slane %v1228_v34, 1  ;;  %v1423_v49 = vrot.slane %v8232_v36, 1  ;;  %v8267_v29 = vpack.c.bf16 %v9675_v3, %v8046_v6  ;;  %v8271_v16 = vpack.c.bf16 %v8117_v63, %v8125_v46  ;;  %2524 = vmatmul.bf16.gmra.mxu3 %v8256_v35  ;;  %v2660_v63 = vpop.f32.mrf.mxu0 }
 0x248   : > { %9699 = vst [vmem:[#allocation104_spill] sm:$0xff] %v8251_v33  ;;  %2613 = vmatmul.bf16.gmra.mxu2 %v8258_v7  ;;  %v1457_v14 = vsel %vm1425_vm2, %v1392_v57, %v1424_v2  ;;  %v1489_v3 = vsel %vm1425_vm2, %v1424_v2, %v1392_v57  ;;  %v1325_v46 = vsel %vm1296_vm4, %v1260_v21, %v1292_v44 }
 0x249   : > { %9700 = vst [vmem:[#allocation105_spill] sm:$0xff] %v8256_v35  ;;  %v1456_v40 = vsel %vm1425_vm2, %v1391_v61, %v1423_v49  ;;  %v1488_v6 = vsel %vm1425_vm2, %v1423_v49, %v1391_v61  ;;  %v2485_v0 = vpop.f32.mrf.mxu3  ;;  %v2574_v48 = vpop.f32.mrf.mxu2  ;;  %v8287_v56 = vadd.f32 %v2660_v63, %v2572_v20  ;;  %v1326_v34 = vsel %vm1296_vm4, %v1261_v41, %v1293_v52  ;;  %v6200_v49 = vld [vmem:[#allocation3 + $0x30] sm:$0xff] }
 0x24a   : > { %9701 = vst [vmem:[#allocation106_spill] sm:$0xff] %v8258_v7  ;;  %v1582_v50 = vpack.c.bf16 %v1457_v14, %v1456_v40  ;;  %v1585_v43 = vpack.c.bf16 %v1489_v3, %v1488_v6  ;;  %v1357_v61 = vsel %vm1296_vm4, %v1292_v44, %v1260_v21  ;;  %v1358_v57 = vsel %vm1296_vm4, %v1293_v52, %v1261_v41 }
 0x24b   : > { %v2575_v2 = vadd.f32 %v2574_v48, %v2485_v0  ;;  %v1950_v14 = vunpack.c.h.b16 %v8267_v29  ;;  %v1956_v20 = vunpack.c.h.b16 %v8271_v16  ;;  %v1574_v3 = vpack.c.bf16 %v1358_v57, %v1357_v61  ;;  %3402 = vmatpush.bf16.msrb.mxu0 %v6200_v49  ;;  %3491 = vmatpush.bf16.msrb.mxu1 %v6203_v47 }
 0x24c   : > { %v1963_v26 = vunpack.c.l.b16 %v1582_v50  ;;  %v1969_v9 = vunpack.c.l.b16 %v1585_v43  ;;  %v1964_v40 = vunpack.c.h.b16 %v1582_v50  ;;  %v1970_v6 = vunpack.c.h.b16 %v1585_v43  ;;  %v6202_v50 = vld [vmem:[#allocation3 + $0x40] sm:$0xff] }
 0x24d   : > { %v1577_v63 = vpack.c.bf16 %v1326_v34, %v1325_v46  ;;  %v1937_v44 = vunpack.c.l.b16 %v8122_v17  ;;  %v1943_v41 = vunpack.c.l.b16 %v8154_v38  ;;  %v8305_v48 = vpack.c.b16 %v1956_v20, %v1950_v14 }
 0x24e   : > { %v8297_v21 = vpack.c.b16 %v1969_v9, %v1963_v26  ;;  %v8301_v52 = vpack.c.b16 %v1970_v6, %v1964_v40  ;;  %v8303_v0 = vpop.f32.mrf.mxu1  ;;  %v1947_v43 = vunpack.c.l.b16 %v1574_v3  ;;  %v1948_v46 = vunpack.c.h.b16 %v1574_v3  ;;  %v6198_v40 = vld [vmem:[#allocation3 + $0x20] sm:$0xff] }
 0x24f   : > { %9704 = vst [vmem:[#allocation109_spill] sm:$0xff] %v8305_v48  ;;  %v2663_v35 = vpop.f32.mrf.mxu0  ;;  %v1953_v61 = vunpack.c.l.b16 %v1577_v63  ;;  %v1954_v34 = vunpack.c.h.b16 %v1577_v63  ;;  %3403 = vmatpush.bf16.msrb.mxu0 %v6199_v24  ;;  %3492 = vmatpush.bf16.msrb.mxu1 %v6202_v50  ;;  %v1161_v17 = vsel %vm1093_vm3, %v8227_v8, 0.0  ;;  %v8313_v57 = vpack.c.b16 %v1943_v41, %v1937_v44  ;;  %v6217_v63 = vld [vmem:[#allocation3 + $0xb8] sm:$0xff] }
 0x250   : > { %9702 = vst [vmem:[#allocation107_spill] sm:$0xff] %v8297_v21  ;;  %v8310_v26 = vadd.f32 %v2663_v35, %v2575_v2  ;;  %2796 = vmatmul.bf16.gmra.mxu1 %v8305_v48  ;;  %v1160_v9 = vsel %vm1093_vm3, %v8232_v36, 0.0  ;;  %v1263_v24 = vrot.slane %v9693_v59, 7  ;;  %v1295_v14 = vrot.slane %v1161_v17, 7  ;;  %v6197_v35 = vld [vmem:[#allocation3 + $0x18] sm:$0xff]  ;;  %3569 = vmatpush.bf16.msrb.mxu3 %v6217_v63  ;;  %v6195_v63 = vld [vmem:[#allocation3 + $0x8] sm:$0xff] }
 0x251   : > { %9703 = vst [vmem:[#allocation108_spill] sm:$0xff] %v8301_v52  ;;  %v2487_v47 = vpop.f32.mrf.mxu3  ;;  %v2576_v38 = vpop.f32.mrf.mxu2  ;;  %v8320_v20 = vpack.c.b16 %v1953_v61, %v1947_v43  ;;  %v8322_v6 = vpack.c.b16 %v1954_v34, %v1948_v46  ;;  %v1262_v2 = vrot.slane %v8204_v55, 7  ;;  %v1294_v3 = vrot.slane %v1160_v9, 7  ;;  %v6225_v44 = vld [vmem:[#allocation3 + $0xf8] sm:$0xff] }
 0x252   : > { %9705 = vst [vmem:[#allocation110_spill] sm:$0xff] %v8313_v57  ;;  %v2577_v49 = vadd.f32 %v2576_v38, %v2487_v47  ;;  %v1581_v41 = vpack.c.bf16 %v9693_v59, %v8204_v55  ;;  %v1584_v50 = vpack.c.bf16 %v8227_v8, %v8232_v36  ;;  %v1328_v61 = vsel %vm1296_vm4, %v1263_v24, %v1295_v14  ;;  %v6196_v59 = vld [vmem:[#allocation3 + $0x10] sm:$0xff] }
 0x253   : > { %9706 = vst [vmem:[#allocation111_spill] sm:$0xff] %v8320_v20  ;;  %3404 = vmatpush.bf16.msrb.mxu0 %v6198_v40  ;;  %v1327_v47 = vsel %vm1296_vm4, %v1262_v2, %v1294_v3  ;;  %v1359_v38 = vsel %vm1296_vm4, %v1294_v3, %v1262_v2  ;;  %v1360_v55 = vsel %vm1296_vm4, %v1295_v14, %v1263_v24 }
 0x254   : > { %9707 = vst [vmem:[#allocation112_spill] sm:$0xff] %v8322_v6  ;;  %3653 = vmatpush.bf16.msrb.mxu2 %v6225_v44  ;;  %v1962_v8 = vunpack.c.h.b16 %v1581_v41  ;;  %v1968_v9 = vunpack.c.h.b16 %v1584_v50  ;;  %v1580_v40 = vpack.c.bf16 %v1360_v55, %v1359_v38 }
 0x256   : > { %v8327_v37 = vpop.f32.mrf.mxu1  ;;  %v1959_v45 = vunpack.c.l.b16 %v1580_v40  ;;  %v1960_v14 = vunpack.c.h.b16 %v1580_v40 }
 0x257   : > { %2702 = vmatmul.bf16.gmra.mxu0 %v8313_v57  ;;  %2529 = vmatmul.bf16.gmra.mxu3 %v8320_v20  ;;  %v2665_v43 = vpop.f32.mrf.mxu0  ;;  %v8347_v57 = vpack.c.b16 %v1968_v9, %v1962_v8 }
 0x258   : > { %2618 = vmatmul.bf16.gmra.mxu2 %v8322_v6  ;;  %3405 = vmatpush.bf16.msrb.mxu0 %v6197_v35  ;;  %v8335_v17 = vadd.f32 %v2665_v43, %v2577_v49  ;;  %v1583_v35 = vpack.c.bf16 %v1328_v61, %v1327_v47  ;;  %v1949_v49 = vunpack.c.l.b16 %v8267_v29  ;;  %v1955_v43 = vunpack.c.l.b16 %v8271_v16  ;;  %v6194_v16 = vld [vmem:[#allocation3] sm:$0xff] }
 0x259   : > { %v2490_v46 = vpop.f32.mrf.mxu3  ;;  %v2579_v34 = vpop.f32.mrf.mxu2  ;;  %9708 = vst [vmem:[#allocation113_spill] sm:$0xff] %v8347_v57 }
 0x25a   : > { %v2580_v36 = vadd.f32 %v2579_v34, %v2490_v46  ;;  %v1965_v24 = vunpack.c.l.b16 %v1583_v35  ;;  %v1966_v3 = vunpack.c.h.b16 %v1583_v35  ;;  %v8352_v61 = vpack.c.b16 %v1955_v43, %v1949_v49 }
 0x25b   : > { %v1961_v35 = vunpack.c.l.b16 %v1581_v41 }
 0x25c   : > { %3406 = vmatpush.bf16.msrb.mxu0 %v6196_v59  ;;  %9709 = vst [vmem:[#allocation114_spill] sm:$0xff] %v8352_v61  ;;  %v8355_v47 = vpack.c.b16 %v1965_v24, %v1959_v45  ;;  %v8357_v38 = vpack.c.b16 %v1966_v3, %v1960_v14  ;;  %v9712_v14 = vld [vmem:[#allocation12_spill] sm:$0xff] }
 0x25e   : > { %v8345_v48 = vpop.f32.mrf.mxu1  ;;  %9710 = vst [vmem:[#allocation115_spill] sm:$0xff] %v8355_v47 }
 0x25f   : > { %v2668_v2 = vpop.f32.mrf.mxu0  ;;  %9711 = vst [vmem:[#allocation116_spill] sm:$0xff] %v8357_v38 }
 0x260   : > { %3407 = vmatpush.bf16.msrb.mxu0 %v6195_v63  ;;  %v8349_v34 = vadd.f32 %v2668_v2, %v2580_v36  ;;  %2801 = vmatmul.bf16.gmra.mxu1 %v8347_v57  ;;  %v1967_v63 = vunpack.c.l.b16 %v1584_v50  ;;  %v6216_v50 = vld [vmem:[#allocation3 + $0xb0] sm:$0xff] }
 0x261   : > { %v2492_v44 = vpop.f32.mrf.mxu3  ;;  %v2581_v46 = vpop.f32.mrf.mxu2  ;;  %3570 = vmatpush.bf16.msrb.mxu3 %v6216_v50  ;;  %v9720_v57 = vld [vmem:[#allocation19_spill] sm:$0xff]  ;;  %v9721_v50 = vld [vmem:[#allocation20_spill] sm:$0xff] }
 0x262   : > { %v2582_v29 = vadd.f32 %v2581_v46, %v2492_v44  ;;  %v8370_v3 = vpack.c.b16 %v1967_v63, %v1961_v35  ;;  %v9714_v46 = vld [vmem:[#allocation13_spill] sm:$0xff] }
 0x264   : > { %3408 = vmatpush.bf16.msrb.mxu0 %v6194_v16  ;;  %9713 = vst [vmem:[#allocation12_spill] sm:$0xff] %v8370_v3  ;;  %v6224_v16 = vld [vmem:[#allocation3 + $0xf0] sm:$0xff] }
 0x265   : > { %3654 = vmatpush.bf16.msrb.mxu2 %v6224_v16 }
 0x266   : > { %v8361_v55 = vpop.f32.mrf.mxu1 }
 0x267   : > { %2707 = vmatmul.bf16.gmra.mxu0 %v8352_v61  ;;  %2534 = vmatmul.bf16.gmra.mxu3 %v8355_v47  ;;  %v2670_v36 = vpop.f32.mrf.mxu0 }
 0x268   : > { %2623 = vmatmul.bf16.gmra.mxu2 %v8357_v38  ;;  %v8363_v9 = vadd.f32 %v2670_v36, %v2582_v29  ;;  %v9715_v29 = vld [vmem:[#allocation14_spill] sm:$0xff] }
 0x269   : > { %v2495_v59 = vpop.f32.mrf.mxu3  ;;  %v2584_v8 = vpop.f32.mrf.mxu2  ;;  %v9718_v38 = vld [vmem:[#allocation18_spill] sm:$0xff] }
 0x26a   : > { %v2585_v40 = vadd.f32 %v2584_v8, %v2495_v59 }
 0x26e   : > { %v8365_v49 = vpop.f32.mrf.mxu1 }
 0x26f   : > { %v2673_v43 = vpop.f32.mrf.mxu0 }
 0x270   : > { %v8367_v24 = vadd.f32 %v2673_v43, %v2585_v40  ;;  %3493 = vmatmul.bf16.vlgmr.msrb.gmra.mxu1 %v9712_v14 }
 0x271   : > { %v2497_v2 = vpop.f32.mrf.mxu3  ;;  %v2586_v45 = vpop.f32.mrf.mxu2 }
 0x272   : > { %v2587_v44 = vadd.f32 %v2586_v45, %v2497_v2 }
 0x276   : > { %v8375_v41 = vpop.f32.mrf.mxu1 }
 0x277   : > { %2712 = vmatmul.bf16.gmra.mxu0 %v8370_v3  ;;  %2815 = vmatmul.bf16.vlgmr.msra.gmra.mxu3 %v9714_v46  ;;  %9716 = vst [vmem:[#allocation13_spill] sm:$0xff] %v8375_v41  ;;  %v2675_v36 = vpop.f32.mrf.mxu0  ;;  %v9719_v3 = vld [vmem:[#allocation11_spill] sm:$0xff]  ;;  %v9727_v41 = vld [vmem:[#allocation72_spill] sm:$0xff] }
 0x278   : > { %2904 = vmatmul.bf16.vlgmr.msra.gmra.mxu2 %v9715_v29  ;;  %v8377_v40 = vadd.f32 %v2675_v36, %v2587_v44 }
 0x279   : > { %v2500_v59 = vpop.f32.mrf.mxu3  ;;  %v2589_v8 = vpop.f32.mrf.mxu2 }
 0x27a   : > { %v2590_v35 = vadd.f32 %v2589_v8, %v2500_v59 }
 0x27e   : > { %v8379_v63 = vpop.f32.mrf.mxu1 }
 0x27f   : > { %9717 = vst [vmem:[#allocation14_spill] sm:$0xff] %v8379_v63  ;;  %v2678_v43 = vpop.f32.mrf.mxu0 }
 0x280   : > { %v8381_v14 = vadd.f32 %v2678_v43, %v2590_v35  ;;  %3498 = vmatmul.bf16.gmra.mxu1 %v9718_v38 }
 0x281   : > { %v2502_v2 = vpop.f32.mrf.mxu3  ;;  %v2591_v45 = vpop.f32.mrf.mxu2 }
 0x282   : > { %v2592_v47 = vadd.f32 %v2591_v45, %v2502_v2 }
 0x286   : > { %v8387_v16 = vpop.f32.mrf.mxu1 }
 0x287   : > { %3409 = vmatmul.bf16.vlgmr.msrb.gmra.mxu0 %v9719_v3  ;;  %2820 = vmatmul.bf16.gmra.mxu3 %v9720_v57  ;;  %9722 = vst [vmem:[#allocation11_spill] sm:$0xff] %v8387_v16  ;;  %v2680_v44 = vpop.f32.mrf.mxu0  ;;  %v9725_v3 = vld [vmem:[#allocation25_spill] sm:$0xff] }
 0x288   : > { %2909 = vmatmul.bf16.gmra.mxu2 %v9721_v50  ;;  %v8389_v8 = vadd.f32 %v2680_v44, %v2592_v47  ;;  %v9726_v57 = vld [vmem:[#allocation17_spill] sm:$0xff]  ;;  %v6215_v47 = vld [vmem:[#allocation3 + $0xa8] sm:$0xff] }
 0x289   : > { %v2505_v36 = vpop.f32.mrf.mxu3  ;;  %v2594_v59 = vpop.f32.mrf.mxu2  ;;  %v6223_v44 = vld [vmem:[#allocation3 + $0xe8] sm:$0xff]  ;;  %3571 = vmatpush.bf16.msrb.mxu3 %v6215_v47 }
 0x28a   : > { %v2595_v61 = vadd.f32 %v2594_v59, %v2505_v36  ;;  %3655 = vmatpush.bf16.msrb.mxu2 %v6223_v44 }
 0x28e   : > { %v8391_v63 = vpop.f32.mrf.mxu1 }
 0x28f   : > { %9723 = vst [vmem:[#allocation117_spill] sm:$0xff] %v8391_v63  ;;  %v2683_v35 = vpop.f32.mrf.mxu0 }
 0x290   : > { %v8393_v2 = vadd.f32 %v2683_v35, %v2595_v61  ;;  %3503 = vmatmul.bf16.gmra.mxu1 %v9725_v3 }
 0x291   : > { %v2507_v43 = vpop.f32.mrf.mxu3  ;;  %v2596_v38 = vpop.f32.mrf.mxu2 }
 0x292   : > { %9724 = vst [vmem:[#allocation118_spill] sm:$0xff] %v8393_v2  ;;  %v2597_v45 = vadd.f32 %v2596_v38, %v2507_v43  ;;  %v9730_v2 = vld [vmem:[#allocation30_spill] sm:$0xff] }
 0x296   : > { %v8399_v16 = vpop.f32.mrf.mxu1 }
 0x297   : > { %3414 = vmatmul.bf16.gmra.mxu0 %v9726_v57  ;;  %2825 = vmatmul.bf16.gmra.mxu3 %v9727_v41  ;;  %9728 = vst [vmem:[#allocation119_spill] sm:$0xff] %v8399_v16  ;;  %v2685_v36 = vpop.f32.mrf.mxu0 }
 0x298   : > { %2914 = vmatmul.bf16.gmra.mxu2 %v7682_v1  ;;  %v8401_v61 = vadd.f32 %v2685_v36, %v2597_v45  ;;  %v9731_v1 = vld [vmem:[#allocation24_spill] sm:$0xff] }
 0x299   : > { %v2510_v59 = vpop.f32.mrf.mxu3 }
 0x29a   : > { %v2599_v63 = vpop.f32.mrf.mxu2 }
 0x29b   : > { %v2600_v35 = vadd.f32 %v2599_v63, %v2510_v59 }
 0x29e   : > { %v8403_v3 = vpop.f32.mrf.mxu1 }
 0x29f   : > { %9729 = vst [vmem:[#allocation120_spill] sm:$0xff] %v8403_v3  ;;  %v2688_v38 = vpop.f32.mrf.mxu0 }
 0x2a0   : > { %v8405_v41 = vadd.f32 %v2688_v38, %v2600_v35  ;;  %3508 = vmatmul.bf16.gmra.mxu1 %v9730_v2 }
 0x2a1   : > { %v2512_v43 = vpop.f32.mrf.mxu3 }
 0x2a2   : > { %v2601_v57 = vpop.f32.mrf.mxu2 }
 0x2a3   : > { %v2602_v16 = vadd.f32 %v2601_v57, %v2512_v43  ;;  %v9735_v43 = vld [vmem:[#allocation36_spill] sm:$0xff] }
 0x2a6   : > { %v8411_v47 = vpop.f32.mrf.mxu1 }
 0x2a7   : > { %3419 = vmatmul.bf16.gmra.mxu0 %v9731_v1  ;;  %2830 = vmatmul.bf16.gmra.mxu3 %v7750_v5  ;;  %9732 = vst [vmem:[#allocation121_spill] sm:$0xff] %v8411_v47  ;;  %v2690_v45 = vpop.f32.mrf.mxu0  ;;  %v9736_v5 = vld [vmem:[#allocation29_spill] sm:$0xff] }
 0x2a8   : > { %2919 = vmatmul.bf16.gmra.mxu2 %v7752_v13  ;;  %v8413_v36 = vadd.f32 %v2690_v45, %v2602_v16  ;;  %v6214_v16 = vld [vmem:[#allocation3 + $0xa0] sm:$0xff] }
 0x2a9   : > { %v6222_v45 = vld [vmem:[#allocation3 + $0xe0] sm:$0xff]  ;;  %3572 = vmatpush.bf16.msrb.mxu3 %v6214_v16 }
 0x2aa   : > { %v2515_v63 = vpop.f32.mrf.mxu3  ;;  %3656 = vmatpush.bf16.msrb.mxu2 %v6222_v45 }
 0x2ab   : > { %v2604_v44 = vpop.f32.mrf.mxu2 }
 0x2ac   : > { %v2605_v59 = vadd.f32 %v2604_v44, %v2515_v63 }
 0x2ae   : > { %v8415_v3 = vpop.f32.mrf.mxu1 }
 0x2af   : > { %9733 = vst [vmem:[#allocation122_spill] sm:$0xff] %v8415_v3 }
 0x2b0   : > { %3513 = vmatmul.bf16.gmra.mxu1 %v9735_v43 }
 0x2b2   : > { %v2517_v38 = vpop.f32.mrf.mxu3 }
 0x2b3   : > { %v2693_v35 = vpop.f32.mrf.mxu0  ;;  %v2606_v2 = vpop.f32.mrf.mxu2 }
 0x2b4   : > { %v8417_v57 = vadd.f32 %v2693_v35, %v2605_v59  ;;  %v2607_v1 = vadd.f32 %v2606_v2, %v2517_v38 }
 0x2b6   : > { %9734 = vst [vmem:[#allocation123_spill] sm:$0xff] %v8417_v57  ;;  %v8423_v47 = vpop.f32.mrf.mxu1  ;;  %v9739_v57 = vld [vmem:[#allocation44_spill] sm:$0xff] }
 0x2b7   : > { %3424 = vmatmul.bf16.gmra.mxu0 %v9736_v5  ;;  %2835 = vmatmul.bf16.gmra.mxu3 %v7774_v10  ;;  %9737 = vst [vmem:[#allocation124_spill] sm:$0xff] %v8423_v47 }
 0x2b8   : > { %2924 = vmatmul.bf16.gmra.mxu2 %v7776_v15  ;;  %v9740_v15 = vld [vmem:[#allocation34_spill] sm:$0xff] }
 0x2ba   : > { %v2520_v44 = vpop.f32.mrf.mxu3 }
 0x2bb   : > { %v2695_v63 = vpop.f32.mrf.mxu0  ;;  %v2609_v3 = vpop.f32.mrf.mxu2 }
 0x2bc   : > { %v8425_v59 = vadd.f32 %v2695_v63, %v2607_v1  ;;  %v2610_v35 = vadd.f32 %v2609_v3, %v2520_v44 }
 0x2be   : > { %v8427_v43 = vpop.f32.mrf.mxu1 }
 0x2bf   : > { %9738 = vst [vmem:[#allocation125_spill] sm:$0xff] %v8427_v43 }
 0x2c0   : > { %3518 = vmatmul.bf16.gmra.mxu1 %v9739_v57 }
 0x2c2   : > { %v2522_v38 = vpop.f32.mrf.mxu3 }
 0x2c3   : > { %v2611_v5 = vpop.f32.mrf.mxu2 }
 0x2c4   : > { %v2698_v2 = vpop.f32.mrf.mxu0  ;;  %v2612_v47 = vadd.f32 %v2611_v5, %v2522_v38  ;;  %v9745_v38 = vld [vmem:[#allocation54_spill] sm:$0xff] }
 0x2c5   : > { %v8429_v10 = vadd.f32 %v2698_v2, %v2610_v35 }
 0x2c6   : > { %v8435_v16 = vpop.f32.mrf.mxu1 }
 0x2c7   : > { %3429 = vmatmul.bf16.gmra.mxu0 %v9740_v15  ;;  %2840 = vmatmul.bf16.gmra.mxu3 %v7827_v11  ;;  %9741 = vst [vmem:[#allocation126_spill] sm:$0xff] %v8435_v16  ;;  %v9746_v11 = vld [vmem:[#allocation43_spill] sm:$0xff] }
 0x2c8   : > { %2929 = vmatmul.bf16.gmra.mxu2 %v7829_v12 }
 0x2ca   : > { %v2525_v3 = vpop.f32.mrf.mxu3 }
 0x2cb   : > { %v2614_v45 = vpop.f32.mrf.mxu2 }
 0x2cc   : > { %v2700_v1 = vpop.f32.mrf.mxu0  ;;  %v2615_v44 = vadd.f32 %v2614_v45, %v2525_v3 }
 0x2cd   : > { %v8437_v63 = vadd.f32 %v2700_v1, %v2612_v47  ;;  %v6213_v47 = vld [vmem:[#allocation3 + $0x98] sm:$0xff] }
 0x2ce   : > { %v8439_v43 = vpop.f32.mrf.mxu1  ;;  %v6221_v1 = vld [vmem:[#allocation3 + $0xd8] sm:$0xff]  ;;  %3573 = vmatpush.bf16.msrb.mxu3 %v6213_v47 }
 0x2cf   : > { %9742 = vst [vmem:[#allocation127_spill] sm:$0xff] %v8437_v63  ;;  %3657 = vmatpush.bf16.msrb.mxu2 %v6221_v1  ;;  %v9761_v63 = vld [vmem:[#allocation88_spill] sm:$0xff] }
 0x2d0   : > { %9743 = vst [vmem:[#allocation128_spill] sm:$0xff] %v8439_v43  ;;  %3523 = vmatmul.bf16.gmra.mxu1 %v9745_v38 }
 0x2d2   : > { %v2527_v2 = vpop.f32.mrf.mxu3 }
 0x2d3   : > { %v2616_v57 = vpop.f32.mrf.mxu2 }
 0x2d4   : > { %v2703_v35 = vpop.f32.mrf.mxu0  ;;  %v2617_v15 = vadd.f32 %v2616_v57, %v2527_v2 }
 0x2d5   : > { %v8441_v5 = vadd.f32 %v2703_v35, %v2615_v44 }
 0x2d6   : > { %v8447_v16 = vpop.f32.mrf.mxu1 }
 0x2d7   : > { %9744 = vst [vmem:[#allocation129_spill] sm:$0xff] %v8441_v5  ;;  %3434 = vmatmul.bf16.gmra.mxu0 %v9746_v11  ;;  %2845 = vmatmul.bf16.gmra.mxu3 %v7911_v27  ;;  %v9751_v5 = vld [vmem:[#allocation67_spill] sm:$0xff] }
 0x2d8   : > { %2934 = vmatmul.bf16.gmra.mxu2 %v7913_v18  ;;  %9747 = vst [vmem:[#allocation130_spill] sm:$0xff] %v8447_v16  ;;  %v9752_v18 = vld [vmem:[#allocation53_spill] sm:$0xff] }
 0x2da   : > { %v2530_v45 = vpop.f32.mrf.mxu3 }
 0x2db   : > { %v2619_v43 = vpop.f32.mrf.mxu2 }
 0x2dc   : > { %v2705_v3 = vpop.f32.mrf.mxu0  ;;  %v2620_v35 = vadd.f32 %v2619_v43, %v2530_v45 }
 0x2dd   : > { %v8449_v44 = vadd.f32 %v2705_v3, %v2617_v15 }
 0x2de   : > { %v8451_v38 = vpop.f32.mrf.mxu1 }
 0x2df   : > { %9748 = vst [vmem:[#allocation131_spill] sm:$0xff] %v8449_v44 }
 0x2e0   : > { %9749 = vst [vmem:[#allocation132_spill] sm:$0xff] %v8451_v38  ;;  %3528 = vmatmul.bf16.gmra.mxu1 %v9751_v5 }
 0x2e2   : > { %v2532_v2 = vpop.f32.mrf.mxu3 }
 0x2e3   : > { %v2621_v11 = vpop.f32.mrf.mxu2 }
 0x2e4   : > { %v2708_v57 = vpop.f32.mrf.mxu0  ;;  %v2622_v16 = vadd.f32 %v2621_v11, %v2532_v2  ;;  %v9756_v2 = vld [vmem:[#allocation66_spill] sm:$0xff] }
 0x2e5   : > { %v8453_v27 = vadd.f32 %v2708_v57, %v2620_v35 }
 0x2e6   : > { %v8459_v47 = vpop.f32.mrf.mxu1 }
 0x2e7   : > { %9750 = vst [vmem:[#allocation133_spill] sm:$0xff] %v8453_v27  ;;  %3439 = vmatmul.bf16.gmra.mxu0 %v9752_v18  ;;  %2850 = vmatmul.bf16.gmra.mxu3 %v8028_v30 }
 0x2e8   : > { %2939 = vmatmul.bf16.gmra.mxu2 %v8030_v60  ;;  %9753 = vst [vmem:[#allocation134_spill] sm:$0xff] %v8459_v47  ;;  %v6212_v47 = vld [vmem:[#allocation3 + $0x90] sm:$0xff] }
 0x2e9   : > { %3574 = vmatpush.bf16.msrb.mxu3 %v6212_v47  ;;  %v9762_v47 = vld [vmem:[#allocation77_spill] sm:$0xff] }
 0x2ea   : > { %v2535_v43 = vpop.f32.mrf.mxu3 }
 0x2eb   : > { %v2624_v1 = vpop.f32.mrf.mxu2 }
 0x2ec   : > { %v2710_v15 = vpop.f32.mrf.mxu0  ;;  %v2625_v45 = vadd.f32 %v2624_v1, %v2535_v43  ;;  %v9757_v43 = vld [vmem:[#allocation73_spill] sm:$0xff] }
 0x2ed   : > { %v8461_v3 = vadd.f32 %v2710_v15, %v2622_v16  ;;  %v6220_v16 = vld [vmem:[#allocation3 + $0xd0] sm:$0xff]  ;;  %v2728_v1 = vadd.f32 %v9757_v43, %v7786_v42 }
 0x2ee   : > { %v3494_v38 = vpop.f32.mrf.mxu1  ;;  %3658 = vmatpush.bf16.msrb.mxu2 %v6220_v16  ;;  %v9764_v16 = vld [vmem:[#allocation31_spill] sm:$0xff] }
 0x2ef   : > { %9754 = vst [vmem:[#allocation135_spill] sm:$0xff] %v8461_v3 }
 0x2f0   : > { %3533 = vmatmul.bf16.gmra.mxu1 %v7695_v31 }
 0x2f2   : > { %v2537_v57 = vpop.f32.mrf.mxu3 }
 0x2f3   : > { %v2626_v27 = vpop.f32.mrf.mxu2 }
 0x2f4   : > { %v2713_v35 = vpop.f32.mrf.mxu0  ;;  %v2627_v11 = vadd.f32 %v2626_v27, %v2537_v57 }
 0x2f5   : > { %v8463_v5 = vadd.f32 %v2713_v35, %v2625_v45 }
 0x2f6   : > { %v3496_v18 = vpop.f32.mrf.mxu1 }
 0x2f7   : > { %9755 = vst [vmem:[#allocation136_spill] sm:$0xff] %v8463_v5  ;;  %3444 = vmatmul.bf16.gmra.mxu0 %v9756_v2  ;;  %2855 = vmatmul.bf16.gmra.mxu3 %v8137_v25  ;;  %v9759_v25 = vld [vmem:[#allocation59_spill] sm:$0xff] }
 0x2f8   : > { %2944 = vmatmul.bf16.gmra.mxu2 %v8139_v4  ;;  %v9760_v5 = vld [vmem:[#allocation79_spill] sm:$0xff] }
 0x2f9   : > { %v2730_v30 = vadd.f32 %v9760_v5, %v9759_v25 }
 0x2fa   : > { %v2816_v35 = vpop.f32.mrf.mxu3 }
 0x2fb   : > { %v2905_v31 = vpop.f32.mrf.mxu2  ;;  %v2817_v27 = vadd.f32 %v2816_v35, %v2728_v1 }
 0x2fc   : > { %v2715_v15 = vpop.f32.mrf.mxu0 }
 0x2fd   : > { %v8471_v45 = vadd.f32 %v2715_v15, %v2627_v11  ;;  %v8473_v57 = vadd.f32 %v2905_v31, %v2817_v27  ;;  %v9765_v15 = vld [vmem:[#allocation82_spill] sm:$0xff] }
 0x2fe   : > { %v3499_v2 = vpop.f32.mrf.mxu1  ;;  %v2733_v25 = vadd.f32 %v9765_v15, %v9764_v16  ;;  %v9772_v15 = vld [vmem:[#allocation87_spill] sm:$0xff] }
 0x2ff   : > { %9758 = vst [vmem:[#allocation73_spill] sm:$0xff] %v8473_v57 }
 0x300   : > { %3538 = vmatmul.bf16.gmra.mxu1 %v9761_v63 }
 0x302   : > { %v2818_v3 = vpop.f32.mrf.mxu3 }
 0x303   : > { %v2907_v60 = vpop.f32.mrf.mxu2  ;;  %v2819_v42 = vadd.f32 %v2818_v3, %v2730_v30  ;;  %v9768_v3 = vld [vmem:[#allocation35_spill] sm:$0xff] }
 0x304   : > { %v3410_v4 = vpop.f32.mrf.mxu0 }
 0x305   : > { %v8477_v44 = vadd.f32 %v3494_v38, %v3410_v4  ;;  %v8481_v11 = vadd.f32 %v2907_v60, %v2819_v42  ;;  %v9769_v60 = vld [vmem:[#allocation89_spill] sm:$0xff] }
 0x306   : > { %v3501_v31 = vpop.f32.mrf.mxu1  ;;  %v2735_v27 = vadd.f32 %v9769_v60, %v9768_v3  ;;  %v9777_v3 = vld [vmem:[#allocation23_spill] sm:$0xff] }
 0x307   : > { %3449 = vmatmul.bf16.gmra.mxu0 %v9762_v47  ;;  %9763 = vst [vmem:[#allocation59_spill] sm:$0xff] %v8481_v11  ;;  %2860 = vmatmul.bf16.gmra.mxu3 %v8249_v19  ;;  %v9771_v47 = vld [vmem:[#allocation94_spill] sm:$0xff] }
 0x308   : > { %2949 = vmatmul.bf16.gmra.mxu2 %v8251_v33 }
 0x30a   : > { %v2821_v43 = vpop.f32.mrf.mxu3 }
 0x30b   : > { %v2910_v1 = vpop.f32.mrf.mxu2  ;;  %v2822_v38 = vadd.f32 %v2821_v43, %v2733_v25  ;;  %v9775_v25 = vld [vmem:[#allocation42_spill] sm:$0xff] }
 0x30c   : > { %v3412_v5 = vpop.f32.mrf.mxu0  ;;  %v6211_v43 = vld [vmem:[#allocation3 + $0x88] sm:$0xff] }
 0x30d   : > { %v8487_v4 = vadd.f32 %v3496_v18, %v3412_v5  ;;  %v8489_v35 = vadd.f32 %v2910_v1, %v2822_v38  ;;  %v9774_v18 = vld [vmem:[#allocation46_spill] sm:$0xff]  ;;  %v9776_v38 = vld [vmem:[#allocation52_spill] sm:$0xff]  ;;  %3575 = vmatpush.bf16.msrb.mxu3 %v6211_v43 }
 0x30e   : > { %v3504_v30 = vpop.f32.mrf.mxu1  ;;  %v6219_v1 = vld [vmem:[#allocation3 + $0xc8] sm:$0xff]  ;;  %v2738_v60 = vadd.f32 %v9777_v3, %v9776_v38  ;;  %v9782_v38 = vld [vmem:[#allocation97_spill] sm:$0xff] }
 0x30f   : > { %9766 = vst [vmem:[#allocation79_spill] sm:$0xff] %v8487_v4  ;;  %3659 = vmatpush.bf16.msrb.mxu2 %v6219_v1  ;;  %v9783_v1 = vld [vmem:[#allocation93_spill] sm:$0xff] }
 0x310   : > { %9767 = vst [vmem:[#allocation31_spill] sm:$0xff] %v8489_v35  ;;  %3543 = vmatmul.bf16.gmra.mxu1 %v9771_v47  ;;  %v9779_v47 = vld [vmem:[#allocation47_spill] sm:$0xff] }
 0x312   : > { %v2823_v11 = vpop.f32.mrf.mxu3 }
 0x313   : > { %v2912_v57 = vpop.f32.mrf.mxu2  ;;  %v2824_v16 = vadd.f32 %v2823_v11, %v2735_v27 }
 0x314   : > { %v3415_v42 = vpop.f32.mrf.mxu0 }
 0x315   : > { %v8493_v63 = vadd.f32 %v3499_v2, %v3415_v42  ;;  %v8497_v19 = vadd.f32 %v2912_v57, %v2824_v16 }
 0x316   : > { %v3506_v5 = vpop.f32.mrf.mxu1 }
 0x317   : > { %9770 = vst [vmem:[#allocation82_spill] sm:$0xff] %v8493_v63  ;;  %3454 = vmatmul.bf16.gmra.mxu0 %v9772_v15  ;;  %2865 = vmatmul.bf16.gmra.mxu3 %v9774_v18  ;;  %v9780_v15 = vld [vmem:[#allocation56_spill] sm:$0xff] }
 0x318   : > { %9773 = vst [vmem:[#allocation35_spill] sm:$0xff] %v8497_v19  ;;  %2954 = vmatmul.bf16.gmra.mxu2 %v9775_v25  ;;  %v2740_v19 = vadd.f32 %v9780_v15, %v9779_v47  ;;  %v6240_v47 = vld [vmem:[#allocation3 + $0x170] sm:$0xff]  ;;  %v9787_v15 = vld [vmem:[#allocation61_spill] sm:$0xff] }
 0x31a   : > { %v2826_v2 = vpop.f32.mrf.mxu3 }
 0x31b   : > { %v2915_v42 = vpop.f32.mrf.mxu2  ;;  %v2827_v27 = vadd.f32 %v2826_v2, %v2738_v60  ;;  %v9786_v60 = vld [vmem:[#allocation58_spill] sm:$0xff] }
 0x31c   : > { %v3417_v35 = vpop.f32.mrf.mxu0 }
 0x31d   : > { %v8503_v11 = vadd.f32 %v3501_v31, %v3417_v35  ;;  %v8505_v57 = vadd.f32 %v2915_v42, %v2827_v27  ;;  %v6241_v31 = vld [vmem:[#allocation3 + $0x178] sm:$0xff]  ;;  %v2743_v42 = vadd.f32 %v9787_v15, %v8127_v53 }
 0x31e   : > { %v3509_v16 = vpop.f32.mrf.mxu1  ;;  %v9785_v35 = vld [vmem:[#allocation28_spill] sm:$0xff]  ;;  %3821 = vmatpush.bf16.msra.mxu1 %v6241_v31 }
 0x31f   : > { %9778 = vst [vmem:[#allocation89_spill] sm:$0xff] %v8505_v57  ;;  %v9790_v15 = vld [vmem:[#allocation96_spill] sm:$0xff] }
 0x320   : > { %3548 = vmatmul.bf16.gmra.mxu1 %v9782_v38 }
 0x322   : > { %v2828_v63 = vpop.f32.mrf.mxu3  ;;  %3822 = vmatpush.bf16.msra.mxu1 %v6240_v47 }
 0x323   : > { %v2917_v4 = vpop.f32.mrf.mxu2  ;;  %v2829_v43 = vadd.f32 %v2828_v63, %v2740_v19 }
 0x324   : > { %v3420_v18 = vpop.f32.mrf.mxu0 }
 0x325   : > { %v8509_v25 = vadd.f32 %v3504_v30, %v3420_v18  ;;  %v8513_v3 = vadd.f32 %v2917_v4, %v2829_v43  ;;  %v6239_v4 = vld [vmem:[#allocation3 + $0x168] sm:$0xff] }
 0x326   : > { %v3511_v2 = vpop.f32.mrf.mxu1  ;;  %3823 = vmatpush.bf16.msra.mxu1 %v6239_v4 }
 0x327   : > { %9781 = vst [vmem:[#allocation52_spill] sm:$0xff] %v8509_v25  ;;  %3459 = vmatmul.bf16.gmra.mxu0 %v9783_v1  ;;  %2870 = vmatmul.bf16.gmra.mxu3 %v9785_v35  ;;  %v6238_v1 = vld [vmem:[#allocation3 + $0x160] sm:$0xff] }
 0x328   : > { %9784 = vst [vmem:[#allocation23_spill] sm:$0xff] %v8513_v3  ;;  %2959 = vmatmul.bf16.gmra.mxu2 %v9786_v60  ;;  %v9789_v3 = vld [vmem:[#allocation98_spill] sm:$0xff] }
 0x329   : > { %v2745_v31 = vadd.f32 %v9789_v3, %v8198_v32  ;;  %v6210_v3 = vld [vmem:[#allocation3 + $0x80] sm:$0xff] }
 0x32a   : > { %v2831_v18 = vpop.f32.mrf.mxu3  ;;  %3824 = vmatpush.bf16.msra.mxu1 %v6238_v1  ;;  %3576 = vmatpush.bf16.msrb.mxu3 %v6210_v3 }
 0x32b   : > { %v2920_v27 = vpop.f32.mrf.mxu2  ;;  %v2832_v19 = vadd.f32 %v2831_v18, %v2743_v42  ;;  %v6237_v42 = vld [vmem:[#allocation3 + $0x158] sm:$0xff]  ;;  %v9792_v18 = vld [vmem:[#allocation39_spill] sm:$0xff] }
 0x32c   : > { %v3422_v30 = vpop.f32.mrf.mxu0 }
 0x32d   : > { %v8519_v38 = vadd.f32 %v3506_v5, %v3422_v30  ;;  %v8521_v63 = vadd.f32 %v2920_v27, %v2832_v19  ;;  %v6233_v30 = vld [vmem:[#allocation3 + $0x138] sm:$0xff]  ;;  %v9793_v27 = vld [vmem:[#allocation57_spill] sm:$0xff] }
 0x32e   : > { %v3514_v43 = vpop.f32.mrf.mxu1  ;;  %v6218_v19 = vld [vmem:[#allocation3 + $0xc0] sm:$0xff]  ;;  %3825 = vmatpush.bf16.msra.mxu1 %v6237_v42  ;;  %3737 = vmatpush.bf16.msra.mxu0 %v6233_v30  ;;  %v6231_v42 = vld [vmem:[#allocation3 + $0x128] sm:$0xff] }
 0x32f   : > { %9788 = vst [vmem:[#allocation47_spill] sm:$0xff] %v8521_v63  ;;  %3660 = vmatpush.bf16.msrb.mxu2 %v6218_v19  ;;  %v6234_v30 = vld [vmem:[#allocation3 + $0x140] sm:$0xff] }
 0x330   : > { %3553 = vmatmul.bf16.gmra.mxu1 %v8158_v62  ;;  %v6232_v62 = vld [vmem:[#allocation3 + $0x130] sm:$0xff] }
 0x332   : > { %v2833_v35 = vpop.f32.mrf.mxu3  ;;  %3738 = vmatpush.bf16.msra.mxu0 %v6232_v62  ;;  %v6230_v62 = vld [vmem:[#allocation3 + $0x120] sm:$0xff] }
 0x333   : > { %v2922_v25 = vpop.f32.mrf.mxu2  ;;  %v2834_v5 = vadd.f32 %v2833_v35, %v2745_v31 }
 0x334   : > { %v3425_v57 = vpop.f32.mrf.mxu0 }
 0x335   : > { %v8525_v53 = vadd.f32 %v3509_v16, %v3425_v57  ;;  %v8529_v47 = vadd.f32 %v2922_v25, %v2834_v5  ;;  %v6236_v57 = vld [vmem:[#allocation3 + $0x150] sm:$0xff]  ;;  %v2748_v16 = vadd.f32 %v8111_v51, %v8234_v28  ;;  %v2750_v51 = vadd.f32 %v8177_v54, %v8287_v56  ;;  %v6229_v56 = vld [vmem:[#allocation3 + $0x118] sm:$0xff] }
 0x336   : > { %v3516_v32 = vpop.f32.mrf.mxu1  ;;  %3826 = vmatpush.bf16.msra.mxu1 %v6236_v57  ;;  %3739 = vmatpush.bf16.msra.mxu0 %v6231_v42 }
 0x337   : > { %3464 = vmatmul.bf16.gmra.mxu0 %v9790_v15  ;;  %9791 = vst [vmem:[#allocation56_spill] sm:$0xff] %v8529_v47  ;;  %2875 = vmatmul.bf16.gmra.mxu3 %v9792_v18  ;;  %v6235_v15 = vld [vmem:[#allocation3 + $0x148] sm:$0xff] }
 0x338   : > { %2964 = vmatmul.bf16.gmra.mxu2 %v9793_v27 }
 0x33a   : > { %v2836_v25 = vpop.f32.mrf.mxu3  ;;  %3827 = vmatpush.bf16.msra.mxu1 %v6235_v15  ;;  %v9794_v15 = vld [vmem:[#allocation48_spill] sm:$0xff]  ;;  %3740 = vmatpush.bf16.msra.mxu0 %v6230_v62 }
 0x33b   : > { %v2925_v1 = vpop.f32.mrf.mxu2  ;;  %v2837_v31 = vadd.f32 %v2836_v25, %v2748_v16 }
 0x33c   : > { %v3427_v35 = vpop.f32.mrf.mxu0 }
 0x33d   : > { %v8535_v4 = vadd.f32 %v3511_v2, %v3427_v35  ;;  %v8537_v5 = vadd.f32 %v2925_v1, %v2837_v31 }
 0x33e   : > { %v3519_v47 = vpop.f32.mrf.mxu1  ;;  %3828 = vmatpush.bf16.msra.mxu1 %v6234_v30  ;;  %3741 = vmatpush.bf16.msra.mxu0 %v6229_v56  ;;  %v6228_v30 = vld [vmem:[#allocation3 + $0x110] sm:$0xff] }
 0x340   : > { %3558 = vmatmul.bf16.gmra.mxu1 %v8258_v7 }
 0x342   : > { %v2838_v3 = vpop.f32.mrf.mxu3  ;;  %3742 = vmatpush.bf16.msra.mxu0 %v6228_v30 }
 0x343   : > { %v2927_v19 = vpop.f32.mrf.mxu2  ;;  %v2839_v2 = vadd.f32 %v2838_v3, %v2750_v51 }
 0x344   : > { %v3430_v28 = vpop.f32.mrf.mxu0 }
 0x345   : > { %v8541_v63 = vadd.f32 %v3514_v43, %v3430_v28  ;;  %v8545_v57 = vadd.f32 %v2927_v19, %v2839_v2  ;;  %v2753_v43 = vadd.f32 %v8222_v22, %v8310_v26  ;;  %v2755_v28 = vadd.f32 %v8275_v58, %v8335_v17  ;;  %v6227_v19 = vld [vmem:[#allocation3 + $0x108] sm:$0xff]  ;;  %v6249_v17 = vld [vmem:[#allocation3 + $0x338] sm:$0xff] }
 0x346   : > { %v3521_v54 = vpop.f32.mrf.mxu1  ;;  %3743 = vmatpush.bf16.msra.mxu0 %v6227_v19  ;;  %4380 = vmatpush.bf16.msra.mxu3 %v6249_v17 }
 0x347   : > { %3469 = vmatmul.bf16.gmra.mxu0 %v8156_v23  ;;  %2880 = vmatmul.bf16.gmra.mxu3 %v9794_v15 }
 0x348   : > { %2969 = vmatmul.bf16.gmra.mxu2 %v8114_v39 }
 0x34a   : > { %v2841_v35 = vpop.f32.mrf.mxu3 }
 0x34b   : > { %v2930_v25 = vpop.f32.mrf.mxu2  ;;  %v2842_v31 = vadd.f32 %v2841_v35, %v2753_v43  ;;  %v6226_v43 = vld [vmem:[#allocation3 + $0x100] sm:$0xff]  ;;  %v9797_v35 = vld [vmem:[#allocation55_spill] sm:$0xff] }
 0x34c   : > { %v3432_v16 = vpop.f32.mrf.mxu0  ;;  %3744 = vmatpush.bf16.msra.mxu0 %v6226_v43 }
 0x34d   : > { %v8551_v1 = vadd.f32 %v3516_v32, %v3432_v16  ;;  %v8553_v42 = vadd.f32 %v2930_v25, %v2842_v31  ;;  %v9795_v32 = vld [vmem:[#allocation105_spill] sm:$0xff]  ;;  %v6257_v25 = vld [vmem:[#allocation3 + $0x378] sm:$0xff] }
 0x34e   : > { %v3524_v51 = vpop.f32.mrf.mxu1  ;;  %v9796_v16 = vld [vmem:[#allocation101_spill] sm:$0xff]  ;;  %4464 = vmatpush.bf16.msra.mxu2 %v6257_v25 }
 0x350   : > { %3563 = vmatmul.bf16.gmra.mxu1 %v8322_v6 }
 0x352   : > { %v2843_v2 = vpop.f32.mrf.mxu3 }
 0x353   : > { %v2932_v62 = vpop.f32.mrf.mxu2  ;;  %v2844_v26 = vadd.f32 %v2843_v2, %v2755_v28 }
 0x354   : > { %v3435_v3 = vpop.f32.mrf.mxu0 }
 0x355   : > { %v8557_v22 = vadd.f32 %v3519_v47, %v3435_v3  ;;  %v8561_v56 = vadd.f32 %v2932_v62, %v2844_v26  ;;  %v2758_v47 = vadd.f32 %v8303_v0, %v8349_v34  ;;  %v2760_v26 = vadd.f32 %v8327_v37, %v8363_v9 }
 0x356   : > { %v3526_v58 = vpop.f32.mrf.mxu1  ;;  %v2763_v37 = vadd.f32 %v8345_v48, %v8367_v24 }
 0x357   : > { %3474 = vmatmul.bf16.gmra.mxu0 %v9795_v32  ;;  %2885 = vmatmul.bf16.gmra.mxu3 %v9796_v16 }
 0x358   : > { %2974 = vmatmul.bf16.gmra.mxu2 %v9797_v35 }
 0x35a   : > { %v2846_v30 = vpop.f32.mrf.mxu3 }
 0x35b   : > { %v2935_v28 = vpop.f32.mrf.mxu2  ;;  %v2847_v19 = vadd.f32 %v2846_v30, %v2758_v47 }
 0x35c   : > { %v3437_v31 = vpop.f32.mrf.mxu0 }
 0x35d   : > { %v8567_v3 = vadd.f32 %v3521_v54, %v3437_v31  ;;  %v8569_v2 = vadd.f32 %v2935_v28, %v2847_v19  ;;  %v9802_v28 = vld [vmem:[#allocation9_spill] sm:$0xff]  ;;  %v9803_v19 = vld [vmem:[#allocation10_spill] sm:$0xff] }
 0x35e   : > { %v3529_v62 = vpop.f32.mrf.mxu1 }
 0x35f   : > { %9798 = vst [vmem:[#allocation61_spill] sm:$0xff] %v8569_v2  ;;  %v9867_v2 = vld [vmem:[#allocation45_spill] sm:$0xff] }
 0x360   : > { %3829 = vmatmul.bf16.vlgmr.msra.gmra.mxu1 %v9715_v29 }
 0x362   : > { %v2848_v7 = vpop.f32.mrf.mxu3 }
 0x363   : > { %v2937_v32 = vpop.f32.mrf.mxu2  ;;  %v2849_v0 = vadd.f32 %v2848_v7, %v2760_v26 }
 0x364   : > { %v3440_v6 = vpop.f32.mrf.mxu0 }
 0x365   : > { %v8573_v23 = vadd.f32 %v3524_v51, %v3440_v6  ;;  %v8577_v34 = vadd.f32 %v2937_v32, %v2849_v0  ;;  %v2765_v32 = vadd.f32 %v8361_v55, %v8377_v40  ;;  %v6256_v0 = vld [vmem:[#allocation3 + $0x370] sm:$0xff]  ;;  %v2768_v55 = vadd.f32 %v8365_v49, %v8381_v14 }
 0x366   : > { %v3531_v54 = vpop.f32.mrf.mxu1  ;;  %4465 = vmatpush.bf16.msra.mxu2 %v6256_v0  ;;  %v9807_v14 = vld [vmem:[#allocation19_spill] sm:$0xff] }
 0x367   : > { %3479 = vmatmul.bf16.gmra.mxu0 %v8320_v20  ;;  %9799 = vst [vmem:[#allocation98_spill] sm:$0xff] %v8577_v34  ;;  %2890 = vmatmul.bf16.gmra.mxu3 %v8297_v21 }
 0x368   : > { %2979 = vmatmul.bf16.gmra.mxu2 %v8301_v52 }
 0x36a   : > { %v2851_v43 = vpop.f32.mrf.mxu3 }
 0x36b   : > { %v2940_v17 = vpop.f32.mrf.mxu2  ;;  %v2852_v51 = vadd.f32 %v2851_v43, %v2763_v37 }
 0x36c   : > { %v3442_v9 = vpop.f32.mrf.mxu0 }
 0x36d   : > { %v8583_v6 = vadd.f32 %v3526_v58, %v3442_v9  ;;  %v8585_v29 = vadd.f32 %v2940_v17, %v2852_v51  ;;  %v6248_v58 = vld [vmem:[#allocation3 + $0x330] sm:$0xff]  ;;  %v9805_v51 = vld [vmem:[#allocation13_spill] sm:$0xff] }
 0x36e   : > { %v3534_v7 = vpop.f32.mrf.mxu1  ;;  %4381 = vmatpush.bf16.msra.mxu3 %v6248_v58  ;;  %v9806_v58 = vld [vmem:[#allocation76_spill] sm:$0xff] }
 0x36f   : > { %9800 = vst [vmem:[#allocation39_spill] sm:$0xff] %v8585_v29 }
 0x370   : > { %3834 = vmatmul.bf16.gmra.mxu1 %v9721_v50 }
 0x372   : > { %v2853_v47 = vpop.f32.mrf.mxu3 }
 0x373   : > { %v2942_v31 = vpop.f32.mrf.mxu2  ;;  %v2854_v48 = vadd.f32 %v2853_v47, %v2765_v32  ;;  %v2770_v32 = vadd.f32 %v9805_v51, %v8389_v8 }
 0x374   : > { %v3445_v25 = vpop.f32.mrf.mxu0 }
 0x375   : > { %v8589_v30 = vadd.f32 %v3529_v62, %v3445_v25  ;;  %v8593_v24 = vadd.f32 %v2942_v31, %v2854_v48 }
 0x376   : > { %v3536_v26 = vpop.f32.mrf.mxu1 }
 0x377   : > { %3745 = vmatmul.bf16.vlgmr.msra.gmra.mxu0 %v9714_v46  ;;  %9801 = vst [vmem:[#allocation48_spill] sm:$0xff] %v8593_v24  ;;  %3577 = vmatmul.bf16.vlgmr.msrb.gmra.mxu3 %v9802_v28 }
 0x378   : > { %3661 = vmatmul.bf16.vlgmr.msrb.gmra.mxu2 %v9803_v19  ;;  %v9810_v19 = vld [vmem:[#allocation15_spill] sm:$0xff] }
 0x37a   : > { %v2856_v62 = vpop.f32.mrf.mxu3 }
 0x37b   : > { %v2945_v37 = vpop.f32.mrf.mxu2  ;;  %v2857_v46 = vadd.f32 %v2856_v62, %v2768_v55  ;;  %v9811_v55 = vld [vmem:[#allocation118_spill] sm:$0xff] }
 0x37c   : > { %v3447_v40 = vpop.f32.mrf.mxu0 }
 0x37d   : > { %v8599_v9 = vadd.f32 %v3531_v54, %v3447_v40  ;;  %v8601_v43 = vadd.f32 %v2945_v37, %v2857_v46  ;;  %v9809_v54 = vld [vmem:[#allocation16_spill] sm:$0xff]  ;;  %v9812_v40 = vld [vmem:[#allocation14_spill] sm:$0xff] }
 0x37e   : > { %v3539_v17 = vpop.f32.mrf.mxu1  ;;  %v2773_v8 = vadd.f32 %v9812_v40, %v9811_v55  ;;  %v9815_v40 = vld [vmem:[#allocation72_spill] sm:$0xff] }
 0x37f   : > { %9804 = vst [vmem:[#allocation101_spill] sm:$0xff] %v8601_v43 }
 0x380   : > { %3839 = vmatmul.bf16.gmra.mxu1 %v9806_v58 }
 0x382   : > { %v2858_v47 = vpop.f32.mrf.mxu3 }
 0x383   : > { %v2947_v31 = vpop.f32.mrf.mxu2  ;;  %v2859_v49 = vadd.f32 %v2858_v47, %v2770_v32  ;;  %v9814_v47 = vld [vmem:[#allocation11_spill] sm:$0xff] }
 0x384   : > { %v3450_v25 = vpop.f32.mrf.mxu0 }
 0x385   : > { %v8605_v48 = vadd.f32 %v3534_v7, %v3450_v25  ;;  %v8609_v28 = vadd.f32 %v2947_v31, %v2859_v49  ;;  %v2775_v31 = vadd.f32 %v9814_v47, %v8401_v61  ;;  %v9819_v61 = vld [vmem:[#allocation117_spill] sm:$0xff] }
 0x386   : > { %v3541_v0 = vpop.f32.mrf.mxu1 }
 0x387   : > { %3750 = vmatmul.bf16.gmra.mxu0 %v9807_v14  ;;  %9808 = vst [vmem:[#allocation9_spill] sm:$0xff] %v8609_v28  ;;  %3582 = vmatmul.bf16.gmra.mxu3 %v9809_v54 }
 0x388   : > { %3666 = vmatmul.bf16.gmra.mxu2 %v9810_v19 }
 0x38a   : > { %v2861_v37 = vpop.f32.mrf.mxu3 }
 0x38b   : > { %v2950_v46 = vpop.f32.mrf.mxu2  ;;  %v2862_v51 = vadd.f32 %v2861_v37, %v2773_v8  ;;  %v6255_v8 = vld [vmem:[#allocation3 + $0x368] sm:$0xff]  ;;  %v9818_v37 = vld [vmem:[#allocation21_spill] sm:$0xff] }
 0x38c   : > { %v3452_v62 = vpop.f32.mrf.mxu0  ;;  %4466 = vmatpush.bf16.msra.mxu2 %v6255_v8  ;;  %v9822_v8 = vld [vmem:[#allocation86_spill] sm:$0xff] }
 0x38d   : > { %v8615_v7 = vadd.f32 %v3536_v26, %v3452_v62  ;;  %v8617_v25 = vadd.f32 %v2950_v46, %v2862_v51  ;;  %v6247_v26 = vld [vmem:[#allocation3 + $0x328] sm:$0xff] }
 0x38e   : > { %v3544_v32 = vpop.f32.mrf.mxu1  ;;  %v9817_v62 = vld [vmem:[#allocation22_spill] sm:$0xff]  ;;  %4382 = vmatpush.bf16.msra.mxu3 %v6247_v26 }
 0x38f   : > { %9813 = vst [vmem:[#allocation10_spill] sm:$0xff] %v8617_v25 }
 0x390   : > { %3844 = vmatmul.bf16.gmra.mxu1 %v7752_v13  ;;  %v9821_v13 = vld [vmem:[#allocation119_spill] sm:$0xff] }
 0x392   : > { %v2863_v52 = vpop.f32.mrf.mxu3 }
 0x393   : > { %v2952_v21 = vpop.f32.mrf.mxu2  ;;  %v2864_v55 = vadd.f32 %v2863_v52, %v2775_v31 }
 0x394   : > { %v3455_v49 = vpop.f32.mrf.mxu0 }
 0x395   : > { %v8621_v58 = vadd.f32 %v3539_v17, %v3455_v49  ;;  %v8625_v50 = vadd.f32 %v2952_v21, %v2864_v55  ;;  %v2778_v17 = vadd.f32 %v9819_v61, %v8405_v41  ;;  %v9823_v61 = vld [vmem:[#allocation80_spill] sm:$0xff] }
 0x396   : > { %v3546_v46 = vpop.f32.mrf.mxu1 }
 0x397   : > { %3755 = vmatmul.bf16.gmra.mxu0 %v9815_v40  ;;  %9816 = vst [vmem:[#allocation13_spill] sm:$0xff] %v8625_v50  ;;  %3587 = vmatmul.bf16.gmra.mxu3 %v9817_v62  ;;  %v2780_v40 = vadd.f32 %v9821_v13, %v8413_v36 }
 0x398   : > { %3671 = vmatmul.bf16.gmra.mxu2 %v9818_v37 }
 0x39a   : > { %v2866_v47 = vpop.f32.mrf.mxu3 }
 0x39b   : > { %v2955_v49 = vpop.f32.mrf.mxu2  ;;  %v2867_v31 = vadd.f32 %v2866_v47, %v2778_v17  ;;  %v9826_v17 = vld [vmem:[#allocation26_spill] sm:$0xff]  ;;  %v9827_v47 = vld [vmem:[#allocation123_spill] sm:$0xff] }
 0x39c   : > { %v3457_v51 = vpop.f32.mrf.mxu0 }
 0x39d   : > { %v8631_v52 = vadd.f32 %v3541_v0, %v3457_v51  ;;  %v8633_v21 = vadd.f32 %v2955_v49, %v2867_v31  ;;  %v9825_v0 = vld [vmem:[#allocation27_spill] sm:$0xff]  ;;  %v9828_v49 = vld [vmem:[#allocation120_spill] sm:$0xff] }
 0x39e   : > { %v3549_v55 = vpop.f32.mrf.mxu1  ;;  %v2783_v13 = vadd.f32 %v9828_v49, %v9827_v47  ;;  %v9833_v49 = vld [vmem:[#allocation85_spill] sm:$0xff] }
 0x39f   : > { %9820 = vst [vmem:[#allocation16_spill] sm:$0xff] %v8633_v21 }
 0x3a0   : > { %3849 = vmatmul.bf16.gmra.mxu1 %v9822_v8 }
 0x3a2   : > { %v2868_v20 = vpop.f32.mrf.mxu3 }
 0x3a3   : > { %v2957_v50 = vpop.f32.mrf.mxu2  ;;  %v2869_v41 = vadd.f32 %v2868_v20, %v2780_v40  ;;  %v6246_v40 = vld [vmem:[#allocation3 + $0x320] sm:$0xff] }
 0x3a4   : > { %v3460_v14 = vpop.f32.mrf.mxu0  ;;  %4383 = vmatpush.bf16.msra.mxu3 %v6246_v40 }
 0x3a5   : > { %v8637_v26 = vadd.f32 %v3544_v32, %v3460_v14  ;;  %v8641_v25 = vadd.f32 %v2957_v50, %v2869_v41  ;;  %v9831_v50 = vld [vmem:[#allocation121_spill] sm:$0xff] }
 0x3a6   : > { %v3551_v51 = vpop.f32.mrf.mxu1  ;;  %v2785_v41 = vadd.f32 %v9831_v50, %v8425_v59  ;;  %v9837_v59 = vld [vmem:[#allocation122_spill] sm:$0xff] }
 0x3a7   : > { %3760 = vmatmul.bf16.gmra.mxu0 %v9823_v61  ;;  %9824 = vst [vmem:[#allocation15_spill] sm:$0xff] %v8641_v25  ;;  %3592 = vmatmul.bf16.gmra.mxu3 %v9825_v0 }
 0x3a8   : > { %3676 = vmatmul.bf16.gmra.mxu2 %v9826_v17 }
 0x3aa   : > { %v2871_v31 = vpop.f32.mrf.mxu3 }
 0x3ab   : > { %v2960_v21 = vpop.f32.mrf.mxu2  ;;  %v2872_v32 = vadd.f32 %v2871_v31, %v2783_v13  ;;  %v9835_v13 = vld [vmem:[#allocation33_spill] sm:$0xff] }
 0x3ac   : > { %v3462_v36 = vpop.f32.mrf.mxu0 }
 0x3ad   : > { %v8647_v14 = vadd.f32 %v3546_v46, %v3462_v36  ;;  %v8649_v8 = vadd.f32 %v2960_v21, %v2872_v32  ;;  %v6254_v21 = vld [vmem:[#allocation3 + $0x360] sm:$0xff]  ;;  %v9836_v36 = vld [vmem:[#allocation32_spill] sm:$0xff]  ;;  %v2788_v32 = vadd.f32 %v9837_v59, %v8429_v10  ;;  %v9844_v59 = vld [vmem:[#allocation90_spill] sm:$0xff] }
 0x3ae   : > { %v3554_v20 = vpop.f32.mrf.mxu1  ;;  %4467 = vmatpush.bf16.msra.mxu2 %v6254_v21  ;;  %v9843_v21 = vld [vmem:[#allocation92_spill] sm:$0xff] }
 0x3af   : > { %9829 = vst [vmem:[#allocation118_spill] sm:$0xff] %v8647_v14 }
 0x3b0   : > { %9830 = vst [vmem:[#allocation14_spill] sm:$0xff] %v8649_v8  ;;  %3854 = vmatmul.bf16.gmra.mxu1 %v7829_v12  ;;  %v9841_v12 = vld [vmem:[#allocation124_spill] sm:$0xff] }
 0x3b2   : > { %v2873_v25 = vpop.f32.mrf.mxu3 }
 0x3b3   : > { %v2962_v28 = vpop.f32.mrf.mxu2  ;;  %v2874_v47 = vadd.f32 %v2873_v25, %v2785_v41 }
 0x3b4   : > { %v3465_v61 = vpop.f32.mrf.mxu0 }
 0x3b5   : > { %v8653_v43 = vadd.f32 %v3549_v55, %v3465_v61  ;;  %v8657_v46 = vadd.f32 %v2962_v28, %v2874_v47  ;;  %v9840_v47 = vld [vmem:[#allocation127_spill] sm:$0xff] }
 0x3b6   : > { %v3556_v31 = vpop.f32.mrf.mxu1 }
 0x3b7   : > { %9832 = vst [vmem:[#allocation11_spill] sm:$0xff] %v8653_v43  ;;  %3765 = vmatmul.bf16.gmra.mxu0 %v9833_v49  ;;  %3597 = vmatmul.bf16.gmra.mxu3 %v9835_v13  ;;  %v2790_v49 = vadd.f32 %v9841_v12, %v9840_v47 }
 0x3b8   : > { %9834 = vst [vmem:[#allocation22_spill] sm:$0xff] %v8657_v46  ;;  %3681 = vmatmul.bf16.gmra.mxu2 %v9836_v36 }
 0x3ba   : > { %v2876_v55 = vpop.f32.mrf.mxu3 }
 0x3bb   : > { %v2965_v61 = vpop.f32.mrf.mxu2  ;;  %v2877_v25 = vadd.f32 %v2876_v55, %v2788_v32  ;;  %v9847_v32 = vld [vmem:[#allocation40_spill] sm:$0xff]  ;;  %v9848_v55 = vld [vmem:[#allocation129_spill] sm:$0xff] }
 0x3bc   : > { %v3467_v40 = vpop.f32.mrf.mxu0 }
 0x3bd   : > { %v8663_v50 = vadd.f32 %v3551_v51, %v3467_v40  ;;  %v8665_v41 = vadd.f32 %v2965_v61, %v2877_v25  ;;  %v9846_v51 = vld [vmem:[#allocation41_spill] sm:$0xff] }
 0x3be   : > { %v3559_v28 = vpop.f32.mrf.mxu1  ;;  %v9849_v61 = vld [vmem:[#allocation125_spill] sm:$0xff] }
 0x3bf   : > { %9838 = vst [vmem:[#allocation21_spill] sm:$0xff] %v8663_v50  ;;  %v2793_v12 = vadd.f32 %v9849_v61, %v9848_v55  ;;  %v9855_v61 = vld [vmem:[#allocation38_spill] sm:$0xff] }
 0x3c0   : > { %9839 = vst [vmem:[#allocation117_spill] sm:$0xff] %v8665_v41  ;;  %3859 = vmatmul.bf16.gmra.mxu1 %v9843_v21 }
 0x3c2   : > { %v2878_v8 = vpop.f32.mrf.mxu3 }
 0x3c3   : > { %v2967_v24 = vpop.f32.mrf.mxu2  ;;  %v2879_v10 = vadd.f32 %v2878_v8, %v2790_v49  ;;  %v6245_v8 = vld [vmem:[#allocation3 + $0x318] sm:$0xff] }
 0x3c4   : > { %v3470_v46 = vpop.f32.mrf.mxu0  ;;  %4384 = vmatpush.bf16.msra.mxu3 %v6245_v8  ;;  %v9860_v8 = vld [vmem:[#allocation133_spill] sm:$0xff] }
 0x3c5   : > { %v8669_v29 = vadd.f32 %v3554_v20, %v3470_v46  ;;  %v8673_v34 = vadd.f32 %v2967_v24, %v2879_v10  ;;  %v6253_v24 = vld [vmem:[#allocation3 + $0x358] sm:$0xff]  ;;  %v9852_v10 = vld [vmem:[#allocation131_spill] sm:$0xff] }
 0x3c6   : > { %v3561_v40 = vpop.f32.mrf.mxu1  ;;  %4468 = vmatpush.bf16.msra.mxu2 %v6253_v24 }
 0x3c7   : > { %9842 = vst [vmem:[#allocation119_spill] sm:$0xff] %v8669_v29  ;;  %3770 = vmatmul.bf16.gmra.mxu0 %v9844_v59  ;;  %3602 = vmatmul.bf16.gmra.mxu3 %v9846_v51  ;;  %v9853_v59 = vld [vmem:[#allocation126_spill] sm:$0xff] }
 0x3c8   : > { %9845 = vst [vmem:[#allocation27_spill] sm:$0xff] %v8673_v34  ;;  %3686 = vmatmul.bf16.gmra.mxu2 %v9847_v32  ;;  %v2795_v34 = vadd.f32 %v9853_v59, %v9852_v10  ;;  %v9861_v59 = vld [vmem:[#allocation128_spill] sm:$0xff] }
 0x3c9   : > { %v2798_v10 = vadd.f32 %v9861_v59, %v9860_v8  ;;  %v9868_v59 = vld [vmem:[#allocation37_spill] sm:$0xff] }
 0x3ca   : > { %v2881_v47 = vpop.f32.mrf.mxu3 }
 0x3cb   : > { %v2970_v41 = vpop.f32.mrf.mxu2  ;;  %v2882_v46 = vadd.f32 %v2881_v47, %v2793_v12  ;;  %v9858_v12 = vld [vmem:[#allocation51_spill] sm:$0xff]  ;;  %v9859_v47 = vld [vmem:[#allocation50_spill] sm:$0xff] }
 0x3cc   : > { %v3472_v25 = vpop.f32.mrf.mxu0 }
 0x3cd   : > { %v8679_v20 = vadd.f32 %v3556_v31, %v3472_v25  ;;  %v8681_v21 = vadd.f32 %v2970_v41, %v2882_v46  ;;  %v9856_v25 = vld [vmem:[#allocation60_spill] sm:$0xff] }
 0x3ce   : > { %v3564_v49 = vpop.f32.mrf.mxu1 }
 0x3cf   : > { %9850 = vst [vmem:[#allocation26_spill] sm:$0xff] %v8679_v20 }
 0x3d0   : > { %9851 = vst [vmem:[#allocation123_spill] sm:$0xff] %v8681_v21  ;;  %3864 = vmatmul.bf16.gmra.mxu1 %v9855_v61 }
 0x3d2   : > { %v2883_v50 = vpop.f32.mrf.mxu3 }
 0x3d3   : > { %v2972_v43 = vpop.f32.mrf.mxu2  ;;  %v2884_v31 = vadd.f32 %v2883_v50, %v2795_v34  ;;  %v9864_v50 = vld [vmem:[#allocation135_spill] sm:$0xff] }
 0x3d4   : > { %v3475_v29 = vpop.f32.mrf.mxu0 }
 0x3d5   : > { %v8685_v55 = vadd.f32 %v3559_v28, %v3475_v29  ;;  %v8689_v41 = vadd.f32 %v2972_v43, %v2884_v31  ;;  %v9865_v43 = vld [vmem:[#allocation130_spill] sm:$0xff] }
 0x3d6   : > { %v3566_v46 = vpop.f32.mrf.mxu1  ;;  %v2800_v31 = vadd.f32 %v9865_v43, %v9864_v50 }
 0x3d7   : > { %9854 = vst [vmem:[#allocation120_spill] sm:$0xff] %v8685_v55  ;;  %3775 = vmatmul.bf16.gmra.mxu0 %v9856_v25  ;;  %3607 = vmatmul.bf16.gmra.mxu3 %v9858_v12 }
 0x3d8   : > { %9857 = vst [vmem:[#allocation121_spill] sm:$0xff] %v8689_v41  ;;  %3691 = vmatmul.bf16.gmra.mxu2 %v9859_v47 }
 0x3da   : > { %v2886_v21 = vpop.f32.mrf.mxu3 }
 0x3db   : > { %v2975_v20 = vpop.f32.mrf.mxu2  ;;  %v2887_v28 = vadd.f32 %v2886_v21, %v2798_v10  ;;  %v9871_v21 = vld [vmem:[#allocation62_spill] sm:$0xff]  ;;  %v9872_v10 = vld [vmem:[#allocation136_spill] sm:$0xff] }
 0x3dc   : > { %v3477_v24 = vpop.f32.mrf.mxu0 }
 0x3dd   : > { %v8695_v29 = vadd.f32 %v3561_v40, %v3477_v24  ;;  %v8697_v61 = vadd.f32 %v2975_v20, %v2887_v28  ;;  %v9870_v40 = vld [vmem:[#allocation64_spill] sm:$0xff] }
 0x3de   : > { %v3830_v34 = vpop.f32.mrf.mxu1  ;;  %v9873_v24 = vld [vmem:[#allocation132_spill] sm:$0xff] }
 0x3df   : > { %9862 = vst [vmem:[#allocation33_spill] sm:$0xff] %v8695_v29  ;;  %v2803_v28 = vadd.f32 %v9873_v24, %v9872_v10  ;;  %v9877_v24 = vld [vmem:[#allocation63_spill] sm:$0xff] }
 0x3e0   : > { %9863 = vst [vmem:[#allocation32_spill] sm:$0xff] %v8697_v61  ;;  %3869 = vmatmul.bf16.gmra.mxu1 %v9867_v2 }
 0x3e2   : > { %v2888_v41 = vpop.f32.mrf.mxu3 }
 0x3e3   : > { %v2977_v55 = vpop.f32.mrf.mxu2  ;;  %v2889_v8 = vadd.f32 %v2888_v41, %v2800_v31 }
 0x3e4   : > { %v3480_v25 = vpop.f32.mrf.mxu0 }
 0x3e5   : > { %v8701_v12 = vadd.f32 %v3564_v49, %v3480_v25  ;;  %v8705_v51 = vadd.f32 %v2977_v55, %v2889_v8  ;;  %v9876_v55 = vld [vmem:[#allocation134_spill] sm:$0xff] }
 0x3e6   : > { %v3832_v20 = vpop.f32.mrf.mxu1  ;;  %v2805_v31 = vadd.f32 %v9876_v55, %v8471_v45 }
 0x3e7   : > { %9866 = vst [vmem:[#allocation122_spill] sm:$0xff] %v8701_v12  ;;  %3780 = vmatmul.bf16.gmra.mxu0 %v9868_v59  ;;  %3612 = vmatmul.bf16.gmra.mxu3 %v9870_v40  ;;  %v6244_v59 = vld [vmem:[#allocation3 + $0x310] sm:$0xff] }
 0x3e8   : > { %9869 = vst [vmem:[#allocation127_spill] sm:$0xff] %v8705_v51  ;;  %3696 = vmatmul.bf16.gmra.mxu2 %v9871_v21  ;;  %v6252_v51 = vld [vmem:[#allocation3 + $0x350] sm:$0xff]  ;;  %4385 = vmatpush.bf16.msra.mxu3 %v6244_v59 }
 0x3e9   : > { %4469 = vmatpush.bf16.msra.mxu2 %v6252_v51  ;;  %v9885_v21 = vld [vmem:[#allocation83_spill] sm:$0xff] }
 0x3ea   : > { %v2891_v43 = vpop.f32.mrf.mxu3 }
 0x3eb   : > { %v2980_v61 = vpop.f32.mrf.mxu2  ;;  %v2892_v25 = vadd.f32 %v2891_v43, %v2803_v28  ;;  %v9880_v28 = vld [vmem:[#allocation74_spill] sm:$0xff] }
 0x3ec   : > { %v3482_v50 = vpop.f32.mrf.mxu0 }
 0x3ed   : > { %v8711_v49 = vadd.f32 %v3566_v46, %v3482_v50  ;;  %v8713_v2 = vadd.f32 %v2980_v61, %v2892_v25  ;;  %v9879_v61 = vld [vmem:[#allocation75_spill] sm:$0xff] }
 0x3ee   : > { %v3835_v41 = vpop.f32.mrf.mxu1 }
 0x3ef   : > { %9874 = vst [vmem:[#allocation124_spill] sm:$0xff] %v8711_v49 }
 0x3f0   : > { %9875 = vst [vmem:[#allocation40_spill] sm:$0xff] %v8713_v2  ;;  %3874 = vmatmul.bf16.gmra.mxu1 %v8251_v33 }
 0x3f2   : > { %v2893_v12 = vpop.f32.mrf.mxu3 }
 0x3f3   : > { %v2982_v29 = vpop.f32.mrf.mxu2  ;;  %v2894_v10 = vadd.f32 %v2893_v12, %v2805_v31 }
 0x3f4   : > { %v3746_v8 = vpop.f32.mrf.mxu0 }
 0x3f5   : > { %v8719_v46 = vadd.f32 %v2982_v29, %v2894_v10  ;;  %v9881_v29 = vld [vmem:[#allocation42_spill] sm:$0xff]  ;;  %v9882_v10 = vld [vmem:[#allocation79_spill] sm:$0xff] }
 0x3f6   : > { %v3837_v50 = vpop.f32.mrf.mxu1 }
 0x3f7   : > { %3785 = vmatmul.bf16.gmra.mxu0 %v9877_v24  ;;  %9878 = vst [vmem:[#allocation129_spill] sm:$0xff] %v8719_v46  ;;  %3617 = vmatmul.bf16.gmra.mxu3 %v9879_v61  ;;  %v9883_v46 = vld [vmem:[#allocation103_spill] sm:$0xff] }
 0x3f8   : > { %3701 = vmatmul.bf16.gmra.mxu2 %v9880_v28  ;;  %v9884_v28 = vld [vmem:[#allocation84_spill] sm:$0xff] }
 0x3fa   : > { %v3578_v43 = vpop.f32.mrf.mxu3 }
 0x3fb   : > { %v3662_v25 = vpop.f32.mrf.mxu2  ;;  %v3579_v55 = vadd.f32 %v3578_v43, %v8477_v44  ;;  %v9886_v43 = vld [vmem:[#allocation82_spill] sm:$0xff] }
 0x3fc   : > { %v3748_v45 = vpop.f32.mrf.mxu0 }
 0x3fd   : > { %v3663_v49 = vadd.f32 %v3662_v25, %v3579_v55 }
 0x3fe   : > { %v3840_v33 = vpop.f32.mrf.mxu1 }
 0x3ff   : > { %v3747_v2 = vadd.f32 %v3746_v8, %v3663_v49 }
 0x400   : > { %3879 = vmatmul.bf16.gmra.mxu1 %v9881_v29 }
 0x401   : > { %v8724_v12 = vadd.f32 %v3830_v34, %v3747_v2 }
 0x402   : > { %v3580_v59 = vpop.f32.mrf.mxu3 }
 0x403   : > { %v3664_v31 = vpop.f32.mrf.mxu2  ;;  %v3581_v24 = vadd.f32 %v3580_v59, %v9882_v10 }
 0x404   : > { %v3751_v51 = vpop.f32.mrf.mxu0 }
 0x405   : > { %v3665_v61 = vadd.f32 %v3664_v31, %v3581_v24  ;;  %v6243_v24 = vld [vmem:[#allocation3 + $0x308] sm:$0xff] }
 0x406   : > { %v3842_v44 = vpop.f32.mrf.mxu1  ;;  %4386 = vmatpush.bf16.msra.mxu3 %v6243_v24  ;;  %v6272_v24 = vld [vmem:[#allocation3 + $0x3f0] sm:$0xff] }
 0x407   : > { %3790 = vmatmul.bf16.gmra.mxu0 %v9883_v46  ;;  %v3749_v40 = vadd.f32 %v3748_v45, %v3665_v61  ;;  %3622 = vmatmul.bf16.gmra.mxu3 %v9884_v28  ;;  %v6251_v61 = vld [vmem:[#allocation3 + $0x348] sm:$0xff]  ;;  %v9890_v28 = vld [vmem:[#allocation52_spill] sm:$0xff] }
 0x408   : > { %3706 = vmatmul.bf16.gmra.mxu2 %v9885_v21 }
 0x409   : > { %v8731_v49 = vadd.f32 %v3832_v20, %v3749_v40  ;;  %4470 = vmatpush.bf16.msra.mxu2 %v6251_v61  ;;  %v9887_v20 = vld [vmem:[#allocation46_spill] sm:$0xff] }
 0x40a   : > { %v3583_v34 = vpop.f32.mrf.mxu3 }
 0x40b   : > { %v3667_v8 = vpop.f32.mrf.mxu2  ;;  %v3584_v25 = vadd.f32 %v3583_v34, %v9886_v43 }
 0x40c   : > { %v3753_v2 = vpop.f32.mrf.mxu0 }
 0x40d   : > { %v3668_v55 = vadd.f32 %v3667_v8, %v3584_v25  ;;  %v9888_v8 = vld [vmem:[#allocation69_spill] sm:$0xff]  ;;  %v6273_v25 = vld [vmem:[#allocation3 + $0x3f8] sm:$0xff] }
 0x40e   : > { %v3845_v14 = vpop.f32.mrf.mxu1  ;;  %4632 = vmatpush.bf16.msrb.mxu1 %v6273_v25 }
 0x40f   : > { %v3752_v29 = vadd.f32 %v3751_v51, %v3668_v55  ;;  %v9889_v51 = vld [vmem:[#allocation65_spill] sm:$0xff] }
 0x410   : > { %3884 = vmatmul.bf16.gmra.mxu1 %v9786_v60 }
 0x411   : > { %v8734_v59 = vadd.f32 %v3835_v41, %v3752_v29 }
 0x412   : > { %v3585_v45 = vpop.f32.mrf.mxu3  ;;  %4633 = vmatpush.bf16.msrb.mxu1 %v6272_v24 }
 0x413   : > { %v3669_v31 = vpop.f32.mrf.mxu2  ;;  %v3586_v40 = vadd.f32 %v3585_v45, %v8503_v11 }
 0x414   : > { %v3756_v10 = vpop.f32.mrf.mxu0 }
 0x415   : > { %v3670_v46 = vadd.f32 %v3669_v31, %v3586_v40  ;;  %v6271_v40 = vld [vmem:[#allocation3 + $0x3e8] sm:$0xff] }
 0x416   : > { %v8741_v41 = vpop.f32.mrf.mxu1  ;;  %4634 = vmatpush.bf16.msrb.mxu1 %v6271_v40 }
 0x417   : > { %3795 = vmatmul.bf16.gmra.mxu0 %v9887_v20  ;;  %v3754_v34 = vadd.f32 %v3753_v2, %v3670_v46  ;;  %3627 = vmatmul.bf16.gmra.mxu3 %v9888_v8  ;;  %v9891_v8 = vld [vmem:[#allocation28_spill] sm:$0xff] }
 0x418   : > { %3711 = vmatmul.bf16.gmra.mxu2 %v9889_v51 }
 0x419   : > { %v8743_v29 = vadd.f32 %v3837_v50, %v3754_v34 }
 0x41a   : > { %v3588_v55 = vpop.f32.mrf.mxu3 }
 0x41b   : > { %v3672_v60 = vpop.f32.mrf.mxu2  ;;  %v3589_v11 = vadd.f32 %v3588_v55, %v9890_v28  ;;  %v6270_v28 = vld [vmem:[#allocation3 + $0x3e0] sm:$0xff]  ;;  %v9893_v55 = vld [vmem:[#allocation95_spill] sm:$0xff] }
 0x41c   : > { %v3758_v43 = vpop.f32.mrf.mxu0  ;;  %4635 = vmatpush.bf16.msrb.mxu1 %v6270_v28 }
 0x41d   : > { %v3673_v61 = vadd.f32 %v3672_v60, %v3589_v11 }
 0x41e   : > { %v8746_v31 = vpop.f32.mrf.mxu1 }
 0x41f   : > { %v3757_v45 = vadd.f32 %v3756_v10, %v3673_v61  ;;  %v9892_v10 = vld [vmem:[#allocation70_spill] sm:$0xff]  ;;  %v6269_v61 = vld [vmem:[#allocation3 + $0x3d8] sm:$0xff] }
 0x420   : > { %3889 = vmatmul.bf16.gmra.mxu1 %v9793_v27 }
 0x421   : > { %v8748_v46 = vadd.f32 %v3840_v33, %v3757_v45  ;;  %v6265_v45 = vld [vmem:[#allocation3 + $0x3b8] sm:$0xff]  ;;  %4636 = vmatpush.bf16.msrb.mxu1 %v6269_v61 }
 0x422   : > { %v3590_v20 = vpop.f32.mrf.mxu3  ;;  %4548 = vmatpush.bf16.msrb.mxu0 %v6265_v45  ;;  %v9894_v45 = vld [vmem:[#allocation102_spill] sm:$0xff] }
 0x423   : > { %v3674_v50 = vpop.f32.mrf.mxu2  ;;  %v3591_v34 = vadd.f32 %v3590_v20, %v8519_v38  ;;  %v6242_v20 = vld [vmem:[#allocation3 + $0x300] sm:$0xff] }
 0x424   : > { %v3761_v2 = vpop.f32.mrf.mxu0  ;;  %4387 = vmatpush.bf16.msra.mxu3 %v6242_v20 }
 0x425   : > { %v3675_v25 = vadd.f32 %v3674_v50, %v3591_v34 }
 0x426   : > { %v8755_v33 = vpop.f32.mrf.mxu1 }
 0x427   : > { %3800 = vmatmul.bf16.gmra.mxu0 %v9891_v8  ;;  %v3759_v60 = vadd.f32 %v3758_v43, %v3675_v25  ;;  %3632 = vmatmul.bf16.gmra.mxu3 %v9892_v10  ;;  %v6268_v43 = vld [vmem:[#allocation3 + $0x3d0] sm:$0xff]  ;;  %v6250_v8 = vld [vmem:[#allocation3 + $0x340] sm:$0xff]  ;;  %v6267_v10 = vld [vmem:[#allocation3 + $0x3c8] sm:$0xff] }
 0x428   : > { %3716 = vmatmul.bf16.gmra.mxu2 %v9893_v55  ;;  %4637 = vmatpush.bf16.msrb.mxu1 %v6268_v43 }
 0x429   : > { %v8757_v11 = vadd.f32 %v3842_v44, %v3759_v60  ;;  %v6264_v60 = vld [vmem:[#allocation3 + $0x3b0] sm:$0xff]  ;;  %4471 = vmatpush.bf16.msra.mxu2 %v6250_v8 }
 0x42a   : > { %v3593_v27 = vpop.f32.mrf.mxu3  ;;  %4549 = vmatpush.bf16.msrb.mxu0 %v6264_v60 }
 0x42b   : > { %v3677_v38 = vpop.f32.mrf.mxu2  ;;  %v3594_v40 = vadd.f32 %v3593_v27, %v8525_v53  ;;  %v6263_v27 = vld [vmem:[#allocation3 + $0x3a8] sm:$0xff] }
 0x42c   : > { %v3763_v24 = vpop.f32.mrf.mxu0  ;;  %4638 = vmatpush.bf16.msrb.mxu1 %v6267_v10 }
 0x42d   : > { %v3678_v50 = vadd.f32 %v3677_v38, %v3594_v40  ;;  %v9895_v38 = vld [vmem:[#allocation99_spill] sm:$0xff] }
 0x42e   : > { %v8760_v25 = vpop.f32.mrf.mxu1  ;;  %4550 = vmatpush.bf16.msrb.mxu0 %v6263_v27  ;;  %v6260_v27 = vld [vmem:[#allocation3 + $0x390] sm:$0xff] }
 0x42f   : > { %v3762_v34 = vadd.f32 %v3761_v2, %v3678_v50  ;;  %v6266_v2 = vld [vmem:[#allocation3 + $0x3c0] sm:$0xff]  ;;  %v6261_v50 = vld [vmem:[#allocation3 + $0x398] sm:$0xff] }
 0x430   : > { %3894 = vmatmul.bf16.gmra.mxu1 %v8114_v39 }
 0x431   : > { %v8762_v28 = vadd.f32 %v3845_v14, %v3762_v34  ;;  %4639 = vmatpush.bf16.msrb.mxu1 %v6266_v2 }
 0x432   : > { %v3595_v55 = vpop.f32.mrf.mxu3 }
 0x433   : > { %v3679_v51 = vpop.f32.mrf.mxu2  ;;  %v3596_v53 = vadd.f32 %v3595_v55, %v8535_v4  ;;  %v6262_v55 = vld [vmem:[#allocation3 + $0x3a0] sm:$0xff] }
 0x434   : > { %v3766_v44 = vpop.f32.mrf.mxu0  ;;  %4551 = vmatpush.bf16.msrb.mxu0 %v6262_v55 }
 0x435   : > { %v3680_v61 = vadd.f32 %v3679_v51, %v3596_v53 }
 0x436   : > { %v3857_v20 = vpop.f32.mrf.mxu1 }
 0x437   : > { %3805 = vmatmul.bf16.gmra.mxu0 %v9792_v18  ;;  %v3764_v14 = vadd.f32 %v3763_v24, %v3680_v61  ;;  %3637 = vmatmul.bf16.gmra.mxu3 %v9894_v45 }
 0x438   : > { %3721 = vmatmul.bf16.gmra.mxu2 %v9895_v38  ;;  %4552 = vmatpush.bf16.msrb.mxu0 %v6261_v50  ;;  %v6258_v50 = vld [vmem:[#allocation3 + $0x380] sm:$0xff] }
 0x439   : > { %v8770_v40 = vadd.f32 %v8741_v41, %v3764_v14  ;;  %v6259_v14 = vld [vmem:[#allocation3 + $0x388] sm:$0xff] }
 0x43a   : > { %v3598_v8 = vpop.f32.mrf.mxu3 }
 0x43b   : > { %v3682_v43 = vpop.f32.mrf.mxu2  ;;  %v3599_v10 = vadd.f32 %v3598_v8, %v8541_v63  ;;  %v9897_v8 = vld [vmem:[#allocation68_spill] sm:$0xff] }
 0x43c   : > { %v3768_v4 = vpop.f32.mrf.mxu0  ;;  %4553 = vmatpush.bf16.msrb.mxu0 %v6260_v27 }
 0x43d   : > { %v3683_v51 = vadd.f32 %v3682_v43, %v3599_v10 }
 0x43e   : > { %v3860_v34 = vpop.f32.mrf.mxu1 }
 0x43f   : > { %v3767_v24 = vadd.f32 %v3766_v44, %v3683_v51  ;;  %v9896_v44 = vld [vmem:[#allocation110_spill] sm:$0xff]  ;;  %v6281_v51 = vld [vmem:[#allocation3 + $0x438] sm:$0xff] }
 0x440   : > { %3899 = vmatmul.bf16.gmra.mxu1 %v9797_v35  ;;  %4554 = vmatpush.bf16.msrb.mxu0 %v6259_v14 }
 0x441   : > { %v8774_v60 = vadd.f32 %v8746_v31, %v3767_v24  ;;  %v6289_v24 = vld [vmem:[#allocation3 + $0x478] sm:$0xff]  ;;  %4716 = vmatpush.bf16.msrb.mxu3 %v6281_v51  ;;  %v9898_v51 = vld [vmem:[#allocation114_spill] sm:$0xff] }
 0x442   : > { %v3600_v2 = vpop.f32.mrf.mxu3  ;;  %4800 = vmatpush.bf16.msrb.mxu2 %v6289_v24  ;;  %v9899_v24 = vld [vmem:[#allocation109_spill] sm:$0xff] }
 0x443   : > { %v3684_v41 = vpop.f32.mrf.mxu2  ;;  %v3601_v61 = vadd.f32 %v3600_v2, %v8551_v1 }
 0x444   : > { %v3771_v53 = vpop.f32.mrf.mxu0  ;;  %4555 = vmatpush.bf16.msrb.mxu0 %v6258_v50 }
 0x445   : > { %v3685_v63 = vadd.f32 %v3684_v41, %v3601_v61 }
 0x446   : > { %v3862_v31 = vpop.f32.mrf.mxu1 }
 0x447   : > { %3810 = vmatmul.bf16.gmra.mxu0 %v9794_v15  ;;  %v3769_v55 = vadd.f32 %v3768_v4, %v3685_v63  ;;  %3642 = vmatmul.bf16.gmra.mxu3 %v9896_v44 }
 0x448   : > { %3726 = vmatmul.bf16.gmra.mxu2 %v9897_v8 }
 0x449   : > { %v8782_v43 = vadd.f32 %v8755_v33, %v3769_v55 }
 0x44a   : > { %v3603_v1 = vpop.f32.mrf.mxu3 }
 0x44b   : > { %v3687_v2 = vpop.f32.mrf.mxu2  ;;  %v3604_v41 = vadd.f32 %v3603_v1, %v8557_v22 }
 0x44c   : > { %v3773_v10 = vpop.f32.mrf.mxu0 }
 0x44d   : > { %v3688_v4 = vadd.f32 %v3687_v2, %v3604_v41  ;;  %v9900_v2 = vld [vmem:[#allocation31_spill] sm:$0xff] }
 0x44e   : > { %v3865_v63 = vpop.f32.mrf.mxu1  ;;  %v8797_v41 = vadd.f32 %v8724_v12, %v9900_v2 }
 0x44f   : > { %v3772_v27 = vadd.f32 %v3771_v53, %v3688_v4 }
 0x450   : > { %4640 = vmatmul.bf16.vlgmr.msrb.gmra.mxu1 %v9810_v19 }
 0x451   : > { %v8786_v61 = vadd.f32 %v8760_v25, %v3772_v27 }
 0x452   : > { %v3605_v55 = vpop.f32.mrf.mxu3 }
 0x453   : > { %v3689_v35 = vpop.f32.mrf.mxu2  ;;  %v3606_v14 = vadd.f32 %v3605_v55, %v8567_v3 }
 0x454   : > { %v3776_v33 = vpop.f32.mrf.mxu0 }
 0x455   : > { %v3690_v39 = vadd.f32 %v3689_v35, %v3606_v14 }
 0x456   : > { %v3867_v19 = vpop.f32.mrf.mxu1 }
 0x457   : > { %3815 = vmatmul.bf16.gmra.mxu0 %v9796_v16  ;;  %v3774_v22 = vadd.f32 %v3773_v10, %v3690_v39  ;;  %3647 = vmatmul.bf16.gmra.mxu3 %v9898_v51 }
 0x458   : > { %3731 = vmatmul.bf16.gmra.mxu2 %v9899_v24 }
 0x459   : > { %v8793_v53 = vadd.f32 %v3857_v20, %v3774_v22  ;;  %v9901_v20 = vld [vmem:[#allocation35_spill] sm:$0xff] }
 0x45a   : > { %v3608_v50 = vpop.f32.mrf.mxu3  ;;  %v8805_v14 = vadd.f32 %v8731_v49, %v9901_v20  ;;  %v9904_v49 = vld [vmem:[#allocation89_spill] sm:$0xff] }
 0x45b   : > { %v3692_v1 = vpop.f32.mrf.mxu2  ;;  %v3609_v3 = vadd.f32 %v3608_v50, %v8573_v23  ;;  %v9902_v50 = vld [vmem:[#allocation17_spill] sm:$0xff]  ;;  %v8815_v20 = vadd.f32 %v8734_v59, %v9904_v49  ;;  %v9908_v49 = vld [vmem:[#allocation47_spill] sm:$0xff] }
 0x45c   : > { %v3778_v25 = vpop.f32.mrf.mxu0 }
 0x45d   : > { %v3693_v4 = vadd.f32 %v3692_v1, %v3609_v3  ;;  %v6280_v3 = vld [vmem:[#allocation3 + $0x430] sm:$0xff] }
 0x45e   : > { %v3870_v12 = vpop.f32.mrf.mxu1  ;;  %4717 = vmatpush.bf16.msrb.mxu3 %v6280_v3  ;;  %v9906_v3 = vld [vmem:[#allocation24_spill] sm:$0xff] }
 0x45f   : > { %v3777_v27 = vadd.f32 %v3776_v33, %v3693_v4 }
 0x460   : > { %4645 = vmatmul.bf16.gmra.mxu1 %v9818_v37  ;;  %v6288_v37 = vld [vmem:[#allocation3 + $0x470] sm:$0xff] }
 0x461   : > { %v8800_v35 = vadd.f32 %v3860_v34, %v3777_v27  ;;  %v9903_v34 = vld [vmem:[#allocation18_spill] sm:$0xff]  ;;  %4801 = vmatpush.bf16.msrb.mxu2 %v6288_v37 }
 0x462   : > { %v3610_v10 = vpop.f32.mrf.mxu3 }
 0x463   : > { %v3694_v55 = vpop.f32.mrf.mxu2  ;;  %v3611_v22 = vadd.f32 %v3610_v10, %v8583_v6 }
 0x464   : > { %v3781_v39 = vpop.f32.mrf.mxu0 }
 0x465   : > { %v3695_v2 = vadd.f32 %v3694_v55, %v3611_v22 }
 0x467   : > { %4556 = vmatmul.bf16.vlgmr.msrb.gmra.mxu0 %v9809_v54  ;;  %v3779_v23 = vadd.f32 %v3778_v25, %v3695_v2  ;;  %4388 = vmatmul.bf16.vlgmr.msra.gmra.mxu3 %v9902_v50  ;;  %v3872_v25 = vpop.f32.mrf.mxu1 }
 0x468   : > { %4472 = vmatmul.bf16.vlgmr.msra.gmra.mxu2 %v9903_v34 }
 0x469   : > { %v8811_v33 = vadd.f32 %v3862_v31, %v3779_v23  ;;  %v9905_v23 = vld [vmem:[#allocation23_spill] sm:$0xff] }
 0x46a   : > { %v3613_v4 = vpop.f32.mrf.mxu3  ;;  %v8823_v50 = vadd.f32 %v8743_v29, %v9905_v23  ;;  %v8833_v29 = vadd.f32 %v8748_v46, %v9908_v49 }
 0x46b   : > { %v3697_v27 = vpop.f32.mrf.mxu2  ;;  %v3614_v6 = vadd.f32 %v3613_v4, %v8589_v30 }
 0x46c   : > { %v3783_v1 = vpop.f32.mrf.mxu0 }
 0x46d   : > { %v3698_v54 = vadd.f32 %v3697_v27, %v3614_v6 }
 0x46f   : > { %v3782_v10 = vadd.f32 %v3781_v39, %v3698_v54  ;;  %v9907_v39 = vld [vmem:[#allocation25_spill] sm:$0xff] }
 0x470   : > { %4650 = vmatmul.bf16.gmra.mxu1 %v9826_v17 }
 0x471   : > { %v8818_v55 = vadd.f32 %v3865_v63, %v3782_v10  ;;  %v3875_v63 = vpop.f32.mrf.mxu1 }
 0x472   : > { %v3615_v22 = vpop.f32.mrf.mxu3 }
 0x473   : > { %v3699_v2 = vpop.f32.mrf.mxu2  ;;  %v3616_v59 = vadd.f32 %v3615_v22, %v8599_v9 }
 0x474   : > { %v3786_v31 = vpop.f32.mrf.mxu0 }
 0x475   : > { %v3700_v30 = vadd.f32 %v3699_v2, %v3616_v59 }
 0x477   : > { %4561 = vmatmul.bf16.gmra.mxu0 %v9817_v62  ;;  %v3784_v34 = vadd.f32 %v3783_v1, %v3700_v30  ;;  %4393 = vmatmul.bf16.gmra.mxu3 %v9906_v3  ;;  %v9910_v30 = vld [vmem:[#allocation29_spill] sm:$0xff]  ;;  %v6279_v3 = vld [vmem:[#allocation3 + $0x428] sm:$0xff] }
 0x478   : > { %4477 = vmatmul.bf16.gmra.mxu2 %v9907_v39  ;;  %4718 = vmatpush.bf16.msrb.mxu3 %v6279_v3 }
 0x479   : > { %v8829_v37 = vadd.f32 %v3867_v19, %v3784_v34  ;;  %v9909_v19 = vld [vmem:[#allocation56_spill] sm:$0xff]  ;;  %v3877_v23 = vpop.f32.mrf.mxu1 }
 0x47a   : > { %v3618_v27 = vpop.f32.mrf.mxu3  ;;  %v8841_v2 = vadd.f32 %v8757_v11, %v9909_v19  ;;  %v8851_v11 = vadd.f32 %v8762_v28, %v8537_v5 }
 0x47b   : > { %v3702_v17 = vpop.f32.mrf.mxu2  ;;  %v3619_v9 = vadd.f32 %v3618_v27, %v8605_v48 }
 0x47c   : > { %v3788_v4 = vpop.f32.mrf.mxu0 }
 0x47d   : > { %v3703_v6 = vadd.f32 %v3702_v17, %v3619_v9 }
 0x47f   : > { %v3787_v62 = vadd.f32 %v3786_v31, %v3703_v6 }
 0x480   : > { %4655 = vmatmul.bf16.gmra.mxu1 %v9836_v36  ;;  %v6287_v36 = vld [vmem:[#allocation3 + $0x468] sm:$0xff] }
 0x481   : > { %v8836_v54 = vadd.f32 %v3870_v12, %v3787_v62  ;;  %v9911_v12 = vld [vmem:[#allocation30_spill] sm:$0xff]  ;;  %4802 = vmatpush.bf16.msrb.mxu2 %v6287_v36  ;;  %v8859_v62 = vadd.f32 %v8770_v40, %v8545_v57  ;;  %v8869_v57 = vadd.f32 %v8774_v60, %v8553_v42  ;;  %v9915_v60 = vld [vmem:[#allocation41_spill] sm:$0xff] }
 0x482   : > { %v3620_v10 = vpop.f32.mrf.mxu3  ;;  %v9914_v36 = vld [vmem:[#allocation118_spill] sm:$0xff] }
 0x483   : > { %v3704_v22 = vpop.f32.mrf.mxu2  ;;  %v3621_v59 = vadd.f32 %v3620_v10, %v8615_v7 }
 0x484   : > { %v3791_v1 = vpop.f32.mrf.mxu0 }
 0x485   : > { %v3705_v46 = vadd.f32 %v3704_v22, %v3621_v59  ;;  %v9912_v22 = vld [vmem:[#allocation34_spill] sm:$0xff] }
 0x487   : > { %4566 = vmatmul.bf16.gmra.mxu0 %v9825_v0  ;;  %v3789_v48 = vadd.f32 %v3788_v4, %v3705_v46  ;;  %4398 = vmatmul.bf16.gmra.mxu3 %v9910_v30  ;;  %v3880_v0 = vpop.f32.mrf.mxu1 }
 0x488   : > { %4482 = vmatmul.bf16.gmra.mxu2 %v9911_v12  ;;  %v6278_v12 = vld [vmem:[#allocation3 + $0x420] sm:$0xff] }
 0x489   : > { %v8847_v31 = vadd.f32 %v3872_v25, %v3789_v48  ;;  %4719 = vmatpush.bf16.msrb.mxu3 %v6278_v12 }
 0x48a   : > { %v3623_v39 = vpop.f32.mrf.mxu3 }
 0x48b   : > { %v3707_v27 = vpop.f32.mrf.mxu2  ;;  %v3624_v7 = vadd.f32 %v3623_v39, %v8621_v58 }
 0x48c   : > { %v3793_v34 = vpop.f32.mrf.mxu0 }
 0x48d   : > { %v3708_v4 = vadd.f32 %v3707_v27, %v3624_v7  ;;  %v9916_v27 = vld [vmem:[#allocation43_spill] sm:$0xff]  ;;  %v9917_v7 = vld [vmem:[#allocation44_spill] sm:$0xff] }
 0x48f   : > { %v3792_v17 = vadd.f32 %v3791_v1, %v3708_v4  ;;  %v3882_v28 = vpop.f32.mrf.mxu1 }
 0x490   : > { %4660 = vmatmul.bf16.gmra.mxu1 %v9847_v32 }
 0x491   : > { %v8854_v49 = vadd.f32 %v3875_v63, %v3792_v17  ;;  %v9913_v63 = vld [vmem:[#allocation36_spill] sm:$0xff]  ;;  %v6286_v17 = vld [vmem:[#allocation3 + $0x460] sm:$0xff] }
 0x492   : > { %v3625_v9 = vpop.f32.mrf.mxu3  ;;  %4803 = vmatpush.bf16.msrb.mxu2 %v6286_v17 }
 0x493   : > { %v3709_v6 = vpop.f32.mrf.mxu2  ;;  %v3626_v5 = vadd.f32 %v3625_v9, %v8631_v52  ;;  %v9918_v9 = vld [vmem:[#allocation61_spill] sm:$0xff] }
 0x494   : > { %v3796_v25 = vpop.f32.mrf.mxu0 }
 0x495   : > { %v3710_v58 = vadd.f32 %v3709_v6, %v3626_v5  ;;  %v9919_v6 = vld [vmem:[#allocation11_spill] sm:$0xff] }
 0x497   : > { %4571 = vmatmul.bf16.gmra.mxu0 %v9835_v13  ;;  %v3794_v10 = vadd.f32 %v3793_v34, %v3710_v58  ;;  %4403 = vmatmul.bf16.gmra.mxu3 %v9912_v22  ;;  %v3885_v46 = vpop.f32.mrf.mxu1 }
 0x498   : > { %4487 = vmatmul.bf16.gmra.mxu2 %v9913_v63 }
 0x499   : > { %v8865_v1 = vadd.f32 %v3877_v23, %v3794_v10  ;;  %v8877_v23 = vadd.f32 %v8782_v43, %v8561_v56  ;;  %v8887_v56 = vadd.f32 %v8786_v61, %v9918_v9 }
 0x49a   : > { %v3628_v59 = vpop.f32.mrf.mxu3 }
 0x49b   : > { %v3712_v32 = vpop.f32.mrf.mxu2  ;;  %v3629_v52 = vadd.f32 %v3628_v59, %v8637_v26  ;;  %v9920_v59 = vld [vmem:[#allocation62_spill] sm:$0xff] }
 0x49c   : > { %v3798_v19 = vpop.f32.mrf.mxu0 }
 0x49d   : > { %v3713_v40 = vadd.f32 %v3712_v32, %v3629_v52  ;;  %v9921_v32 = vld [vmem:[#allocation98_spill] sm:$0xff] }
 0x49e   : > { %v8895_v52 = vadd.f32 %v8793_v53, %v9921_v32 }
 0x49f   : > { %v3797_v13 = vadd.f32 %v3796_v25, %v3713_v40  ;;  %v3887_v43 = vpop.f32.mrf.mxu1  ;;  %v9922_v40 = vld [vmem:[#allocation21_spill] sm:$0xff] }
 0x4a0   : > { %4665 = vmatmul.bf16.gmra.mxu1 %v9859_v47 }
 0x4a1   : > { %v8872_v48 = vadd.f32 %v3880_v0, %v3797_v13  ;;  %v9923_v13 = vld [vmem:[#allocation51_spill] sm:$0xff] }
 0x4a2   : > { %v3630_v34 = vpop.f32.mrf.mxu3 }
 0x4a3   : > { %v3714_v3 = vpop.f32.mrf.mxu2  ;;  %v3631_v42 = vadd.f32 %v3630_v34, %v9914_v36  ;;  %v9924_v36 = vld [vmem:[#allocation53_spill] sm:$0xff] }
 0x4a4   : > { %v3801_v30 = vpop.f32.mrf.mxu0 }
 0x4a5   : > { %v3715_v26 = vadd.f32 %v3714_v3, %v3631_v42 }
 0x4a7   : > { %4576 = vmatmul.bf16.gmra.mxu0 %v9915_v60  ;;  %v3799_v39 = vadd.f32 %v3798_v19, %v3715_v26  ;;  %4408 = vmatmul.bf16.gmra.mxu3 %v9916_v27  ;;  %v3890_v12 = vpop.f32.mrf.mxu1  ;;  %v9927_v27 = vld [vmem:[#allocation119_spill] sm:$0xff] }
 0x4a8   : > { %4492 = vmatmul.bf16.gmra.mxu2 %v9917_v7 }
 0x4a9   : > { %v8883_v0 = vadd.f32 %v3882_v28, %v3799_v39  ;;  %v9926_v39 = vld [vmem:[#allocation39_spill] sm:$0xff] }
 0x4aa   : > { %v3633_v47 = vpop.f32.mrf.mxu3  ;;  %v8905_v53 = vadd.f32 %v8800_v35, %v9926_v39  ;;  %v9931_v35 = vld [vmem:[#allocation64_spill] sm:$0xff] }
 0x4ab   : > { %v3717_v25 = vpop.f32.mrf.mxu2  ;;  %v3634_v5 = vadd.f32 %v3633_v47, %v9919_v6 }
 0x4ac   : > { %v3803_v4 = vpop.f32.mrf.mxu0 }
 0x4ad   : > { %v3718_v58 = vadd.f32 %v3717_v25, %v3634_v5 }
 0x4af   : > { %v3802_v10 = vadd.f32 %v3801_v30, %v3718_v58  ;;  %v3892_v47 = vpop.f32.mrf.mxu1  ;;  %v9928_v58 = vld [vmem:[#allocation74_spill] sm:$0xff] }
 0x4b0   : > { %4670 = vmatmul.bf16.gmra.mxu1 %v9920_v59 }
 0x4b1   : > { %v8890_v22 = vadd.f32 %v3885_v46, %v3802_v10  ;;  %v9925_v46 = vld [vmem:[#allocation54_spill] sm:$0xff] }
 0x4b2   : > { %v3635_v19 = vpop.f32.mrf.mxu3 }
 0x4b3   : > { %v3719_v28 = vpop.f32.mrf.mxu2  ;;  %v3636_v61 = vadd.f32 %v3635_v19, %v9922_v40  ;;  %v9930_v19 = vld [vmem:[#allocation26_spill] sm:$0xff] }
 0x4b4   : > { %v3806_v63 = vpop.f32.mrf.mxu0  ;;  %v9932_v40 = vld [vmem:[#allocation66_spill] sm:$0xff] }
 0x4b5   : > { %v3720_v34 = vadd.f32 %v3719_v28, %v3636_v61 }
 0x4b7   : > { %4581 = vmatmul.bf16.gmra.mxu0 %v9923_v13  ;;  %v3804_v3 = vadd.f32 %v3803_v4, %v3720_v34  ;;  %4413 = vmatmul.bf16.gmra.mxu3 %v9924_v36  ;;  %v3895_v61 = vpop.f32.mrf.mxu1  ;;  %v6277_v34 = vld [vmem:[#allocation3 + $0x418] sm:$0xff] }
 0x4b8   : > { %4497 = vmatmul.bf16.gmra.mxu2 %v9925_v46  ;;  %4720 = vmatpush.bf16.msrb.mxu3 %v6277_v34  ;;  %v9942_v34 = vld [vmem:[#allocation122_spill] sm:$0xff] }
 0x4b9   : > { %v8901_v30 = vadd.f32 %v3887_v43, %v3804_v3  ;;  %v9929_v43 = vld [vmem:[#allocation48_spill] sm:$0xff] }
 0x4ba   : > { %v3638_v60 = vpop.f32.mrf.mxu3  ;;  %v8913_v10 = vadd.f32 %v8811_v33, %v9929_v43  ;;  %v6285_v3 = vld [vmem:[#allocation3 + $0x458] sm:$0xff]  ;;  %v9934_v33 = vld [vmem:[#allocation101_spill] sm:$0xff] }
 0x4bb   : > { %v3722_v26 = vpop.f32.mrf.mxu2  ;;  %v3639_v7 = vadd.f32 %v3638_v60, %v9927_v27  ;;  %v8923_v60 = vadd.f32 %v8818_v55, %v9934_v33  ;;  %4804 = vmatpush.bf16.msrb.mxu2 %v6285_v3 }
 0x4bc   : > { %v3808_v42 = vpop.f32.mrf.mxu0 }
 0x4bd   : > { %v3723_v17 = vadd.f32 %v3722_v26, %v3639_v7  ;;  %v9935_v26 = vld [vmem:[#allocation120_spill] sm:$0xff] }
 0x4bf   : > { %v3807_v25 = vadd.f32 %v3806_v63, %v3723_v17  ;;  %v9933_v63 = vld [vmem:[#allocation67_spill] sm:$0xff]  ;;  %v3897_v43 = vpop.f32.mrf.mxu1 }
 0x4c0   : > { %4675 = vmatmul.bf16.gmra.mxu1 %v9928_v58  ;;  %v9937_v58 = vld [vmem:[#allocation33_spill] sm:$0xff] }
 0x4c1   : > { %v8908_v9 = vadd.f32 %v3890_v12, %v3807_v25 }
 0x4c2   : > { %v3640_v6 = vpop.f32.mrf.mxu3 }
 0x4c3   : > { %v3724_v5 = vpop.f32.mrf.mxu2  ;;  %v3641_v28 = vadd.f32 %v3640_v6, %v9930_v19  ;;  %v9936_v6 = vld [vmem:[#allocation9_spill] sm:$0xff]  ;;  %v9938_v19 = vld [vmem:[#allocation75_spill] sm:$0xff] }
 0x4c4   : > { %v3811_v4 = vpop.f32.mrf.mxu0 }
 0x4c5   : > { %v3725_v59 = vadd.f32 %v3724_v5, %v3641_v28  ;;  %v8931_v5 = vadd.f32 %v8829_v37, %v9936_v6  ;;  %v9944_v6 = vld [vmem:[#allocation13_spill] sm:$0xff] }
 0x4c7   : > { %4586 = vmatmul.bf16.gmra.mxu0 %v9931_v35  ;;  %v3809_v32 = vadd.f32 %v3808_v42, %v3725_v59  ;;  %4418 = vmatmul.bf16.gmra.mxu3 %v9932_v40  ;;  %v9939_v59 = vld [vmem:[#allocation77_spill] sm:$0xff]  ;;  %v3900_v33 = vpop.f32.mrf.mxu1 }
 0x4c8   : > { %4502 = vmatmul.bf16.gmra.mxu2 %v9933_v63 }
 0x4c9   : > { %v8919_v13 = vadd.f32 %v3892_v47, %v3809_v32 }
 0x4ca   : > { %v3643_v36 = vpop.f32.mrf.mxu3 }
 0x4cb   : > { %v3727_v46 = vpop.f32.mrf.mxu2  ;;  %v3644_v39 = vadd.f32 %v3643_v36, %v9935_v26 }
 0x4cc   : > { %v3813_v12 = vpop.f32.mrf.mxu0 }
 0x4cd   : > { %v3728_v42 = vadd.f32 %v3727_v46, %v3644_v39  ;;  %v6276_v46 = vld [vmem:[#allocation3 + $0x410] sm:$0xff] }
 0x4ce   : > { %4721 = vmatpush.bf16.msrb.mxu3 %v6276_v46  ;;  %v9951_v46 = vld [vmem:[#allocation16_spill] sm:$0xff] }
 0x4cf   : > { %v3812_v27 = vadd.f32 %v3811_v4, %v3728_v42  ;;  %v9940_v4 = vld [vmem:[#allocation78_spill] sm:$0xff]  ;;  %v8948_v42 = vld [vmem:[%s9325_s4] ss:$0 sm:$0xff] }
 0x4d0   : > { %4680 = vmatmul.bf16.gmra.mxu1 %v9885_v21 }
 0x4d1   : > { %v8926_v7 = vadd.f32 %v3895_v61, %v3812_v27  ;;  %v9941_v61 = vld [vmem:[#allocation10_spill] sm:$0xff] }
 0x4d2   : > { %v3645_v47 = vpop.f32.mrf.mxu3  ;;  %v8941_v37 = vadd.f32 %v8836_v54, %v9941_v61  ;;  %v9950_v61 = vld [vmem:[#allocation88_spill] sm:$0xff] }
 0x4d3   : > { %v3729_v25 = vpop.f32.mrf.mxu2  ;;  %v3646_v55 = vadd.f32 %v3645_v47, %v9937_v58  ;;  %v8953_v58 = vadd.f32 %v8847_v31, %v9944_v6 }
 0x4d4   : > { %v3816_v17 = vpop.f32.mrf.mxu0 }
 0x4d5   : > { %v3730_v28 = vadd.f32 %v3729_v25, %v3646_v55  ;;  %v9943_v25 = vld [vmem:[#allocation65_spill] sm:$0xff]  ;;  %9945 = vst [vmem:[#allocation125_spill] sm:$0xff] %v8953_v58 }
 0x4d7   : > { %4591 = vmatmul.bf16.gmra.mxu0 %v9938_v19  ;;  %v3814_v35 = vadd.f32 %v3813_v12, %v3730_v28  ;;  %4423 = vmatmul.bf16.gmra.mxu3 %v9939_v59  ;;  %v6284_v12 = vld [vmem:[#allocation3 + $0x450] sm:$0xff]  ;;  %v9948_v28 = vld [vmem:[#allocation84_spill] sm:$0xff] }
 0x4d8   : > { %4507 = vmatmul.bf16.gmra.mxu2 %v9940_v4 }
 0x4d9   : > { %v8937_v32 = vadd.f32 %v3897_v43, %v3814_v35  ;;  %4805 = vmatpush.bf16.msrb.mxu2 %v6284_v12  ;;  %v9947_v43 = vld [vmem:[#allocation124_spill] sm:$0xff]  ;;  %v8968_v12 = vadd.f32 %v8854_v49, %v9951_v46 }
 0x4da   : > { %v3648_v21 = vpop.f32.mrf.mxu3 }
 0x4db   : > { %v3732_v63 = vpop.f32.mrf.mxu2  ;;  %v3649_v3 = vadd.f32 %v3648_v21, %v9942_v34  ;;  %v3902_v34 = vpop.f32.mrf.mxu1  ;;  %9952 = vst [vmem:[#allocation131_spill] sm:$0xff] %v8968_v12 }
 0x4dc   : > { %v3818_v40 = vpop.f32.mrf.mxu0 }
 0x4dd   : > { %v3733_v36 = vadd.f32 %v3732_v63, %v3649_v3  ;;  %v9949_v63 = vld [vmem:[#allocation87_spill] sm:$0xff] }
 0x4df   : > { %v3817_v26 = vadd.f32 %v3816_v17, %v3733_v36  ;;  %v9946_v17 = vld [vmem:[#allocation40_spill] sm:$0xff] }
 0x4e0   : > { %4685 = vmatmul.bf16.gmra.mxu1 %v9943_v25 }
 0x4e1   : > { %v3901_v39 = vadd.f32 %v3900_v33, %v3817_v26  ;;  %v9953_v33 = vld [vmem:[#allocation129_spill] sm:$0xff] }
 0x4e2   : > { %v3650_v54 = vpop.f32.mrf.mxu3 }
 0x4e3   : > { %v3734_v47 = vpop.f32.mrf.mxu2  ;;  %v3963_v55 = vadd.f32 %v3901_v39, %v9946_v17  ;;  %v3651_v19 = vadd.f32 %v3650_v54, %v9947_v43  ;;  %v9955_v43 = vld [vmem:[#allocation15_spill] sm:$0xff]  ;;  %v8991_v46 = vpop.f32.mrf.mxu1 }
 0x4e4   : > { %v4557_v27 = vpop.f32.mrf.mxu0 }
 0x4e5   : > { %v5040_v35 = vadd.f32 %v8948_v42, %v3963_v55  ;;  %v3735_v59 = vadd.f32 %v3734_v47, %v3651_v19  ;;  %v9954_v55 = vld [vmem:[#allocation95_spill] sm:$0xff]  ;;  %v8978_v19 = vadd.f32 %v8865_v1, %v9955_v43  ;;  %v6275_v1 = vld [vmem:[#allocation3 + $0x408] sm:$0xff] }
 0x4e6   : > { %4722 = vmatpush.bf16.msrb.mxu3 %v6275_v1 }
 0x4e7   : > { %4596 = vmatmul.bf16.gmra.mxu0 %v9948_v28  ;;  %v5072_v4 = vmax.f32 %v5040_v35, 0.0  ;;  %v3819_v21 = vadd.f32 %v3818_v40, %v3735_v59  ;;  %4428 = vmatmul.bf16.gmra.mxu3 %v9949_v63  ;;  %9956 = vst [vmem:[#allocation126_spill] sm:$0xff] %v8978_v19  ;;  %v9957_v28 = vld [vmem:[#allocation69_spill] sm:$0xff] }
 0x4e8   : > { %4512 = vmatmul.bf16.gmra.mxu2 %v9950_v61  ;;  %v9960_v61 = vld [vmem:[#allocation14_spill] sm:$0xff] }
 0x4e9   : > { %5104 = vst [vmem:[%s8963_s6 + $0xf0] sm:$0xff] %v5072_v4  ;;  %v3903_v31 = vadd.f32 %v3902_v34, %v3819_v21  ;;  %v9958_v4 = vld [vmem:[#allocation93_spill] sm:$0xff]  ;;  %v8987_v34 = vadd.f32 %v8872_v48, %v9960_v61  ;;  %v9969_v61 = vld [vmem:[#allocation27_spill] sm:$0xff] }
 0x4ea   : > { %v4389_v3 = vpop.f32.mrf.mxu3 }
 0x4eb   : > { %v4473_v36 = vpop.f32.mrf.mxu2  ;;  %v3964_v26 = vadd.f32 %v3903_v31, %v9953_v33  ;;  %9961 = vst [vmem:[#allocation50_spill] sm:$0xff] %v8987_v34  ;;  %v9003_v43 = vpop.f32.mrf.mxu1 }
 0x4ec   : > { %v4474_v40 = vadd.f32 %v4473_v36, %v4389_v3  ;;  %v4559_v39 = vpop.f32.mrf.mxu0  ;;  %v6283_v36 = vld [vmem:[#allocation3 + $0x448] sm:$0xff] }
 0x4ed   : > { %v5041_v54 = vadd.f32 %v8948_v42, %v3964_v26  ;;  %4806 = vmatpush.bf16.msrb.mxu2 %v6283_v36 }
 0x4ee   : > { %v8972_v47 = vadd.f32 %v4557_v27, %v4474_v40  ;;  %v9959_v27 = vld [vmem:[#allocation94_spill] sm:$0xff] }
 0x4ef   : > { %v5073_v25 = vmax.f32 %v5041_v54, 0.0 }
 0x4f0   : > { %4690 = vmatmul.bf16.gmra.mxu1 %v9954_v55  ;;  %v9966_v55 = vld [vmem:[#allocation97_spill] sm:$0xff] }
 0x4f1   : > { %5105 = vst [vmem:[%s8963_s6 + $0xf8] sm:$0xff] %v5073_v25  ;;  %v9964_v25 = vld [vmem:[#allocation70_spill] sm:$0xff] }
 0x4f2   : > { %v4391_v6 = vpop.f32.mrf.mxu3 }
 0x4f3   : > { %v4475_v17 = vpop.f32.mrf.mxu2  ;;  %v9016_v1 = vpop.f32.mrf.mxu1 }
 0x4f4   : > { %v4476_v49 = vadd.f32 %v4475_v17, %v4391_v6  ;;  %v4562_v59 = vpop.f32.mrf.mxu0  ;;  %v9965_v17 = vld [vmem:[#allocation96_spill] sm:$0xff] }
 0x4f6   : > { %v8981_v35 = vadd.f32 %v4559_v39, %v4476_v49  ;;  %v9962_v39 = vld [vmem:[#allocation22_spill] sm:$0xff] }
 0x4f7   : > { %4601 = vmatmul.bf16.gmra.mxu0 %v9957_v28  ;;  %4433 = vmatmul.bf16.gmra.mxu3 %v9958_v4  ;;  %v8996_v54 = vadd.f32 %v8883_v0, %v9962_v39  ;;  %v9967_v4 = vld [vmem:[#allocation117_spill] sm:$0xff] }
 0x4f8   : > { %4517 = vmatmul.bf16.gmra.mxu2 %v9959_v27  ;;  %v6274_v39 = vld [vmem:[#allocation3 + $0x400] sm:$0xff] }
 0x4f9   : > { %9963 = vst [vmem:[#allocation133_spill] sm:$0xff] %v8996_v54  ;;  %4723 = vmatpush.bf16.msrb.mxu3 %v6274_v39 }
 0x4fa   : > { %v4394_v21 = vpop.f32.mrf.mxu3 }
 0x4fb   : > { %v4478_v63 = vpop.f32.mrf.mxu2 }
 0x4fc   : > { %v4479_v31 = vadd.f32 %v4478_v63, %v4394_v21  ;;  %v4564_v33 = vpop.f32.mrf.mxu0 }
 0x4fe   : > { %v8989_v3 = vadd.f32 %v4562_v59, %v4479_v31  ;;  %v9014_v31 = vadd.f32 %v8901_v30, %v9969_v61 }
 0x500   : > { %4695 = vmatmul.bf16.gmra.mxu1 %v9895_v38  ;;  %v9007_v38 = vadd.f32 %v8890_v22, %v9967_v4  ;;  %9970 = vst [vmem:[#allocation135_spill] sm:$0xff] %v9014_v31  ;;  %v9971_v22 = vld [vmem:[#allocation49_spill] sm:$0xff] }
 0x502   : > { %v4396_v26 = vpop.f32.mrf.mxu3  ;;  %9968 = vst [vmem:[#allocation128_spill] sm:$0xff] %v9007_v38 }
 0x503   : > { %v4480_v40 = vpop.f32.mrf.mxu2 }
 0x504   : > { %v4481_v48 = vadd.f32 %v4480_v40, %v4396_v26  ;;  %v4567_v49 = vpop.f32.mrf.mxu0  ;;  %v9972_v40 = vld [vmem:[#allocation100_spill] sm:$0xff] }
 0x506   : > { %v8999_v6 = vadd.f32 %v4564_v33, %v4481_v48 }
 0x507   : > { %4606 = vmatmul.bf16.gmra.mxu0 %v9964_v25  ;;  %4438 = vmatmul.bf16.gmra.mxu3 %v9965_v17  ;;  %v9973_v25 = vld [vmem:[#allocation123_spill] sm:$0xff] }
 0x508   : > { %4522 = vmatmul.bf16.gmra.mxu2 %v9966_v55  ;;  %v9025_v30 = vadd.f32 %v8908_v9, %v9973_v25  ;;  %v9029_v55 = vpop.f32.mrf.mxu1 }
 0x50a   : > { %v4399_v28 = vpop.f32.mrf.mxu3  ;;  %9974 = vst [vmem:[#allocation130_spill] sm:$0xff] %v9025_v30 }
 0x50b   : > { %v4483_v59 = vpop.f32.mrf.mxu2 }
 0x50c   : > { %v4484_v0 = vadd.f32 %v4483_v59, %v4399_v28  ;;  %v4569_v33 = vpop.f32.mrf.mxu0  ;;  %v9975_v59 = vld [vmem:[#allocation121_spill] sm:$0xff] }
 0x50d   : > { %v9034_v4 = vadd.f32 %v8919_v13, %v9975_v59 }
 0x50e   : > { %v9009_v27 = vadd.f32 %v4567_v49, %v4484_v0  ;;  %v6282_v49 = vld [vmem:[#allocation3 + $0x440] sm:$0xff] }
 0x50f   : > { %4807 = vmatpush.bf16.msrb.mxu2 %v6282_v49  ;;  %9976 = vst [vmem:[#allocation136_spill] sm:$0xff] %v9034_v4  ;;  %v9984_v49 = vld [vmem:[#allocation111_spill] sm:$0xff] }
 0x510   : > { %4700 = vmatmul.bf16.gmra.mxu1 %v9897_v8  ;;  %v9039_v9 = vpop.f32.mrf.mxu1 }
 0x512   : > { %v4401_v21 = vpop.f32.mrf.mxu3 }
 0x513   : > { %v4485_v63 = vpop.f32.mrf.mxu2 }
 0x514   : > { %v4486_v36 = vadd.f32 %v4485_v63, %v4401_v21  ;;  %v9977_v21 = vld [vmem:[#allocation105_spill] sm:$0xff]  ;;  %v9978_v63 = vld [vmem:[#allocation106_spill] sm:$0xff] }
 0x516   : > { %v9019_v26 = vadd.f32 %v4569_v33, %v4486_v36  ;;  %v9979_v33 = vld [vmem:[#allocation32_spill] sm:$0xff] }
 0x517   : > { %4611 = vmatmul.bf16.gmra.mxu0 %v9894_v45  ;;  %4443 = vmatmul.bf16.gmra.mxu3 %v9971_v22  ;;  %v9045_v22 = vadd.f32 %v8926_v7, %v9979_v33  ;;  %v9985_v7 = vld [vmem:[#allocation112_spill] sm:$0xff] }
 0x518   : > { %4527 = vmatmul.bf16.gmra.mxu2 %v9972_v40  ;;  %v9049_v13 = vpop.f32.mrf.mxu1  ;;  %v9988_v33 = vld [vmem:[#allocation116_spill] sm:$0xff] }
 0x519   : > { %9980 = vst [vmem:[#allocation132_spill] sm:$0xff] %v9045_v22 }
 0x51a   : > { %v4404_v48 = vpop.f32.mrf.mxu3 }
 0x51b   : > { %v4488_v8 = vpop.f32.mrf.mxu2 }
 0x51c   : > { %v9027_v17 = vadd.f32 %v4488_v8, %v4404_v48  ;;  %v9981_v48 = vld [vmem:[#allocation113_spill] sm:$0xff] }
 0x520   : > { %4705 = vmatmul.bf16.gmra.mxu1 %v9899_v24 }
 0x522   : > { %v4406_v45 = vpop.f32.mrf.mxu3 }
 0x523   : > { %v4490_v28 = vpop.f32.mrf.mxu2 }
 0x524   : > { %v9036_v0 = vadd.f32 %v4490_v28, %v4406_v45 }
 0x527   : > { %4616 = vmatmul.bf16.gmra.mxu0 %v9896_v44  ;;  %4448 = vmatmul.bf16.gmra.mxu3 %v9977_v21  ;;  %v9982_v44 = vld [vmem:[#allocation127_spill] sm:$0xff] }
 0x528   : > { %4532 = vmatmul.bf16.gmra.mxu2 %v9978_v63  ;;  %v9054_v8 = vadd.f32 %v8937_v32, %v9982_v44  ;;  %v9987_v32 = vld [vmem:[#allocation115_spill] sm:$0xff] }
 0x52a   : > { %v4409_v61 = vpop.f32.mrf.mxu3  ;;  %9983 = vst [vmem:[#allocation134_spill] sm:$0xff] %v9054_v8 }
 0x52b   : > { %v4493_v36 = vpop.f32.mrf.mxu2 }
 0x52c   : > { %v9047_v24 = vadd.f32 %v4493_v36, %v4409_v61  ;;  %v9986_v36 = vld [vmem:[#allocation12_spill] sm:$0xff] }
 0x530   : > { %4710 = vmatmul.bf16.gmra.mxu1 %v9981_v48 }
 0x532   : > { %v4411_v40 = vpop.f32.mrf.mxu3 }
 0x533   : > { %v4495_v39 = vpop.f32.mrf.mxu2 }
 0x534   : > { %v9056_v25 = vadd.f32 %v4495_v39, %v4411_v40 }
 0x537   : > { %4621 = vmatmul.bf16.gmra.mxu0 %v9898_v51  ;;  %4453 = vmatmul.bf16.gmra.mxu3 %v9984_v49 }
 0x538   : > { %4537 = vmatmul.bf16.gmra.mxu2 %v9985_v7  ;;  %v9989_v7 = vld [vmem:[#allocation19_spill] sm:$0xff] }
 0x53a   : > { %v4414_v45 = vpop.f32.mrf.mxu3 }
 0x53b   : > { %v4498_v28 = vpop.f32.mrf.mxu2 }
 0x53c   : > { %v9061_v59 = vadd.f32 %v4498_v28, %v4414_v45  ;;  %v9990_v45 = vld [vmem:[#allocation20_spill] sm:$0xff] }
 0x542   : > { %v4416_v21 = vpop.f32.mrf.mxu3 }
 0x543   : > { %v4500_v63 = vpop.f32.mrf.mxu2 }
 0x544   : > { %v9063_v61 = vadd.f32 %v4500_v63, %v4416_v21 }
 0x547   : > { %4626 = vmatmul.bf16.gmra.mxu0 %v9986_v36  ;;  %4458 = vmatmul.bf16.gmra.mxu3 %v9987_v32 }
 0x548   : > { %4542 = vmatmul.bf16.gmra.mxu2 %v9988_v33  ;;  %v9991_v33 = vld [vmem:[#allocation72_spill] sm:$0xff] }
 0x54a   : > { %v4419_v40 = vpop.f32.mrf.mxu3 }
 0x54b   : > { %v4503_v51 = vpop.f32.mrf.mxu2 }
 0x54c   : > { %v9068_v39 = vadd.f32 %v4503_v51, %v4419_v40  ;;  %v9992_v40 = vld [vmem:[#allocation76_spill] sm:$0xff] }
 0x552   : > { %v4421_v48 = vpop.f32.mrf.mxu3 }
 0x553   : > { %v4505_v44 = vpop.f32.mrf.mxu2 }
 0x554   : > { %v9070_v49 = vadd.f32 %v4505_v44, %v4421_v48 }
 0x557   : > { %4724 = vmatmul.bf16.vlgmr.msrb.gmra.mxu3 %v9989_v7 }
 0x558   : > { %4808 = vmatmul.bf16.vlgmr.msrb.gmra.mxu2 %v9990_v45  ;;  %v9993_v45 = vld [vmem:[#allocation80_spill] sm:$0xff] }
 0x55a   : > { %v4424_v28 = vpop.f32.mrf.mxu3 }
 0x55b   : > { %v4508_v21 = vpop.f32.mrf.mxu2 }
 0x55c   : > { %v9074_v63 = vadd.f32 %v4508_v21, %v4424_v28  ;;  %v9994_v28 = vld [vmem:[#allocation81_spill] sm:$0xff] }
 0x562   : > { %v4426_v36 = vpop.f32.mrf.mxu3 }
 0x563   : > { %v4510_v32 = vpop.f32.mrf.mxu2 }
 0x564   : > { %v9076_v8 = vadd.f32 %v4510_v32, %v4426_v36 }
 0x567   : > { %4729 = vmatmul.bf16.gmra.mxu3 %v9991_v33 }
 0x568   : > { %4813 = vmatmul.bf16.gmra.mxu2 %v9992_v40  ;;  %v9995_v40 = vld [vmem:[#allocation85_spill] sm:$0xff] }
 0x56a   : > { %v4429_v51 = vpop.f32.mrf.mxu3 }
 0x56b   : > { %v4513_v22 = vpop.f32.mrf.mxu2 }
 0x56c   : > { %v9080_v48 = vadd.f32 %v4513_v22, %v4429_v51  ;;  %v9996_v22 = vld [vmem:[#allocation86_spill] sm:$0xff] }
 0x572   : > { %v4431_v44 = vpop.f32.mrf.mxu3 }
 0x573   : > { %v4515_v7 = vpop.f32.mrf.mxu2 }
 0x574   : > { %v9082_v4 = vadd.f32 %v4515_v7, %v4431_v44 }
 0x577   : > { %4734 = vmatmul.bf16.gmra.mxu3 %v9993_v45 }
 0x578   : > { %4818 = vmatmul.bf16.gmra.mxu2 %v9994_v28  ;;  %v9998_v28 = vld [vmem:[#allocation90_spill] sm:$0xff] }
 0x57a   : > { %v4434_v21 = vpop.f32.mrf.mxu3 }
 0x57b   : > { %v4518_v30 = vpop.f32.mrf.mxu2 }
 0x57c   : > { %v9086_v36 = vadd.f32 %v4518_v30, %v4434_v21  ;;  %v9999_v30 = vld [vmem:[#allocation91_spill] sm:$0xff] }
 0x582   : > { %v4436_v32 = vpop.f32.mrf.mxu3 }
 0x583   : > { %v4520_v33 = vpop.f32.mrf.mxu2 }
 0x584   : > { %v9088_v31 = vadd.f32 %v4520_v33, %v4436_v32 }
 0x587   : > { %4739 = vmatmul.bf16.gmra.mxu3 %v9995_v40 }
 0x588   : > { %4823 = vmatmul.bf16.gmra.mxu2 %v9996_v22  ;;  %v10002_v22 = vld [vmem:[#allocation60_spill] sm:$0xff] }
 0x58a   : > { %v4439_v51 = vpop.f32.mrf.mxu3 }
 0x58b   : > { %v4523_v38 = vpop.f32.mrf.mxu2 }
 0x58c   : > { %v9092_v44 = vadd.f32 %v4523_v38, %v4439_v51  ;;  %v10003_v38 = vld [vmem:[#allocation92_spill] sm:$0xff] }
 0x592   : > { %v4441_v7 = vpop.f32.mrf.mxu3 }
 0x593   : > { %v4525_v45 = vpop.f32.mrf.mxu2 }
 0x594   : > { %v9094_v54 = vadd.f32 %v4525_v45, %v4441_v7 }
 0x596   : > { %9997 = vst [vmem:[#allocation79_spill] sm:$0xff] %v9094_v54 }
 0x597   : > { %4744 = vmatmul.bf16.gmra.mxu3 %v9998_v28 }
 0x598   : > { %4828 = vmatmul.bf16.gmra.mxu2 %v9999_v30  ;;  %v10006_v30 = vld [vmem:[#allocation37_spill] sm:$0xff] }
 0x59a   : > { %v4444_v21 = vpop.f32.mrf.mxu3 }
 0x59b   : > { %v4528_v34 = vpop.f32.mrf.mxu2 }
 0x59c   : > { %v9098_v32 = vadd.f32 %v4528_v34, %v4444_v21  ;;  %v10007_v34 = vld [vmem:[#allocation38_spill] sm:$0xff] }
 0x59e   : > { %10000 = vst [vmem:[#allocation83_spill] sm:$0xff] %v9098_v32 }
 0x5a2   : > { %v4446_v33 = vpop.f32.mrf.mxu3 }
 0x5a3   : > { %v4530_v40 = vpop.f32.mrf.mxu2 }
 0x5a4   : > { %v9100_v19 = vadd.f32 %v4530_v40, %v4446_v33 }
 0x5a6   : > { %10001 = vst [vmem:[#allocation82_spill] sm:$0xff] %v9100_v19 }
 0x5a7   : > { %4749 = vmatmul.bf16.gmra.mxu3 %v10002_v22 }
 0x5a8   : > { %4833 = vmatmul.bf16.gmra.mxu2 %v10003_v38  ;;  %v10010_v38 = vld [vmem:[#allocation63_spill] sm:$0xff] }
 0x5aa   : > { %v4449_v51 = vpop.f32.mrf.mxu3 }
 0x5ab   : > { %v4533_v12 = vpop.f32.mrf.mxu2 }
 0x5ac   : > { %v9104_v7 = vadd.f32 %v4533_v12, %v4449_v51  ;;  %v10011_v12 = vld [vmem:[#allocation45_spill] sm:$0xff] }
 0x5ae   : > { %10004 = vst [vmem:[#allocation52_spill] sm:$0xff] %v9104_v7 }
 0x5b2   : > { %v4451_v45 = vpop.f32.mrf.mxu3 }
 0x5b3   : > { %v4535_v28 = vpop.f32.mrf.mxu2 }
 0x5b4   : > { %v9106_v54 = vadd.f32 %v4535_v28, %v4451_v45 }
 0x5b6   : > { %10005 = vst [vmem:[#allocation102_spill] sm:$0xff] %v9106_v54 }
 0x5b7   : > { %4754 = vmatmul.bf16.gmra.mxu3 %v10006_v30 }
 0x5b8   : > { %4838 = vmatmul.bf16.gmra.mxu2 %v10007_v34  ;;  %v9120_v34 = vpop.f32.mrf.mxu0 }
 0x5ba   : > { %v4454_v21 = vpop.f32.mrf.mxu3 }
 0x5bb   : > { %v4538_v32 = vpop.f32.mrf.mxu2 }
 0x5bc   : > { %v9110_v33 = vadd.f32 %v4538_v32, %v4454_v21  ;;  %v10014_v32 = vld [vmem:[#allocation103_spill] sm:$0xff]  ;;  %v10015_v21 = vld [vmem:[#allocation104_spill] sm:$0xff] }
 0x5be   : > { %10008 = vst [vmem:[#allocation99_spill] sm:$0xff] %v9110_v33 }
 0x5c2   : > { %v4456_v40 = vpop.f32.mrf.mxu3 }
 0x5c3   : > { %v4540_v22 = vpop.f32.mrf.mxu2 }
 0x5c4   : > { %v9112_v19 = vadd.f32 %v4540_v22, %v4456_v40  ;;  %v9124_v40 = vpop.f32.mrf.mxu1  ;;  %v4642_v22 = vadd.f32 %v8991_v46, %v8972_v47 }
 0x5c6   : > { %10009 = vst [vmem:[#allocation110_spill] sm:$0xff] %v9112_v19 }
 0x5c7   : > { %4759 = vmatmul.bf16.gmra.mxu3 %v10010_v38 }
 0x5c8   : > { %4843 = vmatmul.bf16.gmra.mxu2 %v10011_v12 }
 0x5ca   : > { %v4459_v51 = vpop.f32.mrf.mxu3 }
 0x5cb   : > { %v4543_v7 = vpop.f32.mrf.mxu2 }
 0x5cc   : > { %v9116_v45 = vadd.f32 %v4543_v7, %v4459_v51  ;;  %v9134_v33 = vpop.f32.mrf.mxu1 }
 0x5ce   : > { %10012 = vst [vmem:[#allocation68_spill] sm:$0xff] %v9116_v45  ;;  %v9128_v45 = vpop.f32.mrf.mxu0 }
 0x5d2   : > { %v4461_v28 = vpop.f32.mrf.mxu3 }
 0x5d3   : > { %v4545_v30 = vpop.f32.mrf.mxu2 }
 0x5d4   : > { %v9118_v54 = vadd.f32 %v4545_v30, %v4461_v28  ;;  %v10016_v28 = vld [vmem:[#allocation73_spill] sm:$0xff] }
 0x5d6   : > { %10013 = vst [vmem:[#allocation114_spill] sm:$0xff] %v9118_v54 }
 0x5d7   : > { %4764 = vmatmul.bf16.gmra.mxu3 %v10014_v32  ;;  %v4644_v32 = vadd.f32 %v9003_v43, %v8981_v35  ;;  %v4647_v35 = vadd.f32 %v9016_v1, %v8989_v3 }
 0x5d8   : > { %4848 = vmatmul.bf16.gmra.mxu2 %v10015_v21 }
 0x5da   : > { %v4725_v38 = vpop.f32.mrf.mxu3 }
 0x5db   : > { %v4809_v12 = vpop.f32.mrf.mxu2  ;;  %v4726_v7 = vadd.f32 %v4725_v38, %v4642_v22  ;;  %v10017_v22 = vld [vmem:[#allocation59_spill] sm:$0xff] }
 0x5dd   : > { %v4810_v51 = vadd.f32 %v4809_v12, %v4726_v7  ;;  %v10018_v12 = vld [vmem:[#allocation46_spill] sm:$0xff] }
 0x5de   : > { %v10019_v7 = vld [vmem:[#allocation42_spill] sm:$0xff] }
 0x5df   : > { %v4914_v30 = vadd.f32 %v4810_v51, %v10016_v28  ;;  %v9140_v51 = vpop.f32.mrf.mxu0 }
 0x5e1   : > { %v5010_v54 = vadd.f32 %v8948_v42, %v4914_v30 }
 0x5e2   : > { %v4727_v21 = vpop.f32.mrf.mxu3 }
 0x5e3   : > { %v4811_v19 = vpop.f32.mrf.mxu2  ;;  %v5042_v58 = vmax.f32 %v5010_v54, 0.0  ;;  %v4728_v47 = vadd.f32 %v4727_v21, %v4644_v32 }
 0x5e5   : > { %5074 = vst [vmem:[%s8963_s6] sm:$0xff] %v5042_v58  ;;  %v4812_v46 = vadd.f32 %v4811_v19, %v4728_v47  ;;  %v9145_v58 = vpop.f32.mrf.mxu1 }
 0x5e7   : > { %v4915_v38 = vadd.f32 %v4812_v46, %v10017_v22  ;;  %4769 = vmatmul.bf16.gmra.mxu3 %v10018_v12  ;;  %v4649_v46 = vadd.f32 %v9029_v55, %v8999_v6  ;;  %v9152_v12 = vpop.f32.mrf.mxu0  ;;  %v4652_v6 = vadd.f32 %v9039_v9, %v9009_v27 }
 0x5e8   : > { %4853 = vmatmul.bf16.gmra.mxu2 %v10019_v7 }
 0x5e9   : > { %v5011_v28 = vadd.f32 %v8948_v42, %v4915_v38 }
 0x5ea   : > { %v4730_v43 = vpop.f32.mrf.mxu3 }
 0x5eb   : > { %v4814_v30 = vpop.f32.mrf.mxu2  ;;  %v5043_v54 = vmax.f32 %v5011_v28, 0.0  ;;  %v4731_v32 = vadd.f32 %v4730_v43, %v4647_v35  ;;  %v10020_v43 = vld [vmem:[#allocation28_spill] sm:$0xff] }
 0x5ed   : > { %5075 = vst [vmem:[%s8963_s6 + $0x8] sm:$0xff] %v5043_v54  ;;  %v4815_v19 = vadd.f32 %v4814_v30, %v4731_v32  ;;  %v9155_v28 = vpop.f32.mrf.mxu1 }
 0x5ef   : > { %v4916_v21 = vadd.f32 %v4815_v19, %v8797_v41  ;;  %v10021_v41 = vld [vmem:[#allocation58_spill] sm:$0xff] }
 0x5f1   : > { %v5012_v47 = vadd.f32 %v8948_v42, %v4916_v21  ;;  %v4582_v21 = vpop.f32.mrf.mxu0 }
 0x5f2   : > { %v4732_v22 = vpop.f32.mrf.mxu3 }
 0x5f3   : > { %v4816_v38 = vpop.f32.mrf.mxu2  ;;  %v5044_v3 = vmax.f32 %v5012_v47, 0.0  ;;  %v4733_v1 = vadd.f32 %v4732_v22, %v4649_v46 }
 0x5f5   : > { %5076 = vst [vmem:[%s8963_s6 + $0x10] sm:$0xff] %v5044_v3  ;;  %v4817_v7 = vadd.f32 %v4816_v38, %v4733_v1  ;;  %v4654_v38 = vadd.f32 %v9049_v13, %v9019_v26 }
 0x5f7   : > { %v4917_v35 = vadd.f32 %v4817_v7, %v8805_v14  ;;  %4774 = vmatmul.bf16.gmra.mxu3 %v10020_v43  ;;  %v9165_v14 = vpop.f32.mrf.mxu1  ;;  %v4573_v7 = vadd.f32 %v9120_v34, %v9027_v17  ;;  %v4575_v17 = vadd.f32 %v9128_v45, %v9036_v0 }
 0x5f8   : > { %4858 = vmatmul.bf16.gmra.mxu2 %v10021_v41  ;;  %v10022_v41 = vld [vmem:[#allocation57_spill] sm:$0xff] }
 0x5f9   : > { %v5013_v30 = vadd.f32 %v8948_v42, %v4917_v35  ;;  %v4584_v43 = vpop.f32.mrf.mxu0  ;;  %v4657_v26 = vadd.f32 %v9124_v40, %v4573_v7 }
 0x5fa   : > { %v4735_v55 = vpop.f32.mrf.mxu3 }
 0x5fb   : > { %v4819_v54 = vpop.f32.mrf.mxu2  ;;  %v5045_v32 = vmax.f32 %v5013_v30, 0.0  ;;  %v4736_v19 = vadd.f32 %v4735_v55, %v4652_v6 }
 0x5fd   : > { %5077 = vst [vmem:[%s8963_s6 + $0x18] sm:$0xff] %v5045_v32  ;;  %v4820_v47 = vadd.f32 %v4819_v54, %v4736_v19 }
 0x5ff   : > { %v4918_v46 = vadd.f32 %v4820_v47, %v8815_v20  ;;  %v4668_v55 = vpop.f32.mrf.mxu1  ;;  %v4659_v47 = vadd.f32 %v9134_v33, %v4575_v17 }
 0x601   : > { %v5014_v22 = vadd.f32 %v8948_v42, %v4918_v46 }
 0x602   : > { %v4737_v3 = vpop.f32.mrf.mxu3 }
 0x603   : > { %v4821_v1 = vpop.f32.mrf.mxu2  ;;  %v5046_v27 = vmax.f32 %v5014_v22, 0.0  ;;  %v4738_v9 = vadd.f32 %v4737_v3, %v4654_v38  ;;  %v4578_v3 = vadd.f32 %v9140_v51, %v9047_v24  ;;  %v4580_v24 = vadd.f32 %v9152_v12, %v9056_v25  ;;  %v10024_v12 = vld [vmem:[#allocation55_spill] sm:$0xff] }
 0x605   : > { %5078 = vst [vmem:[%s8963_s6 + $0x20] sm:$0xff] %v5046_v27  ;;  %v4822_v35 = vadd.f32 %v4821_v1, %v4738_v9  ;;  %v4662_v33 = vadd.f32 %v9145_v58, %v4578_v3 }
 0x607   : > { %v4919_v20 = vadd.f32 %v4822_v35, %v8823_v50  ;;  %4779 = vmatmul.bf16.gmra.mxu3 %v9792_v18  ;;  %v4587_v18 = vpop.f32.mrf.mxu0  ;;  %v4671_v1 = vpop.f32.mrf.mxu1 }
 0x608   : > { %4863 = vmatmul.bf16.gmra.mxu2 %v10022_v41 }
 0x609   : > { %v5015_v30 = vadd.f32 %v8948_v42, %v4919_v20 }
 0x60a   : > { %v4740_v13 = vpop.f32.mrf.mxu3 }
 0x60b   : > { %v4824_v6 = vpop.f32.mrf.mxu2  ;;  %v5047_v54 = vmax.f32 %v5015_v30, 0.0  ;;  %v4741_v32 = vadd.f32 %v4740_v13, %v4657_v26  ;;  %v4664_v26 = vadd.f32 %v9155_v28, %v4580_v24 }
 0x60d   : > { %5079 = vst [vmem:[%s8963_s6 + $0x28] sm:$0xff] %v5047_v54  ;;  %v4825_v34 = vadd.f32 %v4824_v6, %v4741_v32  ;;  %v4583_v32 = vadd.f32 %v4582_v21, %v9061_v59  ;;  %v4585_v59 = vadd.f32 %v4584_v43, %v9063_v61  ;;  %v10025_v43 = vld [vmem:[#allocation107_spill] sm:$0xff] }
 0x60f   : > { %v4920_v50 = vadd.f32 %v4825_v34, %v8833_v29  ;;  %v10023_v29 = vld [vmem:[#allocation71_spill] sm:$0xff]  ;;  %v4589_v35 = vpop.f32.mrf.mxu0  ;;  %v4667_v28 = vadd.f32 %v9165_v14, %v4583_v32 }
 0x611   : > { %v5016_v19 = vadd.f32 %v8948_v42, %v4920_v50 }
 0x612   : > { %v4742_v46 = vpop.f32.mrf.mxu3 }
 0x613   : > { %v4826_v40 = vpop.f32.mrf.mxu2  ;;  %v5048_v22 = vmax.f32 %v5016_v19, 0.0  ;;  %v4743_v38 = vadd.f32 %v4742_v46, %v4659_v47 }
 0x615   : > { %5080 = vst [vmem:[%s8963_s6 + $0x30] sm:$0xff] %v5048_v22  ;;  %v4827_v0 = vadd.f32 %v4826_v40, %v4743_v38  ;;  %v4669_v38 = vadd.f32 %v4668_v55, %v4585_v59 }
 0x617   : > { %v4921_v45 = vadd.f32 %v4827_v0, %v8841_v2  ;;  %4784 = vmatmul.bf16.gmra.mxu3 %v9794_v15  ;;  %v4673_v2 = vpop.f32.mrf.mxu1  ;;  %v4592_v17 = vpop.f32.mrf.mxu0 }
 0x618   : > { %4868 = vmatmul.bf16.gmra.mxu2 %v10023_v29  ;;  %v4593_v32 = vadd.f32 %v4592_v17, %v9074_v63 }
 0x619   : > { %v5017_v27 = vadd.f32 %v8948_v42, %v4921_v45 }
 0x61a   : > { %v4745_v9 = vpop.f32.mrf.mxu3 }
 0x61b   : > { %v4829_v7 = vpop.f32.mrf.mxu2  ;;  %v5049_v20 = vmax.f32 %v5017_v27, 0.0  ;;  %v4746_v41 = vadd.f32 %v4745_v9, %v4662_v33  ;;  %v4588_v27 = vadd.f32 %v4587_v18, %v9068_v39  ;;  %v10026_v9 = vld [vmem:[#allocation108_spill] sm:$0xff]  ;;  %v4590_v39 = vadd.f32 %v4589_v35, %v9070_v49 }
 0x61d   : > { %5081 = vst [vmem:[%s8963_s6 + $0x38] sm:$0xff] %v5049_v20  ;;  %v4830_v51 = vadd.f32 %v4829_v7, %v4746_v41  ;;  %v4672_v55 = vadd.f32 %v4671_v1, %v4588_v27 }
 0x61f   : > { %v4922_v15 = vadd.f32 %v4830_v51, %v8851_v11  ;;  %v4676_v11 = vpop.f32.mrf.mxu1  ;;  %v4594_v22 = vpop.f32.mrf.mxu0 }
 0x621   : > { %v5018_v30 = vadd.f32 %v8948_v42, %v4922_v15 }
 0x622   : > { %v4747_v13 = vpop.f32.mrf.mxu3 }
 0x623   : > { %v4831_v58 = vpop.f32.mrf.mxu2  ;;  %v5050_v6 = vmax.f32 %v5018_v30, 0.0  ;;  %v4748_v54 = vadd.f32 %v4747_v13, %v4664_v26  ;;  %v4674_v26 = vadd.f32 %v4673_v2, %v4590_v39 }
 0x625   : > { %5082 = vst [vmem:[%s8963_s6 + $0x40] sm:$0xff] %v5050_v6  ;;  %v4832_v34 = vadd.f32 %v4831_v58, %v4748_v54 }
 0x627   : > { %v4923_v25 = vadd.f32 %v4832_v34, %v8859_v62  ;;  %4789 = vmatmul.bf16.gmra.mxu3 %v9796_v16  ;;  %v4678_v45 = vpop.f32.mrf.mxu1 }
 0x628   : > { %4873 = vmatmul.bf16.gmra.mxu2 %v10024_v12  ;;  %v4677_v12 = vadd.f32 %v4676_v11, %v4593_v32 }
 0x629   : > { %v5019_v50 = vadd.f32 %v8948_v42, %v4923_v25 }
 0x62a   : > { %v4750_v19 = vpop.f32.mrf.mxu3 }
 0x62b   : > { %v4834_v47 = vpop.f32.mrf.mxu2  ;;  %v5051_v46 = vmax.f32 %v5019_v50, 0.0  ;;  %v4751_v40 = vadd.f32 %v4750_v19, %v4667_v28  ;;  %v4595_v19 = vadd.f32 %v4594_v22, %v9076_v8 }
 0x62d   : > { %5083 = vst [vmem:[%s8963_s6 + $0x48] sm:$0xff] %v5051_v46  ;;  %v4835_v21 = vadd.f32 %v4834_v47, %v4751_v40  ;;  %v4679_v59 = vadd.f32 %v4678_v45, %v4595_v19 }
 0x62f   : > { %v4924_v62 = vadd.f32 %v4835_v21, %v8869_v57  ;;  %v4597_v57 = vpop.f32.mrf.mxu0  ;;  %v4681_v15 = vpop.f32.mrf.mxu1 }
 0x631   : > { %v5020_v16 = vadd.f32 %v8948_v42, %v4924_v62 }
 0x632   : > { %v4752_v3 = vpop.f32.mrf.mxu3 }
 0x633   : > { %v4836_v0 = vpop.f32.mrf.mxu2  ;;  %v5052_v29 = vmax.f32 %v5020_v16, 0.0  ;;  %v4753_v14 = vadd.f32 %v4752_v3, %v4669_v38  ;;  %v4598_v16 = vadd.f32 %v4597_v57, %v9080_v48 }
 0x635   : > { %5084 = vst [vmem:[%s8963_s6 + $0x50] sm:$0xff] %v5052_v29  ;;  %v4837_v33 = vadd.f32 %v4836_v0, %v4753_v14  ;;  %v4682_v0 = vadd.f32 %v4681_v15, %v4598_v16 }
 0x637   : > { %v4925_v61 = vadd.f32 %v4837_v33, %v8877_v23  ;;  %4794 = vmatmul.bf16.gmra.mxu3 %v10025_v43  ;;  %v4599_v6 = vpop.f32.mrf.mxu0  ;;  %v4683_v25 = vpop.f32.mrf.mxu1 }
 0x638   : > { %4878 = vmatmul.bf16.gmra.mxu2 %v10026_v9  ;;  %v4600_v33 = vadd.f32 %v4599_v6, %v9082_v4 }
 0x639   : > { %v5021_v7 = vadd.f32 %v8948_v42, %v4925_v61 }
 0x63a   : > { %v4755_v20 = vpop.f32.mrf.mxu3  ;;  %v4684_v57 = vadd.f32 %v4683_v25, %v4600_v33 }
 0x63b   : > { %v4839_v41 = vpop.f32.mrf.mxu2  ;;  %v5053_v24 = vmax.f32 %v5021_v7, 0.0  ;;  %v4756_v51 = vadd.f32 %v4755_v20, %v4672_v55 }
 0x63d   : > { %5085 = vst [vmem:[%s8963_s6 + $0x58] sm:$0xff] %v5053_v24  ;;  %v4840_v18 = vadd.f32 %v4839_v41, %v4756_v51 }
 0x63f   : > { %v4926_v23 = vadd.f32 %v4840_v18, %v8887_v56  ;;  %v4602_v47 = vpop.f32.mrf.mxu0  ;;  %v4686_v17 = vpop.f32.mrf.mxu1 }
 0x640   : > { %v4603_v24 = vadd.f32 %v4602_v47, %v9086_v36 }
 0x641   : > { %v5022_v30 = vadd.f32 %v8948_v42, %v4926_v23 }
 0x642   : > { %v4757_v13 = vpop.f32.mrf.mxu3  ;;  %v4687_v39 = vadd.f32 %v4686_v17, %v4603_v24 }
 0x643   : > { %v4841_v58 = vpop.f32.mrf.mxu2  ;;  %v5054_v1 = vmax.f32 %v5022_v30, 0.0  ;;  %v4758_v54 = vadd.f32 %v4757_v13, %v4674_v26 }
 0x645   : > { %5086 = vst [vmem:[%s8963_s6 + $0x60] sm:$0xff] %v5054_v1  ;;  %v4842_v34 = vadd.f32 %v4841_v58, %v4758_v54 }
 0x647   : > { %v4927_v49 = vadd.f32 %v4842_v34, %v8895_v52  ;;  %v4604_v3 = vpop.f32.mrf.mxu0  ;;  %v4688_v14 = vpop.f32.mrf.mxu1 }
 0x648   : > { %v4605_v13 = vadd.f32 %v4604_v3, %v9088_v31 }
 0x649   : > { %v5023_v35 = vadd.f32 %v8948_v42, %v4927_v49 }
 0x64a   : > { %v4760_v56 = vpop.f32.mrf.mxu3  ;;  %v4689_v54 = vadd.f32 %v4688_v14, %v4605_v13 }
 0x64b   : > { %v4844_v50 = vpop.f32.mrf.mxu2  ;;  %v5055_v2 = vmax.f32 %v5023_v35, 0.0  ;;  %v4761_v28 = vadd.f32 %v4760_v56, %v4677_v12  ;;  %v10027_v56 = vld [vmem:[#allocation125_spill] sm:$0xff] }
 0x64d   : > { %5087 = vst [vmem:[%s8963_s6 + $0x68] sm:$0xff] %v5055_v2  ;;  %v4845_v46 = vadd.f32 %v4844_v50, %v4761_v28 }
 0x64f   : > { %v4928_v63 = vadd.f32 %v4845_v46, %v8905_v53  ;;  %v4607_v43 = vpop.f32.mrf.mxu0  ;;  %v4691_v41 = vpop.f32.mrf.mxu1 }
 0x650   : > { %v4608_v49 = vadd.f32 %v4607_v43, %v9092_v44  ;;  %v10029_v44 = vld [vmem:[#allocation131_spill] sm:$0xff] }
 0x651   : > { %v5024_v40 = vadd.f32 %v8948_v42, %v4928_v63  ;;  %v10028_v63 = vld [vmem:[#allocation79_spill] sm:$0xff] }
 0x652   : > { %v4762_v52 = vpop.f32.mrf.mxu3  ;;  %v4692_v28 = vadd.f32 %v4691_v41, %v4608_v49 }
 0x653   : > { %v4846_v21 = vpop.f32.mrf.mxu2  ;;  %v5056_v11 = vmax.f32 %v5024_v40, 0.0  ;;  %v4763_v62 = vadd.f32 %v4762_v52, %v4679_v59 }
 0x655   : > { %5088 = vst [vmem:[%s8963_s6 + $0x70] sm:$0xff] %v5056_v11  ;;  %v4847_v38 = vadd.f32 %v4846_v21, %v4763_v62 }
 0x657   : > { %v4929_v8 = vadd.f32 %v4847_v38, %v8913_v10  ;;  %v4609_v23 = vpop.f32.mrf.mxu0  ;;  %v4693_v6 = vpop.f32.mrf.mxu1 }
 0x658   : > { %v4610_v17 = vadd.f32 %v4609_v23, %v10028_v63  ;;  %v10034_v23 = vld [vmem:[#allocation52_spill] sm:$0xff]  ;;  %v10038_v63 = vld [vmem:[#allocation99_spill] sm:$0xff] }
 0x659   : > { %v5025_v22 = vadd.f32 %v8948_v42, %v4929_v8 }
 0x65a   : > { %v4765_v53 = vpop.f32.mrf.mxu3  ;;  %v4694_v11 = vadd.f32 %v4693_v6, %v4610_v17 }
 0x65b   : > { %v4849_v29 = vpop.f32.mrf.mxu2  ;;  %v5057_v45 = vmax.f32 %v5025_v22, 0.0  ;;  %v4766_v27 = vadd.f32 %v4765_v53, %v4682_v0  ;;  %v10030_v22 = vld [vmem:[#allocation83_spill] sm:$0xff] }
 0x65d   : > { %5089 = vst [vmem:[%s8963_s6 + $0x78] sm:$0xff] %v5057_v45  ;;  %v4850_v61 = vadd.f32 %v4849_v29, %v4766_v27  ;;  %v10031_v29 = vld [vmem:[#allocation126_spill] sm:$0xff] }
 0x65f   : > { %v4930_v48 = vadd.f32 %v4850_v61, %v8923_v60  ;;  %v4612_v35 = vpop.f32.mrf.mxu0  ;;  %v4696_v50 = vpop.f32.mrf.mxu1 }
 0x660   : > { %v4613_v0 = vadd.f32 %v4612_v35, %v10030_v22  ;;  %v10040_v22 = vld [vmem:[#allocation110_spill] sm:$0xff] }
 0x661   : > { %v5026_v9 = vadd.f32 %v8948_v42, %v4930_v48 }
 0x662   : > { %v4767_v10 = vpop.f32.mrf.mxu3  ;;  %v4697_v33 = vadd.f32 %v4696_v50, %v4613_v0 }
 0x663   : > { %v4851_v7 = vpop.f32.mrf.mxu2  ;;  %v5058_v55 = vmax.f32 %v5026_v9, 0.0  ;;  %v4768_v20 = vadd.f32 %v4767_v10, %v4684_v57  ;;  %v10032_v10 = vld [vmem:[#allocation82_spill] sm:$0xff] }
 0x665   : > { %5090 = vst [vmem:[%s8963_s6 + $0x80] sm:$0xff] %v5058_v55  ;;  %v4852_v51 = vadd.f32 %v4851_v7, %v4768_v20  ;;  %v10033_v20 = vld [vmem:[#allocation50_spill] sm:$0xff] }
 0x667   : > { %v4931_v4 = vadd.f32 %v4852_v51, %v8931_v5  ;;  %v4614_v59 = vpop.f32.mrf.mxu0  ;;  %v4698_v38 = vpop.f32.mrf.mxu1 }
 0x668   : > { %v4615_v7 = vadd.f32 %v4614_v59, %v10032_v10 }
 0x669   : > { %v5027_v15 = vadd.f32 %v8948_v42, %v4931_v4 }
 0x66a   : > { %v4770_v60 = vpop.f32.mrf.mxu3  ;;  %v4699_v51 = vadd.f32 %v4698_v38, %v4615_v7 }
 0x66b   : > { %v4854_v18 = vpop.f32.mrf.mxu2  ;;  %v5059_v30 = vmax.f32 %v5027_v15, 0.0  ;;  %v4771_v26 = vadd.f32 %v4770_v60, %v4687_v39 }
 0x66d   : > { %5091 = vst [vmem:[%s8963_s6 + $0x88] sm:$0xff] %v5059_v30  ;;  %v4855_v58 = vadd.f32 %v4854_v18, %v4771_v26 }
 0x66f   : > { %v4932_v36 = vadd.f32 %v4855_v58, %v8941_v37  ;;  %v4617_v45 = vpop.f32.mrf.mxu0  ;;  %v4701_v57 = vpop.f32.mrf.mxu1  ;;  %v10035_v58 = vld [vmem:[#allocation133_spill] sm:$0xff] }
 0x670   : > { %v4618_v30 = vadd.f32 %v4617_v45, %v10034_v23  ;;  %v10044_v23 = vld [vmem:[#allocation114_spill] sm:$0xff] }
 0x671   : > { %v5028_v1 = vadd.f32 %v8948_v42, %v4932_v36 }
 0x672   : > { %v4772_v5 = vpop.f32.mrf.mxu3 }
 0x673   : > { %v4856_v32 = vpop.f32.mrf.mxu2  ;;  %v5060_v34 = vmax.f32 %v5028_v1, 0.0  ;;  %v4773_v25 = vadd.f32 %v4772_v5, %v4689_v54  ;;  %v4702_v1 = vadd.f32 %v4701_v57, %v4618_v30  ;;  %v10042_v57 = vld [vmem:[#allocation68_spill] sm:$0xff] }
 0x675   : > { %5092 = vst [vmem:[%s8963_s6 + $0x90] sm:$0xff] %v5060_v34  ;;  %v4857_v12 = vadd.f32 %v4856_v32, %v4773_v25  ;;  %v10036_v25 = vld [vmem:[#allocation102_spill] sm:$0xff] }
 0x677   : > { %v4933_v31 = vadd.f32 %v4857_v12, %v10027_v56  ;;  %v4619_v39 = vpop.f32.mrf.mxu0  ;;  %v4703_v13 = vpop.f32.mrf.mxu1  ;;  %v10037_v56 = vld [vmem:[#allocation128_spill] sm:$0xff] }
 0x678   : > { %v4620_v49 = vadd.f32 %v4619_v39, %v10036_v25 }
 0x679   : > { %v5029_v2 = vadd.f32 %v8948_v42, %v4933_v31 }
 0x67a   : > { %v4775_v37 = vpop.f32.mrf.mxu3 }
 0x67b   : > { %v4859_v19 = vpop.f32.mrf.mxu2  ;;  %v5061_v47 = vmax.f32 %v5029_v2, 0.0  ;;  %v4776_v46 = vadd.f32 %v4775_v37, %v4692_v28  ;;  %v4704_v28 = vadd.f32 %v4703_v13, %v4620_v49  ;;  %v10045_v13 = vld [vmem:[#allocation132_spill] sm:$0xff]  ;;  %v10046_v49 = vld [vmem:[#allocation134_spill] sm:$0xff] }
 0x67d   : > { %5093 = vst [vmem:[%s8963_s6 + $0x98] sm:$0xff] %v5061_v47  ;;  %v4860_v40 = vadd.f32 %v4859_v19, %v4776_v46 }
 0x67f   : > { %v4934_v52 = vadd.f32 %v4860_v40, %v10029_v44  ;;  %v4622_v35 = vpop.f32.mrf.mxu0  ;;  %v4706_v50 = vpop.f32.mrf.mxu1  ;;  %v10039_v44 = vld [vmem:[#allocation135_spill] sm:$0xff] }
 0x680   : > { %v4623_v17 = vadd.f32 %v4622_v35, %v10038_v63 }
 0x681   : > { %v5030_v21 = vadd.f32 %v8948_v42, %v4934_v52 }
 0x682   : > { %v4777_v62 = vpop.f32.mrf.mxu3 }
 0x683   : > { %v4861_v16 = vpop.f32.mrf.mxu2  ;;  %v5062_v3 = vmax.f32 %v5030_v21, 0.0  ;;  %v4778_v8 = vadd.f32 %v4777_v62, %v4694_v11  ;;  %v4707_v11 = vadd.f32 %v4706_v50, %v4623_v17 }
 0x685   : > { %5094 = vst [vmem:[%s8963_s6 + $0xa0] sm:$0xff] %v5062_v3  ;;  %v4862_v53 = vadd.f32 %v4861_v16, %v4778_v8 }
 0x687   : > { %v4935_v14 = vadd.f32 %v4862_v53, %v10031_v29  ;;  %v4624_v59 = vpop.f32.mrf.mxu0  ;;  %v4708_v8 = vpop.f32.mrf.mxu1  ;;  %v10041_v29 = vld [vmem:[#allocation130_spill] sm:$0xff] }
 0x688   : > { %v4625_v0 = vadd.f32 %v4624_v59, %v10040_v22 }
 0x689   : > { %v5031_v27 = vadd.f32 %v8948_v42, %v4935_v14 }
 0x68a   : > { %v4780_v61 = vpop.f32.mrf.mxu3 }
 0x68b   : > { %v4864_v48 = vpop.f32.mrf.mxu2  ;;  %v5063_v43 = vmax.f32 %v5031_v27, 0.0  ;;  %v4781_v9 = vadd.f32 %v4780_v61, %v4697_v33  ;;  %v4709_v33 = vadd.f32 %v4708_v8, %v4625_v0 }
 0x68d   : > { %5095 = vst [vmem:[%s8963_s6 + $0xa8] sm:$0xff] %v5063_v43  ;;  %v4865_v55 = vadd.f32 %v4864_v48, %v4781_v9 }
 0x68f   : > { %v4936_v41 = vadd.f32 %v4865_v55, %v10033_v20  ;;  %v4627_v45 = vpop.f32.mrf.mxu0  ;;  %v4711_v55 = vpop.f32.mrf.mxu1  ;;  %v10043_v20 = vld [vmem:[#allocation136_spill] sm:$0xff] }
 0x690   : > { %v4628_v10 = vadd.f32 %v4627_v45, %v10042_v57 }
 0x691   : > { %v5032_v24 = vadd.f32 %v8948_v42, %v4936_v41 }
 0x692   : > { %v4782_v4 = vpop.f32.mrf.mxu3 }
 0x693   : > { %v4866_v15 = vpop.f32.mrf.mxu2  ;;  %v5064_v60 = vmax.f32 %v5032_v24, 0.0  ;;  %v4783_v18 = vadd.f32 %v4782_v4, %v4699_v51  ;;  %v6444_v24 = vld [vmem:[%s9325_s4] ss:$0 sm:$0xff] }
 0x695   : > { %5096 = vst [vmem:[%s8963_s6 + $0xb0] sm:$0xff] %v5064_v60  ;;  %v4867_v26 = vadd.f32 %v4866_v15, %v4783_v18 }
 0x697   : > { %v4937_v6 = vadd.f32 %v4867_v26, %v10035_v58  ;;  %v4629_v18 = vpop.f32.mrf.mxu0 }
 0x698   : > { %v4630_v30 = vadd.f32 %v4629_v18, %v10044_v23 }
 0x699   : > { %v5033_v36 = vadd.f32 %v8948_v42, %v4937_v6  ;;  %v4713_v6 = vpop.f32.mrf.mxu1 }
 0x69a   : > { %v4785_v54 = vpop.f32.mrf.mxu3 }
 0x69b   : > { %v4869_v5 = vpop.f32.mrf.mxu2  ;;  %v5065_v32 = vmax.f32 %v5033_v36, 0.0  ;;  %v4786_v34 = vadd.f32 %v4785_v54, %v4702_v1  ;;  %v4714_v1 = vadd.f32 %v4713_v6, %v4630_v30 }
 0x69d   : > { %5097 = vst [vmem:[%s8963_s6 + $0xb8] sm:$0xff] %v5065_v32  ;;  %v4870_v12 = vadd.f32 %v4869_v5, %v4786_v34 }
 0x69f   : > { %v4938_v31 = vadd.f32 %v4870_v12, %v10037_v56 }
 0x6a1   : > { %v5034_v2 = vadd.f32 %v8948_v42, %v4938_v31 }
 0x6a2   : > { %v4787_v37 = vpop.f32.mrf.mxu3 }
 0x6a3   : > { %v4871_v19 = vpop.f32.mrf.mxu2  ;;  %v5066_v47 = vmax.f32 %v5034_v2, 0.0  ;;  %v4788_v46 = vadd.f32 %v4787_v37, %v4704_v28 }
 0x6a5   : > { %5098 = vst [vmem:[%s8963_s6 + $0xc0] sm:$0xff] %v5066_v47  ;;  %v4872_v40 = vadd.f32 %v4871_v19, %v4788_v46 }
 0x6a7   : > { %v4939_v52 = vadd.f32 %v4872_v40, %v10039_v44 }
 0x6a9   : > { %v5035_v21 = vadd.f32 %v8948_v42, %v4939_v52 }
 0x6aa   : > { %v4790_v62 = vpop.f32.mrf.mxu3 }
 0x6ab   : > { %v4874_v16 = vpop.f32.mrf.mxu2  ;;  %v5067_v38 = vmax.f32 %v5035_v21, 0.0  ;;  %v4791_v3 = vadd.f32 %v4790_v62, %v4707_v11 }
 0x6ad   : > { %5099 = vst [vmem:[%s8963_s6 + $0xc8] sm:$0xff] %v5067_v38  ;;  %v4875_v53 = vadd.f32 %v4874_v16, %v4791_v3 }
 0x6af   : > { %v4940_v14 = vadd.f32 %v4875_v53, %v10041_v29 }
 0x6b1   : > { %v5036_v27 = vadd.f32 %v8948_v42, %v4940_v14  ;;  %v4712_v42 = vadd.f32 %v4711_v55, %v4628_v10 }
 0x6b2   : > { %v4792_v61 = vpop.f32.mrf.mxu3 }
 0x6b3   : > { %v4876_v48 = vpop.f32.mrf.mxu2  ;;  %v5068_v43 = vmax.f32 %v5036_v27, 0.0  ;;  %v4793_v9 = vadd.f32 %v4792_v61, %v4709_v33 }
 0x6b5   : > { %5100 = vst [vmem:[%s8963_s6 + $0xd0] sm:$0xff] %v5068_v43  ;;  %v4877_v7 = vadd.f32 %v4876_v48, %v4793_v9 }
 0x6b7   : > { %v4941_v41 = vadd.f32 %v4877_v7, %v10043_v20 }
 0x6b9   : > { %v5037_v51 = vadd.f32 %v6444_v24, %v4941_v41 }
 0x6ba   : > { %v4795_v4 = vpop.f32.mrf.mxu3 }
 0x6bb   : > { %v4879_v15 = vpop.f32.mrf.mxu2  ;;  %v5069_v39 = vmax.f32 %v5037_v51, 0.0  ;;  %v4796_v60 = vadd.f32 %v4795_v4, %v4712_v42 }
 0x6bd   : > { %5101 = vst [vmem:[%s8963_s6 + $0xd8] sm:$0xff] %v5069_v39  ;;  %v4880_v26 = vadd.f32 %v4879_v15, %v4796_v60 }
 0x6bf   : > { %v4942_v58 = vadd.f32 %v4880_v26, %v10045_v13 }
 0x6c1   : > { %v5038_v36 = vadd.f32 %v6444_v24, %v4942_v58 }
 0x6c2   : > { %v4797_v54 = vpop.f32.mrf.mxu3 }
 0x6c3   : > { %v5070_v5 = vmax.f32 %v5038_v36, 0.0  ;;  %v4798_v32 = vadd.f32 %v4797_v54, %v4714_v1  ;;  %v4881_v34 = vpop.f32.mrf.mxu2 }
 0x6c5   : > { %5102 = vst [vmem:[%s8963_s6 + $0xe0] sm:$0xff] %v5070_v5  ;;  %v4882_v25 = vadd.f32 %v4881_v34, %v4798_v32 }
 0x6c7   : > { %v4943_v35 = vadd.f32 %v4882_v25, %v10046_v49 }
 0x6c9   : > { %v5039_v12 = vadd.f32 %v6444_v24, %v4943_v35 }
 0x6cb   : > { %v5071_v56 = vmax.f32 %v5039_v12, 0.0 }
 0x6cd   : > { %5103 = vst [vmem:[%s8963_s6 + $0xe8] sm:$0xff] %v5071_v56 }
 0x6ce   : > { %6502 = shalt.err (!%p6499_p8)
}
 0x6cf   : > { %s6546_s12 = smov 128   ;;  %s6547_s6 = smov 8  }
 0x6d0   : > { %6393 = dma.vmem_to_hbm [thread:$0]  (%p6616_p5), %s5120_s16, 4096, %s5122_s14, %s5107_s22, %s6546_s12, %s6546_s12, %s6547_s6  }
 0x6d1 PF: > { %p6405_p9 = scmp.ge.s32.totalorder %s6541_s21, 2  ;;  %s5136_s8 = sand.u32 1, %s6529_s18  }
 0x6d2   : > { %s5137_s9 = scalar_lea.sflag [#allocation5], %s5136_s8 }
 0x6d3   : > { %p6400_p10 = pnand %p6405_p9, %p6620_p6 }
 0x6d5   : > { %p6401_p11 = pneg %p6400_p10 }
 0x6d7   : > { %6524 = dma.done.wait (%p6401_p11), %s5137_s9, 4096  }
 0x6d8   : > { %6526 = vsyncadd (%p6401_p11), %s5137_s9, 4294963200  ;;  %p16_p12 = scmp.ge.s32.totalorder %s6603_s24, 4   ;;  %s10047_s18 = smov %s6533_s19 }
 0x6d9   : > { %s10048_s19 = smov %s6537_s20  ;;  %s10049_s20 = smov %s6614_s27 }
 0x6da   : > { %s10050_s21 = smov %s6603_s24  ;;  %18 = sbr.rel (!%p16_p12) target bundleno = 4 (0x4), region = 85 }
 0x6df   :  { %5143 = vsyncpa [#allocation4], 1 }
 0x6e0   :  { %5145 = vsyncpa [#allocation4 + $0x1], 1 }
 0x6e1   :  { %5146 = vsyncpa [#allocation5], 1 }
 0x6e2   :  { %5148 = vsyncpa [#allocation5 + $0x1], 1 }

</bundles_post_ra>
